<compile_context>
chip_gen: v7x
topology: tpu7x:2x2x1
jax: 0.10.0
libtpu: 0.0.40
codegen_flags: <defaults>
</compile_context>

<pallas_src>
import jax
import jax.numpy as jnp
from jax import lax
from jax.experimental import pallas as pl
from jax.experimental.pallas import tpu as pltpu


# ---------------------------------------------------------------------------
# Kernel: one (batch, H-tile) per grid step, fully fused RCU
# ---------------------------------------------------------------------------

def _rcu_kernel(xc_ref, x_hbm, w1_ref, b1_ref, w2_ref, b2_ref, o_ref,
                pad1, wide1, pad2, wide2, halo, sems):
    # xc_ref : (TH, W, C)  f32   un-haloed x tile (residual + center rows)
    # x_hbm  : (N, H, W, C) f32  raw HBM ref (halo rows only)
    # w*_ref : (3, 3C, C)  bf16  per-kh weights, rows ordered [kw, cin]
    # b*_ref : (1, C)      f32
    # o_ref  : (TH, W, C)
    # pad1   : (TH+4, W+2, C) bf16   relu(x) with 2-row / 1-col zero halo
    # wide1  : (TH+4, W, 3C)  bf16   kw-packed slab for conv1
    # pad2   : (TH+2, W+2, C) bf16   relu(conv1) with 1-col zero halo
    # wide2  : (TH+2, W, 3C)  bf16   kw-packed slab for conv2
    # halo   : (2, 2, W, C)  f32    staging for the 2-row top/bottom halos
    # sems   : DMA semaphores (2,)
    TH, W, C = xc_ref.shape
    act_dt = pad1.dtype

    b = pl.program_id(0)
    hb = pl.program_id(1)
    n_hb = pl.num_programs(1)
    g0 = hb * TH                      # first global row of this tile

    def top_copy():
        return pltpu.make_async_copy(
            x_hbm.at[b, pl.ds(g0 - 2, 2)], halo.at[0], sems.at[0])

    def bot_copy():
        return pltpu.make_async_copy(
            x_hbm.at[b, pl.ds(g0 + TH, 2)], halo.at[1], sems.at[1])

    # Kick off the 2-row halo DMAs early so they overlap the center fill.
    @pl.when(hb > 0)
    def _():
        top_copy().start()

    @pl.when(hb < n_hb - 1)
    def _():
        bot_copy().start()

    # Zero ONLY the borders; the interiors are fully overwritten below.
    zc1 = jnp.zeros((TH + 4, 1, C), act_dt)
    pad1[:, pl.ds(0, 1), :] = zc1
    pad1[:, pl.ds(W + 1, 1), :] = zc1
    zc2 = jnp.zeros((TH + 2, 1, C), act_dt)
    pad2[:, pl.ds(0, 1), :] = zc2
    pad2[:, pl.ds(W + 1, 1), :] = zc2

    # Stage-1 input: relu(x) (bf16) into the pad1 interior (center rows).
    pad1[pl.ds(2, TH), pl.ds(1, W), :] = jnp.maximum(
        xc_ref[...], 0.0).astype(act_dt)

    # Halo rows (2 above / 2 below), zero where outside the image.
    @pl.when(hb > 0)
    def _():
        top_copy().wait()
        pad1[pl.ds(0, 2), pl.ds(1, W), :] = jnp.maximum(
            halo[0], 0.0).astype(act_dt)

    @pl.when(hb == 0)
    def _():
        pad1[pl.ds(0, 2), pl.ds(1, W), :] = jnp.zeros((2, W, C), act_dt)

    @pl.when(hb < n_hb - 1)
    def _():
        bot_copy().wait()
        pad1[pl.ds(TH + 2, 2), pl.ds(1, W), :] = jnp.maximum(
            halo[1], 0.0).astype(act_dt)

    @pl.when(hb == n_hb - 1)
    def _():
        pad1[pl.ds(TH + 2, 2), pl.ds(1, W), :] = jnp.zeros((2, W, C), act_dt)

    # Keep each f32 register accumulator under ~32 vregs.
    chunk = max(1, (32 * 1024) // (W * C))

    def build_wide(pad_ref, wide_ref):
        # wide[r, w, kw*C:(kw+1)*C] = pad[r, w+kw, :]  (3 shifted copies)
        for kw in range(3):
            wide_ref[:, :, pl.ds(kw * C, C)] = pad_ref[:, pl.ds(kw, W), :]

    def conv_rows(wide_ref, wp_ref, r0, rows):
        # 3 accumulating MXU matmuls, K = 3C, register accumulator (f32).
        acc = None
        for kh in range(3):
            win = wide_ref[pl.ds(r0 + kh, rows), :, :].reshape(rows * W, 3 * C)
            part = jnp.dot(win, wp_ref[kh], preferred_element_type=jnp.float32)
            acc = part if acc is None else acc + part
        return acc

    # ---- conv1 on TH+2 rows (center + one halo row each side) -------------
    build_wide(pad1, wide1)
    n1 = TH + 2
    for r0 in range(0, n1, chunk):
        rows = min(chunk, n1 - r0)
        y = jnp.maximum(conv_rows(wide1, w1_ref, r0, rows) + b1_ref[...], 0.0)
        pad2[pl.ds(r0, rows), pl.ds(1, W), :] = y.reshape(
            rows, W, C).astype(act_dt)

    # pad2 rows that fall outside the image are conv2 zero-padding.
    @pl.when(hb == 0)
    def _():
        pad2[pl.ds(0, 1), :, :] = jnp.zeros((1, W + 2, C), act_dt)

    @pl.when(hb == n_hb - 1)
    def _():
        pad2[pl.ds(TH + 1, 1), :, :] = jnp.zeros((1, W + 2, C), act_dt)

    # ---- conv2 on TH rows + bias + residual (f32), lane-dense store -------
    build_wide(pad2, wide2)
    for r0 in range(0, TH, chunk):
        rows = min(chunk, TH - r0)
        acc = conv_rows(wide2, w2_ref, r0, rows) + b2_ref[...]
        res = xc_ref[pl.ds(r0, rows), :, :].reshape(rows * W, C)
        out = acc + res
        o_ref[pl.ds(r0, rows), :, :] = out.reshape(rows, W, C).astype(o_ref.dtype)


# ---------------------------------------------------------------------------
# Wrapper (layout, weight packing, tiling)
# ---------------------------------------------------------------------------

def residual_conv_unit(x, params, *, tile_h=8):
    """x: (N, C, H, W) like the PyTorch module. Returns (N, C, H, W)."""
    n, c, h, w = x.shape
    assert c % 128 == 0, "channel dim must be a multiple of 128 (lane-dense)"
    assert w % 16 == 0, "W must be a multiple of 16 (bf16 sublane packing)"

    th = tile_h if (tile_h >= 2 and h % tile_h == 0) else h
    n_hb = h // th

    x_nhwc = jnp.transpose(x, (0, 2, 3, 1))                      # (N, H, W, C)

    def pack(wt):
        # (Cout, Cin, 3, 3) -> (kh, kw*Cin, Cout), bf16 for the MXU.
        return jnp.transpose(wt, (2, 3, 1, 0)).reshape(3, 3 * c, c).astype(
            jnp.bfloat16)

    w1p, w2p = pack(params["w1"]), pack(params["w2"])
    b1 = params["b1"].reshape(1, c).astype(jnp.float32)
    b2 = params["b2"].reshape(1, c).astype(jnp.float32)

    out_nhwc = pl.pallas_call(
        _rcu_kernel,
        out_shape=jax.ShapeDtypeStruct((n, h, w, c), x.dtype),
        grid=(n, n_hb),
        in_specs=[
            pl.BlockSpec((None, th, w, c), lambda b, i: (b, i, 0, 0)),
            pl.BlockSpec(memory_space=pl.ANY),               # raw HBM (halos)
            pl.BlockSpec((3, 3 * c, c), lambda b, i: (0, 0, 0)),
            pl.BlockSpec((1, c), lambda b, i: (0, 0)),
            pl.BlockSpec((3, 3 * c, c), lambda b, i: (0, 0, 0)),
            pl.BlockSpec((1, c), lambda b, i: (0, 0)),
        ],
        out_specs=pl.BlockSpec((None, th, w, c), lambda b, i: (b, i, 0, 0)),
        scratch_shapes=[
            pltpu.VMEM((th + 4, w + 2, c), jnp.bfloat16),    # pad1
            pltpu.VMEM((th + 4, w, 3 * c), jnp.bfloat16),    # wide1
            pltpu.VMEM((th + 2, w + 2, c), jnp.bfloat16),    # pad2
            pltpu.VMEM((th + 2, w, 3 * c), jnp.bfloat16),    # wide2
            pltpu.VMEM((2, 2, w, c), x.dtype),               # halo staging
            pltpu.SemaphoreType.DMA((2,)),
        ],
        compiler_params=pltpu.CompilerParams(
            dimension_semantics=("parallel", "parallel"),
            vmem_limit_bytes=64 * 1024 * 1024),
    )(x_nhwc, x_nhwc, w1p, b1, w2p, b2)

    return jnp.transpose(out_nhwc, (0, 3, 1, 2))                 # back to NCHW


# ---------------------------------------------------------------------------
# Pure-JAX reference (same 'same'-padding semantics, f32 HIGHEST)
# ---------------------------------------------------------------------------

def reference(x, params):
    dn = ("NCHW", "OIHW", "NCHW")
    y = jnp.maximum(x, 0.0)
    y = lax.conv_general_dilated(
        y, params["w1"], (1, 1), ((1, 1), (1, 1)), dimension_numbers=dn,
        precision=lax.Precision.HIGHEST)
    y = y + params["b1"][None, :, None, None]
    y = jnp.maximum(y, 0.0)
    y = lax.conv_general_dilated(
        y, params["w2"], (1, 1), ((1, 1), (1, 1)), dimension_numbers=dn,
        precision=lax.Precision.HIGHEST)
    y = y + params["b2"][None, :, None, None]
    return y + x


# ---------------------------------------------------------------------------
# Demo
# ---------------------------------------------------------------------------

if __name__ == "__main__":
    key = jax.random.PRNGKey(0)
    k0, k1, k2, k3, k4 = jax.random.split(key, 5)

    N, C, H, W = 2, 128, 16, 16      # C=128 keeps the channel (lane) dim dense
    x = jax.random.normal(k0, (N, C, H, W), jnp.float32)

    wscale = 1.0 / (3.0 * float(C) ** 0.5)
    params = {
        "w1": jax.random.normal(k1, (C, C, 3, 3), jnp.float32) * wscale,
        "b1": jax.random.normal(k2, (C,), jnp.float32) * 0.1,
        "w2": jax.random.normal(k3, (C, C, 3, 3), jnp.float32) * wscale,
        "b2": jax.random.normal(k4, (C,), jnp.float32) * 0.1,
    }

    out = jax.jit(residual_conv_unit)(x, params)    # tile_h=8 -> grid (2, 2)
    jax.block_until_ready(out)

    ref = reference(x, params)
    assert out.shape == (N, C, H, W)
    max_err = float(jnp.max(jnp.abs(out - ref)))
    # bf16 MXU operands with f32 accumulation vs f32 HIGHEST reference.
    assert jnp.allclose(out, ref, atol=5e-2, rtol=5e-2), max_err
    print("KERNEL_OK")
</pallas_src>

<mosaic_0001>
module attributes {stable_mosaic.version = 11 : i64} {
  func.func @_rcu_kernel(%arg0: i32, %arg1: i32, %arg2: memref<1x8x16x128xf32, #tpu.memory_space<vmem>>, %arg3: memref<2x16x16x128xf32, #tpu.memory_space<any>>, %arg4: memref<3x384x128xbf16, #tpu.memory_space<vmem>>, %arg5: memref<1x128xf32, #tpu.memory_space<vmem>>, %arg6: memref<3x384x128xbf16, #tpu.memory_space<vmem>>, %arg7: memref<1x128xf32, #tpu.memory_space<vmem>>, %arg8: memref<1x8x16x128xf32, #tpu.memory_space<vmem>>, %arg9: memref<12x18x128xbf16, #tpu.memory_space<vmem>>, %arg10: memref<12x16x384xbf16, #tpu.memory_space<vmem>>, %arg11: memref<10x18x128xbf16, #tpu.memory_space<vmem>>, %arg12: memref<10x16x384xbf16, #tpu.memory_space<vmem>>, %arg13: memref<2x2x16x128xf32, #tpu.memory_space<vmem>>, %arg14: memref<2x!tpu.dma_semaphore, #tpu.memory_space<semaphore_mem>>) attributes {dimension_semantics = [#tpu.dimension_semantics<parallel>, #tpu.dimension_semantics<parallel>], iteration_bounds = array<i64: 2, 2>, scalar_prefetch = 0 : i64, scratch_operands = 6 : i64, tpu.core_type = #tpu.core_type<tc>, window_params = [{transform_indices = @transform_0, window_bounds = array<i64: 1, 8, 16, 128>}, {}, {pipeline_mode = #tpu.pipeline_mode<synchronous>, transform_indices = @transform_2, window_bounds = array<i64: 3, 384, 128>}, {pipeline_mode = #tpu.pipeline_mode<synchronous>, transform_indices = @transform_3, window_bounds = array<i64: 1, 128>}, {pipeline_mode = #tpu.pipeline_mode<synchronous>, transform_indices = @transform_4, window_bounds = array<i64: 3, 384, 128>}, {pipeline_mode = #tpu.pipeline_mode<synchronous>, transform_indices = @transform_5, window_bounds = array<i64: 1, 128>}, {transform_indices = @transform_6, window_bounds = array<i64: 1, 8, 16, 128>}]} {
    %c8_i32 = arith.constant 8 : i32
    %0 = arith.muli %arg1, %c8_i32 : i32
    %c0_i32 = arith.constant 0 : i32
    %1 = arith.cmpi sgt, %arg1, %c0_i32 : i32
    %2 = arith.extui %1 : i1 to i32
    %c0_i32_0 = arith.constant 0 : i32
    %3 = arith.cmpi ne, %2, %c0_i32_0 : i32
    scf.if %3 {
      %c2_i32 = arith.constant 2 : i32
      %102 = arith.subi %0, %c2_i32 : i32
      %c0_i32_123 = arith.constant 0 : i32
      %c0_i32_124 = arith.constant 0 : i32
      %c0_i32_125 = arith.constant 0 : i32
      %c0_i32_126 = arith.constant 0 : i32
      %103 = tpu.memref_slice %arg3[%arg0, %102, %c0_i32_125, %c0_i32_126] : memref<2x16x16x128xf32, #tpu.memory_space<any>> -> memref<1x2x16x128xf32, #tpu.memory_space<any>>
      %104 = tpu.memref_squeeze %103 : memref<1x2x16x128xf32, #tpu.memory_space<any>> -> memref<2x16x128xf32, #tpu.memory_space<any>>
      %c0_i32_127 = arith.constant 0 : i32
      %c0_i32_128 = arith.constant 0 : i32
      %c0_i32_129 = arith.constant 0 : i32
      %105 = tpu.memref_slice %arg13[%c0_i32_123, %c0_i32_127, %c0_i32_128, %c0_i32_129] : memref<2x2x16x128xf32, #tpu.memory_space<vmem>> -> memref<1x2x16x128xf32, #tpu.memory_space<vmem>>
      %106 = tpu.memref_squeeze %105 : memref<1x2x16x128xf32, #tpu.memory_space<vmem>> -> memref<2x16x128xf32, #tpu.memory_space<vmem>>
      %107 = tpu.memref_slice %arg14[%c0_i32_124] : memref<2x!tpu.dma_semaphore, #tpu.memory_space<semaphore_mem>> -> memref<1x!tpu.dma_semaphore, #tpu.memory_space<semaphore_mem>>
      %108 = tpu.memref_squeeze %107 : memref<1x!tpu.dma_semaphore, #tpu.memory_space<semaphore_mem>> -> memref<!tpu.dma_semaphore, #tpu.memory_space<semaphore_mem>>
      tpu.enqueue_dma source(%104 : memref<2x16x128xf32, #tpu.memory_space<any>>) target(%106 : memref<2x16x128xf32, #tpu.memory_space<vmem>>) target_semaphore(%108 : memref<!tpu.dma_semaphore, #tpu.memory_space<semaphore_mem>>)
    } else {
    }
    %c1_i32 = arith.constant 1 : i32
    %4 = arith.cmpi slt, %arg1, %c1_i32 : i32
    %5 = arith.extui %4 : i1 to i32
    %c0_i32_1 = arith.constant 0 : i32
    %6 = arith.cmpi ne, %5, %c0_i32_1 : i32
    scf.if %6 {
      %c8_i32_123 = arith.constant 8 : i32
      %102 = arith.addi %0, %c8_i32_123 : i32
      %c1_i32_124 = arith.constant 1 : i32
      %c1_i32_125 = arith.constant 1 : i32
      %c0_i32_126 = arith.constant 0 : i32
      %c0_i32_127 = arith.constant 0 : i32
      %103 = tpu.memref_slice %arg3[%arg0, %102, %c0_i32_126, %c0_i32_127] : memref<2x16x16x128xf32, #tpu.memory_space<any>> -> memref<1x2x16x128xf32, #tpu.memory_space<any>>
      %104 = tpu.memref_squeeze %103 : memref<1x2x16x128xf32, #tpu.memory_space<any>> -> memref<2x16x128xf32, #tpu.memory_space<any>>
      %c0_i32_128 = arith.constant 0 : i32
      %c0_i32_129 = arith.constant 0 : i32
      %c0_i32_130 = arith.constant 0 : i32
      %105 = tpu.memref_slice %arg13[%c1_i32_124, %c0_i32_128, %c0_i32_129, %c0_i32_130] : memref<2x2x16x128xf32, #tpu.memory_space<vmem>> -> memref<1x2x16x128xf32, #tpu.memory_space<vmem>>
      %106 = tpu.memref_squeeze %105 : memref<1x2x16x128xf32, #tpu.memory_space<vmem>> -> memref<2x16x128xf32, #tpu.memory_space<vmem>>
      %107 = tpu.memref_slice %arg14[%c1_i32_125] : memref<2x!tpu.dma_semaphore, #tpu.memory_space<semaphore_mem>> -> memref<1x!tpu.dma_semaphore, #tpu.memory_space<semaphore_mem>>
      %108 = tpu.memref_squeeze %107 : memref<1x!tpu.dma_semaphore, #tpu.memory_space<semaphore_mem>> -> memref<!tpu.dma_semaphore, #tpu.memory_space<semaphore_mem>>
      tpu.enqueue_dma source(%104 : memref<2x16x128xf32, #tpu.memory_space<any>>) target(%106 : memref<2x16x128xf32, #tpu.memory_space<vmem>>) target_semaphore(%108 : memref<!tpu.dma_semaphore, #tpu.memory_space<semaphore_mem>>)
    } else {
    }
    %cst = arith.constant 0.000000e+00 : bf16
    %7 = vector.broadcast %cst : bf16 to vector<12x1x128xbf16>
    %c0 = arith.constant 0 : index
    %c0_2 = arith.constant 0 : index
    %c0_3 = arith.constant 0 : index
    %8 = vector.load %arg9[%c0, %c0_2, %c0_3] : memref<12x18x128xbf16, #tpu.memory_space<vmem>>, vector<12x1x128xbf16>
    tpu.vector_store %arg9[%c0, %c0_2, %c0_3], %7 {strides = array<i32>} : memref<12x18x128xbf16, #tpu.memory_space<vmem>>, vector<12x1x128xbf16>,
    %c0_4 = arith.constant 0 : index
    %c17 = arith.constant 17 : index
    %c0_5 = arith.constant 0 : index
    %9 = vector.load %arg9[%c0_4, %c17, %c0_5] : memref<12x18x128xbf16, #tpu.memory_space<vmem>>, vector<12x1x128xbf16>
    tpu.vector_store %arg9[%c0_4, %c17, %c0_5], %7 {strides = array<i32>} : memref<12x18x128xbf16, #tpu.memory_space<vmem>>, vector<12x1x128xbf16>,
    %cst_6 = arith.constant 0.000000e+00 : bf16
    %10 = vector.broadcast %cst_6 : bf16 to vector<10x1x128xbf16>
    %c0_7 = arith.constant 0 : index
    %c0_8 = arith.constant 0 : index
    %c0_9 = arith.constant 0 : index
    %11 = vector.load %arg11[%c0_7, %c0_8, %c0_9] : memref<10x18x128xbf16, #tpu.memory_space<vmem>>, vector<10x1x128xbf16>
    tpu.vector_store %arg11[%c0_7, %c0_8, %c0_9], %10 {strides = array<i32>} : memref<10x18x128xbf16, #tpu.memory_space<vmem>>, vector<10x1x128xbf16>,
    %c0_10 = arith.constant 0 : index
    %c17_11 = arith.constant 17 : index
    %c0_12 = arith.constant 0 : index
    %12 = vector.load %arg11[%c0_10, %c17_11, %c0_12] : memref<10x18x128xbf16, #tpu.memory_space<vmem>>, vector<10x1x128xbf16>
    tpu.vector_store %arg11[%c0_10, %c17_11, %c0_12], %10 {strides = array<i32>} : memref<10x18x128xbf16, #tpu.memory_space<vmem>>, vector<10x1x128xbf16>,
    %c0_13 = arith.constant 0 : index
    %c0_14 = arith.constant 0 : index
    %c0_15 = arith.constant 0 : index
    %c0_16 = arith.constant 0 : index
    %13 = vector.load %arg2[%c0_13, %c0_14, %c0_15, %c0_16] : memref<1x8x16x128xf32, #tpu.memory_space<vmem>>, vector<1x8x16x128xf32>
    %14 = vector.shape_cast %13 : vector<1x8x16x128xf32> to vector<8x16x128xf32>
    %cst_17 = arith.constant 0.000000e+00 : f32
    %15 = vector.broadcast %cst_17 : f32 to vector<8x16x128xf32>
    %16 = arith.maximumf %14, %15 : vector<8x16x128xf32>
    %17 = arith.truncf %16 : vector<8x16x128xf32> to vector<8x16x128xbf16>
    %c2 = arith.constant 2 : index
    %c1 = arith.constant 1 : index
    %c0_18 = arith.constant 0 : index
    %18 = vector.load %arg9[%c2, %c1, %c0_18] : memref<12x18x128xbf16, #tpu.memory_space<vmem>>, vector<8x16x128xbf16>
    tpu.vector_store %arg9[%c2, %c1, %c0_18], %17 {strides = array<i32>} : memref<12x18x128xbf16, #tpu.memory_space<vmem>>, vector<8x16x128xbf16>,
    %c0_i32_19 = arith.constant 0 : i32
    %19 = arith.cmpi sgt, %arg1, %c0_i32_19 : i32
    %20 = arith.extui %19 : i1 to i32
    %c0_i32_20 = arith.constant 0 : i32
    %21 = arith.cmpi ne, %20, %c0_i32_20 : i32
    scf.if %21 {
      %c2_i32 = arith.constant 2 : i32
      %102 = arith.subi %0, %c2_i32 : i32
      %c0_i32_123 = arith.constant 0 : i32
      %c0_i32_124 = arith.constant 0 : i32
      %c0_i32_125 = arith.constant 0 : i32
      %c0_i32_126 = arith.constant 0 : i32
      %103 = tpu.memref_slice %arg3[%arg0, %102, %c0_i32_125, %c0_i32_126] : memref<2x16x16x128xf32, #tpu.memory_space<any>> -> memref<1x2x16x128xf32, #tpu.memory_space<any>>
      %104 = tpu.memref_squeeze %103 : memref<1x2x16x128xf32, #tpu.memory_space<any>> -> memref<2x16x128xf32, #tpu.memory_space<any>>
      %c0_i32_127 = arith.constant 0 : i32
      %c0_i32_128 = arith.constant 0 : i32
      %c0_i32_129 = arith.constant 0 : i32
      %105 = tpu.memref_slice %arg13[%c0_i32_123, %c0_i32_127, %c0_i32_128, %c0_i32_129] : memref<2x2x16x128xf32, #tpu.memory_space<vmem>> -> memref<1x2x16x128xf32, #tpu.memory_space<vmem>>
      %106 = tpu.memref_squeeze %105 : memref<1x2x16x128xf32, #tpu.memory_space<vmem>> -> memref<2x16x128xf32, #tpu.memory_space<vmem>>
      %107 = tpu.memref_slice %arg14[%c0_i32_124] : memref<2x!tpu.dma_semaphore, #tpu.memory_space<semaphore_mem>> -> memref<1x!tpu.dma_semaphore, #tpu.memory_space<semaphore_mem>>
      %108 = tpu.memref_squeeze %107 : memref<1x!tpu.dma_semaphore, #tpu.memory_space<semaphore_mem>> -> memref<!tpu.dma_semaphore, #tpu.memory_space<semaphore_mem>>
      tpu.wait_dma2 semaphore(%108 : memref<!tpu.dma_semaphore, #tpu.memory_space<semaphore_mem>>) src(%104 : memref<2x16x128xf32, #tpu.memory_space<any>>) dst(%106 : memref<2x16x128xf32, #tpu.memory_space<vmem>>)
      %c0_130 = arith.constant 0 : index
      %c0_131 = arith.constant 0 : index
      %c0_132 = arith.constant 0 : index
      %c0_133 = arith.constant 0 : index
      %109 = vector.load %arg13[%c0_130, %c0_131, %c0_132, %c0_133] : memref<2x2x16x128xf32, #tpu.memory_space<vmem>>, vector<1x2x16x128xf32>
      %110 = vector.shape_cast %109 : vector<1x2x16x128xf32> to vector<2x16x128xf32>
      %cst_134 = arith.constant 0.000000e+00 : f32
      %111 = vector.broadcast %cst_134 : f32 to vector<2x16x128xf32>
      %112 = arith.maximumf %110, %111 : vector<2x16x128xf32>
      %113 = arith.truncf %112 : vector<2x16x128xf32> to vector<2x16x128xbf16>
      %c0_135 = arith.constant 0 : index
      %c1_136 = arith.constant 1 : index
      %c0_137 = arith.constant 0 : index
      %114 = vector.load %arg9[%c0_135, %c1_136, %c0_137] : memref<12x18x128xbf16, #tpu.memory_space<vmem>>, vector<2x16x128xbf16>
      tpu.vector_store %arg9[%c0_135, %c1_136, %c0_137], %113 {strides = array<i32>} : memref<12x18x128xbf16, #tpu.memory_space<vmem>>, vector<2x16x128xbf16>,
    } else {
    }
    %c0_i32_21 = arith.constant 0 : i32
    %22 = arith.cmpi eq, %arg1, %c0_i32_21 : i32
    %23 = arith.extui %22 : i1 to i32
    %c0_i32_22 = arith.constant 0 : i32
    %24 = arith.cmpi ne, %23, %c0_i32_22 : i32
    scf.if %24 {
      %cst_123 = arith.constant 0.000000e+00 : bf16
      %102 = vector.broadcast %cst_123 : bf16 to vector<2x16x128xbf16>
      %c0_124 = arith.constant 0 : index
      %c1_125 = arith.constant 1 : index
      %c0_126 = arith.constant 0 : index
      %103 = vector.load %arg9[%c0_124, %c1_125, %c0_126] : memref<12x18x128xbf16, #tpu.memory_space<vmem>>, vector<2x16x128xbf16>
      tpu.vector_store %arg9[%c0_124, %c1_125, %c0_126], %102 {strides = array<i32>} : memref<12x18x128xbf16, #tpu.memory_space<vmem>>, vector<2x16x128xbf16>,
    } else {
    }
    %c1_i32_23 = arith.constant 1 : i32
    %25 = arith.cmpi slt, %arg1, %c1_i32_23 : i32
    %26 = arith.extui %25 : i1 to i32
    %c0_i32_24 = arith.constant 0 : i32
    %27 = arith.cmpi ne, %26, %c0_i32_24 : i32
    scf.if %27 {
      %c8_i32_123 = arith.constant 8 : i32
      %102 = arith.addi %0, %c8_i32_123 : i32
      %c1_i32_124 = arith.constant 1 : i32
      %c1_i32_125 = arith.constant 1 : i32
      %c0_i32_126 = arith.constant 0 : i32
      %c0_i32_127 = arith.constant 0 : i32
      %103 = tpu.memref_slice %arg3[%arg0, %102, %c0_i32_126, %c0_i32_127] : memref<2x16x16x128xf32, #tpu.memory_space<any>> -> memref<1x2x16x128xf32, #tpu.memory_space<any>>
      %104 = tpu.memref_squeeze %103 : memref<1x2x16x128xf32, #tpu.memory_space<any>> -> memref<2x16x128xf32, #tpu.memory_space<any>>
      %c0_i32_128 = arith.constant 0 : i32
      %c0_i32_129 = arith.constant 0 : i32
      %c0_i32_130 = arith.constant 0 : i32
      %105 = tpu.memref_slice %arg13[%c1_i32_124, %c0_i32_128, %c0_i32_129, %c0_i32_130] : memref<2x2x16x128xf32, #tpu.memory_space<vmem>> -> memref<1x2x16x128xf32, #tpu.memory_space<vmem>>
      %106 = tpu.memref_squeeze %105 : memref<1x2x16x128xf32, #tpu.memory_space<vmem>> -> memref<2x16x128xf32, #tpu.memory_space<vmem>>
      %107 = tpu.memref_slice %arg14[%c1_i32_125] : memref<2x!tpu.dma_semaphore, #tpu.memory_space<semaphore_mem>> -> memref<1x!tpu.dma_semaphore, #tpu.memory_space<semaphore_mem>>
      %108 = tpu.memref_squeeze %107 : memref<1x!tpu.dma_semaphore, #tpu.memory_space<semaphore_mem>> -> memref<!tpu.dma_semaphore, #tpu.memory_space<semaphore_mem>>
      tpu.wait_dma2 semaphore(%108 : memref<!tpu.dma_semaphore, #tpu.memory_space<semaphore_mem>>) src(%104 : memref<2x16x128xf32, #tpu.memory_space<any>>) dst(%106 : memref<2x16x128xf32, #tpu.memory_space<vmem>>)
      %c1_131 = arith.constant 1 : index
      %c0_132 = arith.constant 0 : index
      %c0_133 = arith.constant 0 : index
      %c0_134 = arith.constant 0 : index
      %109 = vector.load %arg13[%c1_131, %c0_132, %c0_133, %c0_134] : memref<2x2x16x128xf32, #tpu.memory_space<vmem>>, vector<1x2x16x128xf32>
      %110 = vector.shape_cast %109 : vector<1x2x16x128xf32> to vector<2x16x128xf32>
      %cst_135 = arith.constant 0.000000e+00 : f32
      %111 = vector.broadcast %cst_135 : f32 to vector<2x16x128xf32>
      %112 = arith.maximumf %110, %111 : vector<2x16x128xf32>
      %113 = arith.truncf %112 : vector<2x16x128xf32> to vector<2x16x128xbf16>
      %c10 = arith.constant 10 : index
      %c1_136 = arith.constant 1 : index
      %c0_137 = arith.constant 0 : index
      %114 = vector.load %arg9[%c10, %c1_136, %c0_137] : memref<12x18x128xbf16, #tpu.memory_space<vmem>>, vector<2x16x128xbf16>
      tpu.vector_store %arg9[%c10, %c1_136, %c0_137], %113 {strides = array<i32>} : memref<12x18x128xbf16, #tpu.memory_space<vmem>>, vector<2x16x128xbf16>,
    } else {
    }
    %c1_i32_25 = arith.constant 1 : i32
    %28 = arith.cmpi eq, %arg1, %c1_i32_25 : i32
    %29 = arith.extui %28 : i1 to i32
    %c0_i32_26 = arith.constant 0 : i32
    %30 = arith.cmpi ne, %29, %c0_i32_26 : i32
    scf.if %30 {
      %cst_123 = arith.constant 0.000000e+00 : bf16
      %102 = vector.broadcast %cst_123 : bf16 to vector<2x16x128xbf16>
      %c10 = arith.constant 10 : index
      %c1_124 = arith.constant 1 : index
      %c0_125 = arith.constant 0 : index
      %103 = vector.load %arg9[%c10, %c1_124, %c0_125] : memref<12x18x128xbf16, #tpu.memory_space<vmem>>, vector<2x16x128xbf16>
      tpu.vector_store %arg9[%c10, %c1_124, %c0_125], %102 {strides = array<i32>} : memref<12x18x128xbf16, #tpu.memory_space<vmem>>, vector<2x16x128xbf16>,
    } else {
    }
    %c0_27 = arith.constant 0 : index
    %c0_28 = arith.constant 0 : index
    %c0_29 = arith.constant 0 : index
    %31 = vector.load %arg9[%c0_27, %c0_28, %c0_29] : memref<12x18x128xbf16, #tpu.memory_space<vmem>>, vector<12x16x128xbf16>
    %c0_30 = arith.constant 0 : index
    %c0_31 = arith.constant 0 : index
    %c0_32 = arith.constant 0 : index
    %32 = vector.load %arg10[%c0_30, %c0_31, %c0_32] : memref<12x16x384xbf16, #tpu.memory_space<vmem>>, vector<12x16x128xbf16>
    tpu.vector_store %arg10[%c0_30, %c0_31, %c0_32], %31 {strides = array<i32>} : memref<12x16x384xbf16, #tpu.memory_space<vmem>>, vector<12x16x128xbf16>,
    %c0_33 = arith.constant 0 : index
    %c1_34 = arith.constant 1 : index
    %c0_35 = arith.constant 0 : index
    %33 = vector.load %arg9[%c0_33, %c1_34, %c0_35] : memref<12x18x128xbf16, #tpu.memory_space<vmem>>, vector<12x16x128xbf16>
    %c0_36 = arith.constant 0 : index
    %c0_37 = arith.constant 0 : index
    %c128 = arith.constant 128 : index
    %34 = vector.load %arg10[%c0_36, %c0_37, %c128] : memref<12x16x384xbf16, #tpu.memory_space<vmem>>, vector<12x16x128xbf16>
    tpu.vector_store %arg10[%c0_36, %c0_37, %c128], %33 {strides = array<i32>} : memref<12x16x384xbf16, #tpu.memory_space<vmem>>, vector<12x16x128xbf16>,
    %c0_38 = arith.constant 0 : index
    %c2_39 = arith.constant 2 : index
    %c0_40 = arith.constant 0 : index
    %35 = vector.load %arg9[%c0_38, %c2_39, %c0_40] : memref<12x18x128xbf16, #tpu.memory_space<vmem>>, vector<12x16x128xbf16>
    %c0_41 = arith.constant 0 : index
    %c0_42 = arith.constant 0 : index
    %c256 = arith.constant 256 : index
    %36 = vector.load %arg10[%c0_41, %c0_42, %c256] : memref<12x16x384xbf16, #tpu.memory_space<vmem>>, vector<12x16x128xbf16>
    tpu.vector_store %arg10[%c0_41, %c0_42, %c256], %35 {strides = array<i32>} : memref<12x16x384xbf16, #tpu.memory_space<vmem>>, vector<12x16x128xbf16>,
    %c0_43 = arith.constant 0 : index
    %c0_44 = arith.constant 0 : index
    %c0_45 = arith.constant 0 : index
    %37 = vector.load %arg10[%c0_43, %c0_44, %c0_45] : memref<12x16x384xbf16, #tpu.memory_space<vmem>>, vector<10x16x384xbf16>
    %38 = vector.shape_cast %37 : vector<10x16x384xbf16> to vector<160x384xbf16>
    %c0_46 = arith.constant 0 : index
    %c0_47 = arith.constant 0 : index
    %c0_48 = arith.constant 0 : index
    %39 = vector.load %arg4[%c0_46, %c0_47, %c0_48] : memref<3x384x128xbf16, #tpu.memory_space<vmem>>, vector<1x384x128xbf16>
    %40 = vector.shape_cast %39 : vector<1x384x128xbf16> to vector<384x128xbf16>
    %cst_49 = arith.constant dense<0.000000e+00> : vector<160x128xf32>
    %41 = tpu.matmul %38, %40, %cst_49 {dimension_numbers = #tpu.dot_dimension_numbers<[1], [0], [0], [1], [0, 0, 1, 1], [], []>} : vector<160x384xbf16>, vector<384x128xbf16>, vector<160x128xf32> -> vector<160x128xf32>
    %c1_50 = arith.constant 1 : index
    %c0_51 = arith.constant 0 : index
    %c0_52 = arith.constant 0 : index
    %42 = vector.load %arg10[%c1_50, %c0_51, %c0_52] : memref<12x16x384xbf16, #tpu.memory_space<vmem>>, vector<10x16x384xbf16>
    %43 = vector.shape_cast %42 : vector<10x16x384xbf16> to vector<160x384xbf16>
    %c1_53 = arith.constant 1 : index
    %c0_54 = arith.constant 0 : index
    %c0_55 = arith.constant 0 : index
    %44 = vector.load %arg4[%c1_53, %c0_54, %c0_55] : memref<3x384x128xbf16, #tpu.memory_space<vmem>>, vector<1x384x128xbf16>
    %45 = vector.shape_cast %44 : vector<1x384x128xbf16> to vector<384x128xbf16>
    %cst_56 = arith.constant dense<0.000000e+00> : vector<160x128xf32>
    %46 = tpu.matmul %43, %45, %cst_56 {dimension_numbers = #tpu.dot_dimension_numbers<[1], [0], [0], [1], [0, 0, 1, 1], [], []>} : vector<160x384xbf16>, vector<384x128xbf16>, vector<160x128xf32> -> vector<160x128xf32>
    %47 = arith.addf %41, %46 : vector<160x128xf32>
    %c2_57 = arith.constant 2 : index
    %c0_58 = arith.constant 0 : index
    %c0_59 = arith.constant 0 : index
    %48 = vector.load %arg10[%c2_57, %c0_58, %c0_59] : memref<12x16x384xbf16, #tpu.memory_space<vmem>>, vector<10x16x384xbf16>
    %49 = vector.shape_cast %48 : vector<10x16x384xbf16> to vector<160x384xbf16>
    %c2_60 = arith.constant 2 : index
    %c0_61 = arith.constant 0 : index
    %c0_62 = arith.constant 0 : index
    %50 = vector.load %arg4[%c2_60, %c0_61, %c0_62] : memref<3x384x128xbf16, #tpu.memory_space<vmem>>, vector<1x384x128xbf16>
    %51 = vector.shape_cast %50 : vector<1x384x128xbf16> to vector<384x128xbf16>
    %cst_63 = arith.constant dense<0.000000e+00> : vector<160x128xf32>
    %52 = tpu.matmul %49, %51, %cst_63 {dimension_numbers = #tpu.dot_dimension_numbers<[1], [0], [0], [1], [0, 0, 1, 1], [], []>} : vector<160x384xbf16>, vector<384x128xbf16>, vector<160x128xf32> -> vector<160x128xf32>
    %53 = arith.addf %47, %52 : vector<160x128xf32>
    %c0_64 = arith.constant 0 : index
    %c0_65 = arith.constant 0 : index
    %54 = vector.load %arg5[%c0_64, %c0_65] : memref<1x128xf32, #tpu.memory_space<vmem>>, vector<1x128xf32>
    %55 = vector.broadcast %54 : vector<1x128xf32> to vector<160x128xf32>
    %56 = arith.addf %53, %55 : vector<160x128xf32>
    %cst_66 = arith.constant 0.000000e+00 : f32
    %57 = vector.broadcast %cst_66 : f32 to vector<160x128xf32>
    %58 = arith.maximumf %56, %57 : vector<160x128xf32>
    %59 = vector.shape_cast %58 : vector<160x128xf32> to vector<10x16x128xf32>
    %60 = arith.truncf %59 : vector<10x16x128xf32> to vector<10x16x128xbf16>
    %c0_67 = arith.constant 0 : index
    %c1_68 = arith.constant 1 : index
    %c0_69 = arith.constant 0 : index
    %61 = vector.load %arg11[%c0_67, %c1_68, %c0_69] : memref<10x18x128xbf16, #tpu.memory_space<vmem>>, vector<10x16x128xbf16>
    tpu.vector_store %arg11[%c0_67, %c1_68, %c0_69], %60 {strides = array<i32>} : memref<10x18x128xbf16, #tpu.memory_space<vmem>>, vector<10x16x128xbf16>,
    %c0_i32_70 = arith.constant 0 : i32
    %62 = arith.cmpi eq, %arg1, %c0_i32_70 : i32
    %63 = arith.extui %62 : i1 to i32
    %c0_i32_71 = arith.constant 0 : i32
    %64 = arith.cmpi ne, %63, %c0_i32_71 : i32
    scf.if %64 {
      %cst_123 = arith.constant 0.000000e+00 : bf16
      %102 = vector.broadcast %cst_123 : bf16 to vector<1x18x128xbf16>
      %c0_124 = arith.constant 0 : index
      %c0_125 = arith.constant 0 : index
      %c0_126 = arith.constant 0 : index
      %103 = vector.load %arg11[%c0_124, %c0_125, %c0_126] : memref<10x18x128xbf16, #tpu.memory_space<vmem>>, vector<1x18x128xbf16>
      tpu.vector_store %arg11[%c0_124, %c0_125, %c0_126], %102 {strides = array<i32>} : memref<10x18x128xbf16, #tpu.memory_space<vmem>>, vector<1x18x128xbf16>,
    } else {
    }
    %c1_i32_72 = arith.constant 1 : i32
    %65 = arith.cmpi eq, %arg1, %c1_i32_72 : i32
    %66 = arith.extui %65 : i1 to i32
    %c0_i32_73 = arith.constant 0 : i32
    %67 = arith.cmpi ne, %66, %c0_i32_73 : i32
    scf.if %67 {
      %cst_123 = arith.constant 0.000000e+00 : bf16
      %102 = vector.broadcast %cst_123 : bf16 to vector<1x18x128xbf16>
      %c9 = arith.constant 9 : index
      %c0_124 = arith.constant 0 : index
      %c0_125 = arith.constant 0 : index
      %103 = vector.load %arg11[%c9, %c0_124, %c0_125] : memref<10x18x128xbf16, #tpu.memory_space<vmem>>, vector<1x18x128xbf16>
      tpu.vector_store %arg11[%c9, %c0_124, %c0_125], %102 {strides = array<i32>} : memref<10x18x128xbf16, #tpu.memory_space<vmem>>, vector<1x18x128xbf16>,
    } else {
    }
    %c0_74 = arith.constant 0 : index
    %c0_75 = arith.constant 0 : index
    %c0_76 = arith.constant 0 : index
    %68 = vector.load %arg11[%c0_74, %c0_75, %c0_76] : memref<10x18x128xbf16, #tpu.memory_space<vmem>>, vector<10x16x128xbf16>
    %c0_77 = arith.constant 0 : index
    %c0_78 = arith.constant 0 : index
    %c0_79 = arith.constant 0 : index
    %69 = vector.load %arg12[%c0_77, %c0_78, %c0_79] : memref<10x16x384xbf16, #tpu.memory_space<vmem>>, vector<10x16x128xbf16>
    tpu.vector_store %arg12[%c0_77, %c0_78, %c0_79], %68 {strides = array<i32>} : memref<10x16x384xbf16, #tpu.memory_space<vmem>>, vector<10x16x128xbf16>,
    %c0_80 = arith.constant 0 : index
    %c1_81 = arith.constant 1 : index
    %c0_82 = arith.constant 0 : index
    %70 = vector.load %arg11[%c0_80, %c1_81, %c0_82] : memref<10x18x128xbf16, #tpu.memory_space<vmem>>, vector<10x16x128xbf16>
    %c0_83 = arith.constant 0 : index
    %c0_84 = arith.constant 0 : index
    %c128_85 = arith.constant 128 : index
    %71 = vector.load %arg12[%c0_83, %c0_84, %c128_85] : memref<10x16x384xbf16, #tpu.memory_space<vmem>>, vector<10x16x128xbf16>
    tpu.vector_store %arg12[%c0_83, %c0_84, %c128_85], %70 {strides = array<i32>} : memref<10x16x384xbf16, #tpu.memory_space<vmem>>, vector<10x16x128xbf16>,
    %c0_86 = arith.constant 0 : index
    %c2_87 = arith.constant 2 : index
    %c0_88 = arith.constant 0 : index
    %72 = vector.load %arg11[%c0_86, %c2_87, %c0_88] : memref<10x18x128xbf16, #tpu.memory_space<vmem>>, vector<10x16x128xbf16>
    %c0_89 = arith.constant 0 : index
    %c0_90 = arith.constant 0 : index
    %c256_91 = arith.constant 256 : index
    %73 = vector.load %arg12[%c0_89, %c0_90, %c256_91] : memref<10x16x384xbf16, #tpu.memory_space<vmem>>, vector<10x16x128xbf16>
    tpu.vector_store %arg12[%c0_89, %c0_90, %c256_91], %72 {strides = array<i32>} : memref<10x16x384xbf16, #tpu.memory_space<vmem>>, vector<10x16x128xbf16>,
    %c0_92 = arith.constant 0 : index
    %c0_93 = arith.constant 0 : index
    %c0_94 = arith.constant 0 : index
    %74 = vector.load %arg12[%c0_92, %c0_93, %c0_94] : memref<10x16x384xbf16, #tpu.memory_space<vmem>>, vector<8x16x384xbf16>
    %75 = vector.shape_cast %74 : vector<8x16x384xbf16> to vector<128x384xbf16>
    %c0_95 = arith.constant 0 : index
    %c0_96 = arith.constant 0 : index
    %c0_97 = arith.constant 0 : index
    %76 = vector.load %arg6[%c0_95, %c0_96, %c0_97] : memref<3x384x128xbf16, #tpu.memory_space<vmem>>, vector<1x384x128xbf16>
    %77 = vector.shape_cast %76 : vector<1x384x128xbf16> to vector<384x128xbf16>
    %cst_98 = arith.constant dense<0.000000e+00> : vector<128x128xf32>
    %78 = tpu.matmul %75, %77, %cst_98 {dimension_numbers = #tpu.dot_dimension_numbers<[1], [0], [0], [1], [0, 0, 1, 1], [], []>} : vector<128x384xbf16>, vector<384x128xbf16>, vector<128x128xf32> -> vector<128x128xf32>
    %c1_99 = arith.constant 1 : index
    %c0_100 = arith.constant 0 : index
    %c0_101 = arith.constant 0 : index
    %79 = vector.load %arg12[%c1_99, %c0_100, %c0_101] : memref<10x16x384xbf16, #tpu.memory_space<vmem>>, vector<8x16x384xbf16>
    %80 = vector.shape_cast %79 : vector<8x16x384xbf16> to vector<128x384xbf16>
    %c1_102 = arith.constant 1 : index
    %c0_103 = arith.constant 0 : index
    %c0_104 = arith.constant 0 : index
    %81 = vector.load %arg6[%c1_102, %c0_103, %c0_104] : memref<3x384x128xbf16, #tpu.memory_space<vmem>>, vector<1x384x128xbf16>
    %82 = vector.shape_cast %81 : vector<1x384x128xbf16> to vector<384x128xbf16>
    %cst_105 = arith.constant dense<0.000000e+00> : vector<128x128xf32>
    %83 = tpu.matmul %80, %82, %cst_105 {dimension_numbers = #tpu.dot_dimension_numbers<[1], [0], [0], [1], [0, 0, 1, 1], [], []>} : vector<128x384xbf16>, vector<384x128xbf16>, vector<128x128xf32> -> vector<128x128xf32>
    %84 = arith.addf %78, %83 : vector<128x128xf32>
    %c2_106 = arith.constant 2 : index
    %c0_107 = arith.constant 0 : index
    %c0_108 = arith.constant 0 : index
    %85 = vector.load %arg12[%c2_106, %c0_107, %c0_108] : memref<10x16x384xbf16, #tpu.memory_space<vmem>>, vector<8x16x384xbf16>
    %86 = vector.shape_cast %85 : vector<8x16x384xbf16> to vector<128x384xbf16>
    %c2_109 = arith.constant 2 : index
    %c0_110 = arith.constant 0 : index
    %c0_111 = arith.constant 0 : index
    %87 = vector.load %arg6[%c2_109, %c0_110, %c0_111] : memref<3x384x128xbf16, #tpu.memory_space<vmem>>, vector<1x384x128xbf16>
    %88 = vector.shape_cast %87 : vector<1x384x128xbf16> to vector<384x128xbf16>
    %cst_112 = arith.constant dense<0.000000e+00> : vector<128x128xf32>
    %89 = tpu.matmul %86, %88, %cst_112 {dimension_numbers = #tpu.dot_dimension_numbers<[1], [0], [0], [1], [0, 0, 1, 1], [], []>} : vector<128x384xbf16>, vector<384x128xbf16>, vector<128x128xf32> -> vector<128x128xf32>
    %90 = arith.addf %84, %89 : vector<128x128xf32>
    %c0_113 = arith.constant 0 : index
    %c0_114 = arith.constant 0 : index
    %91 = vector.load %arg7[%c0_113, %c0_114] : memref<1x128xf32, #tpu.memory_space<vmem>>, vector<1x128xf32>
    %92 = vector.broadcast %91 : vector<1x128xf32> to vector<128x128xf32>
    %93 = arith.addf %90, %92 : vector<128x128xf32>
    %c0_115 = arith.constant 0 : index
    %c0_116 = arith.constant 0 : index
    %c0_117 = arith.constant 0 : index
    %c0_118 = arith.constant 0 : index
    %94 = vector.load %arg2[%c0_115, %c0_116, %c0_117, %c0_118] : memref<1x8x16x128xf32, #tpu.memory_space<vmem>>, vector<1x8x16x128xf32>
    %95 = vector.shape_cast %94 : vector<1x8x16x128xf32> to vector<8x16x128xf32>
    %96 = vector.shape_cast %95 : vector<8x16x128xf32> to vector<128x128xf32>
    %97 = arith.addf %93, %96 : vector<128x128xf32>
    %98 = vector.shape_cast %97 : vector<128x128xf32> to vector<8x16x128xf32>
    %c0_119 = arith.constant 0 : index
    %c0_120 = arith.constant 0 : index
    %c0_121 = arith.constant 0 : index
    %c0_122 = arith.constant 0 : index
    %99 = vector.load %arg8[%c0_119, %c0_120, %c0_121, %c0_122] : memref<1x8x16x128xf32, #tpu.memory_space<vmem>>, vector<1x8x16x128xf32>
    %100 = vector.shape_cast %99 : vector<1x8x16x128xf32> to vector<8x16x128xf32>
    %101 = vector.shape_cast %98 : vector<8x16x128xf32> to vector<1x8x16x128xf32>
    tpu.vector_store %arg8[%c0_119, %c0_120, %c0_121, %c0_122], %101 {strides = array<i32>} : memref<1x8x16x128xf32, #tpu.memory_space<vmem>>, vector<1x8x16x128xf32>,
    return
  }
  func.func @transform_0(%arg0: i32, %arg1: i32) -> (i32, i32, i32, i32) {
    %c0_i32 = arith.constant 0 : i32
    %c0_i32_0 = arith.constant 0 : i32
    %c0_i32_1 = arith.constant 0 : i32
    return %arg0, %arg1, %c0_i32, %c0_i32_0 : i32, i32, i32, i32
  }
  func.func @transform_2(%arg0: i32, %arg1: i32) -> (i32, i32, i32) {
    %c0_i32 = arith.constant 0 : i32
    %c0_i32_0 = arith.constant 0 : i32
    %c0_i32_1 = arith.constant 0 : i32
    %c0_i32_2 = arith.constant 0 : i32
    return %c0_i32, %c0_i32_0, %c0_i32_1 : i32, i32, i32
  }
  func.func @transform_3(%arg0: i32, %arg1: i32) -> (i32, i32) {
    %c0_i32 = arith.constant 0 : i32
    %c0_i32_0 = arith.constant 0 : i32
    %c0_i32_1 = arith.constant 0 : i32
    return %c0_i32, %c0_i32_0 : i32, i32
  }
  func.func @transform_4(%arg0: i32, %arg1: i32) -> (i32, i32, i32) {
    %c0_i32 = arith.constant 0 : i32
    %c0_i32_0 = arith.constant 0 : i32
    %c0_i32_1 = arith.constant 0 : i32
    %c0_i32_2 = arith.constant 0 : i32
    return %c0_i32, %c0_i32_0, %c0_i32_1 : i32, i32, i32
  }
  func.func @transform_5(%arg0: i32, %arg1: i32) -> (i32, i32) {
    %c0_i32 = arith.constant 0 : i32
    %c0_i32_0 = arith.constant 0 : i32
    %c0_i32_1 = arith.constant 0 : i32
    return %c0_i32, %c0_i32_0 : i32, i32
  }
  func.func @transform_6(%arg0: i32, %arg1: i32) -> (i32, i32, i32, i32) {
    %c0_i32 = arith.constant 0 : i32
    %c0_i32_0 = arith.constant 0 : i32
    %c0_i32_1 = arith.constant 0 : i32
    return %arg0, %arg1, %c0_i32, %c0_i32_0 : i32, i32, i32, i32
  }
}

</mosaic_0001>

<bundles_post_ra>
// kernel: residual_conv_unit.1
= control target key start
LH: loop header
LB: loop body
LE: loop exit
PB: predicated region body
PF: predicated region fallthrough
CT: control target
= control target key end

     0   :  { %s8764_s0 = inlined_call_operand.hbm [shape: f32[2,16,16,128], index: 0, kind: input, shape index: {}, may-alias: {0,1}]   ;;  %s8765_s1 = inlined_call_operand.hbm [shape: f32[2,16,16,128], index: 1, kind: input, shape index: {}, may-alias: {0,1}]   ;;  %s8766_s2 = inlined_call_operand.hbm [shape: bf16[3,384,128], index: 2, kind: input, shape index: {}]   ;;  %s8767_s3 = inlined_call_operand.hbm [shape: f32[1,128], index: 3, kind: input, shape index: {}]   ;;  %s8768_s4 = inlined_call_operand.hbm [shape: bf16[3,384,128], index: 4, kind: input, shape index: {}]   ;;  %s8769_s5 = inlined_call_operand.hbm [shape: f32[1,128], index: 5, kind: input, shape index: {}]   ;;  %s8770_s6 = inlined_call_operand.hbm [shape: f32[2,16,16,128], index: 6, kind: output, shape index: {}]  }
   0x1   :  { %8781 = sst [smem:[#allocation33_spill]] %s8765_s1 }
   0x2   :  { %8782 = sst [smem:[#allocation34_spill]] %s8766_s2 }
   0x3   :  { %8783 = sst [smem:[#allocation35_spill]] %s8767_s3 }
   0x4   :  { %8784 = sst [smem:[#allocation36_spill]] %s8768_s4 }
   0x5   :  { %8785 = sst [smem:[#allocation37_spill]] %s8770_s6 }
   0x6   :  { %11 = vsyncpa [#allocation9], 0 }
   0x7   :  { %13 = vsyncpa [#allocation9 + $0x1], 0 }
   0x8   :  { %14 = vsyncpa [#allocation12], 0 }
   0x9   :  { %15 = vsyncpa [#allocation15], 0 }
   0xa   :  { %16 = vsyncpa [#allocation10], 0 }
   0xb   :  { %18 = vsyncpa [#allocation10 + $0x1], 0  ;;  %s7410_s21 = smov 0   ;;  %s7412_s22 = smov 0  }
   0xc   :  { %s7414_s23 = smov 0   ;;  %s7416_s24 = smov 0  }
   0xd   :  { %s7418_s25 = smov 0   ;;  %s7420_s26 = smov 0  }
   0xe   :  { %s7422_s27 = smov 0   ;;  %s7424_s28 = smov 0  }
   0xf LB: > { %8786 = sst [smem:[#allocation30_spill]] %s7327_s21  ;;  %s5356_s29 = sadd.s32 4294967295, %s7355_s28   ;;  %s7355_s28 = sphi %s7424_s28, %s24_s28   ;;  %s7351_s27 = sphi %s7422_s27, %s8830_s27   ;;  %s7347_s26 = sphi %s7420_s26, %s8829_s26   ;;  %s7343_s25 = sphi %s7418_s25, %s8828_s25   ;;  %s7339_s24 = sphi %s7416_s24, %s8827_s24   ;;  %s7335_s23 = sphi %s7414_s23, %s8826_s23   ;;  %s7331_s22 = sphi %s7412_s22, %s8825_s22   ;;  %s7327_s21 = sphi %s7410_s21, %s8824_s21  }
  0x10   : > { %8787 = sst [smem:[#allocation31_spill]] %s7343_s25  ;;  %s5357_s30 = sadd.s32 4294967294, %s7355_s28  }
  0x11   : > { %p58_p0 = scmp.ne.s32.totalorder %s7331_s22, %s7327_s21  ;;  %p7454_p1 = scmp.eq.s32.totalorder %s5356_s29, 0 }
  0x12   : > { %p7458_p2 = scmp.eq.s32.totalorder %s5356_s29, 3  ;;  %p174_p3 = scmp.eq.s32.totalorder %s5357_s30, 3 }
  0x13   : > { %s8788_s7 = scalar_select %p7454_p1, 1, 0 }
  0x14   : > { %s8789_s8 = scalar_select %p7458_p2, 1, 0 }
  0x15   : > { %p7464_p4 = por %p7454_p1, %p58_p0  ;;  %p5358_p5 = scmp.ge.s32.totalorder %s7355_s28, 1 }
  0x16   : > { %p7469_p6 = por %p174_p3, %p58_p0  ;;  %p181_p7 = scmp.lt.s32.totalorder %s7355_s28, 5 }
  0x17   : > { %s8790_s9 = scalar_select %p7464_p4, 1, 0 }
  0x18   : > { %s8791_s10 = scalar_select %p7469_p6, 1, 0 }
  0x19   : > { %p7474_p8 = pnand %p5358_p5, %p181_p7  ;;  %s7357_s12 = smov [#allocation11]  }
  0x1a   : > { %8792 = sst [smem:[#allocation32_spill]] %s8791_s10  ;;  %s193_s13 = sshll.u32 %s7357_s12, 4  ;;  %s7478_s13 = int_to_ptr.vmem [resolvable:$true] %s193_s13 }
  0x1b   : > { %s8793_s11 = scalar_select %p7474_p8, 1, 0 }
  0x1c   : > { %p6679_p9 = pneg %p7474_p8  ;;  %s7358_s15 = smov [#allocation14]  }
  0x1d   : > { %s217_s16 = sshll.u32 %s7358_s15, 4  ;;  %s7359_s17 = smov [#allocation13]   ;;  %s7488_s16 = int_to_ptr.vmem [resolvable:$true] %s217_s16 }
  0x1e   : > { %p7484_p10 = pnand %p6679_p9, %p7454_p1  ;;  %s7490_s18 = sshll.u32 %s7359_s17, 4  ;;  %s208_s18 = int_to_ptr.vmem [resolvable:$true] %s7490_s18 }
  0x1f   : > { %s8795_s2 = sld [smem:[#allocation34_spill]] }
  0x20   : > { %p7500_p12 = pneg %p7484_p10 }
  0x25   : > { %s7046_s29 = scalar_lea.hbm %s8795_s2, 9216 }
  0x26   : > { %p7047_p11 = scmp.ne.s32.totalorder %s8795_s2, %s7046_s29  ;;  %p7053_p3 = scmp.lt.u32.totalorder %s7046_s29, %s8795_s2 }
  0x28   : > { %p7049_p13 = pnand %p7500_p12, %p7047_p11 }
  0x2a   : > { %p7050_p0 = pneg %p7049_p13 }
  0x2c   : > { %p7055_p5 = pnand %p7053_p3, %p7050_p0 }
  0x2e   : > { %7058 = shalt.err (!%p7055_p5)
}
  0x2f   : > { %s7059_s19 = scalar_lea.vmem %s7478_s13, 9216  ;;  %p7067_p1 = scmp.lt.s32.totalorder %s7478_s13, %s7478_s13 }
  0x30   : > { %p7060_p7 = scmp.ne.s32.totalorder %s7478_s13, %s7059_s19  ;;  %p7068_p4 = scmp.lt.s32.totalorder %s7059_s19, %s7059_s19 }
  0x32   : > { %p7062_p9 = pnand %p7060_p7, %p7500_p12  ;;  %p7069_p11 = por %p7068_p4, %p7067_p1 }
  0x34   : > { %p7063_p6 = pneg %p7062_p9 }
  0x36   : > { %p7070_p13 = pnand %p7069_p11, %p7063_p6 }
  0x38   : > { %7073 = shalt.err (!%p7070_p13)
}
  0x39   : > { %s7360_s20 = smov 64   ;;  %s7361_s29 = smov 4  }
  0x3a   : > { %6682 = dma.hbm_to_vmem [thread:$0]  (!%p7484_p10), %s8795_s2, 9216, %s7478_s13, [#allocation12], %s7360_s20, %s7360_s20, %s7361_s29  }
  0x3b   : > { %s8797_s4 = sld [smem:[#allocation36_spill]] }
  0x41   : > { %s7074_s21 = scalar_lea.hbm %s8797_s4, 9216 }
  0x42   : > { %p7075_p1 = scmp.ne.s32.totalorder %s8797_s4, %s7074_s21  ;;  %p7081_p0 = scmp.lt.u32.totalorder %s7074_s21, %s8797_s4 }
  0x44   : > { %p7077_p4 = pnand %p7075_p1, %p7500_p12 }
  0x46   : > { %p7078_p6 = pneg %p7077_p4 }
  0x48   : > { %p7083_p3 = pnand %p7081_p0, %p7078_p6 }
  0x4a   : > { %7086 = shalt.err (!%p7083_p3)
}
  0x4b   : > { %s7087_s13 = scalar_lea.vmem %s7488_s16, 9216  ;;  %p7095_p11 = scmp.lt.s32.totalorder %s7488_s16, %s7488_s16 }
  0x4c   : > { %p7088_p5 = scmp.ne.s32.totalorder %s7488_s16, %s7087_s13  ;;  %p7096_p13 = scmp.lt.s32.totalorder %s7087_s13, %s7087_s13 }
  0x4e   : > { %p7090_p7 = pnand %p7088_p5, %p7500_p12  ;;  %p7097_p1 = por %p7096_p13, %p7095_p11 }
  0x50   : > { %p7091_p9 = pneg %p7090_p7 }
  0x52   : > { %p7098_p4 = pnand %p7097_p1, %p7091_p9 }
  0x54   : > { %7101 = shalt.err (!%p7098_p4)
}
  0x55   : > { %6688 = dma.hbm_to_vmem [thread:$0]  (!%p7484_p10), %s8797_s4, 9216, %s7488_s16, [#allocation15], %s7360_s20, %s7360_s20, %s7361_s29  }
  0x56   : > { %s8798_s3 = sld [smem:[#allocation35_spill]] }
  0x5c   : > { %s7102_s30 = scalar_lea.hbm %s8798_s3, 16 }
  0x5d   : > { %p7103_p6 = scmp.ne.s32.totalorder %s8798_s3, %s7102_s30  ;;  %p7109_p5 = scmp.lt.u32.totalorder %s7102_s30, %s8798_s3 }
  0x5f   : > { %p7105_p0 = pnand %p7103_p6, %p7500_p12 }
  0x61   : > { %p7106_p3 = pneg %p7105_p0 }
  0x63   : > { %p7111_p7 = pnand %p7109_p5, %p7106_p3 }
  0x65   : > { %7114 = shalt.err (!%p7111_p7)
}
  0x66   : > { %s7115_s13 = scalar_lea.vmem %s208_s18, 16  ;;  %s7122_s16 = scalar_lea.vmem %s208_s18, 32 }
  0x67   : > { %p7116_p9 = scmp.ne.s32.totalorder %s208_s18, %s7115_s13  ;;  %p7123_p1 = scmp.lt.s32.totalorder %s208_s18, %s208_s18 }
  0x68   : > { %p7124_p4 = scmp.lt.s32.totalorder %s7122_s16, %s7115_s13 }
  0x69   : > { %p7118_p11 = pnand %p7116_p9, %p7500_p12 }
  0x6a   : > { %p7125_p8 = por %p7124_p4, %p7123_p1 }
  0x6b   : > { %p7119_p13 = pneg %p7118_p11 }
  0x6d   : > { %p7126_p2 = pnand %p7125_p8, %p7119_p13 }
  0x6f   : > { %7129 = shalt.err (!%p7126_p2)
}
  0x70   : > { %6685 = dma.hbm_to_vmem [thread:$0]  (!%p7484_p10), %s8798_s3, 16, %s208_s18, [#allocation12]  }
  0x71   : > { %s7362_s1 = smov [#allocation16]   ;;  %s7130_s30 = scalar_lea.hbm %s8769_s5, 16 }
  0x72   : > { %s231_s6 = sshll.u32 %s7362_s1, 4  ;;  %p7131_p6 = scmp.ne.s32.totalorder %s8769_s5, %s7130_s30  ;;  %s232_s6 = int_to_ptr.vmem [resolvable:$true] %s231_s6 }
  0x73   : > { %p7137_p0 = scmp.lt.u32.totalorder %s7130_s30, %s8769_s5 }
  0x74   : > { %p7133_p2 = pnand %p7131_p6, %p7500_p12 }
  0x76   : > { %p7134_p8 = pneg %p7133_p2 }
  0x78   : > { %p7139_p3 = pnand %p7137_p0, %p7134_p8 }
  0x7a   : > { %7142 = shalt.err (!%p7139_p3)
}
  0x7b   : > { %s7143_s18 = scalar_lea.vmem %s232_s6, 16  ;;  %s7150_s13 = scalar_lea.vmem %s232_s6, 32 }
  0x7c   : > { %p7144_p5 = scmp.ne.s32.totalorder %s232_s6, %s7143_s18  ;;  %p7151_p11 = scmp.lt.s32.totalorder %s232_s6, %s232_s6 }
  0x7d   : > { %p7152_p13 = scmp.lt.s32.totalorder %s7150_s13, %s7143_s18 }
  0x7e   : > { %p7146_p7 = pnand %p7144_p5, %p7500_p12 }
  0x7f   : > { %p7153_p1 = por %p7152_p13, %p7151_p11 }
  0x80   : > { %p7147_p9 = pneg %p7146_p7 }
  0x82   : > { %p7154_p4 = pnand %p7153_p1, %p7147_p9 }
  0x84   : > { %7157 = shalt.err (!%p7154_p4)
}
  0x85   : > { %6691 = dma.hbm_to_vmem [thread:$0]  (!%p7484_p10), %s8769_s5, 16, %s232_s6, [#allocation15]  }
  0x86   : > { %s33_s10 = sadd.s32 1, %s7347_s26  ;;  %s36_s29 = sadd.s32 1, %s7351_s27 }
  0x87   : > { %p34_p12 = scmp.ge.s32.totalorder %s33_s10, 2  ;;  %s45_s14 = sadd.s32 1, %s7335_s23 }
  0x88   : > { %p52_p6 = scmp.ne.s32.totalorder %s7335_s23, %s7331_s22  ;;  %p53_p2 = scmp.eq.s32.totalorder %s7355_s28, 0 }
  0x89   : > { %s8832_s10 = smov (%p34_p12, %s33_s10), 0  ;;  %s8834_s29 = smov (!%p34_p12, %s36_s29), %s7351_s27 }
  0x8a   : > { %s41_s1 = ssub.s32 %s7347_s26, %s8832_s10  ;;  %p7592_p8 = por %p53_p2, %p52_p6 }
  0x8b   : > { %p38_p10 = scmp.ge.s32.totalorder %s8834_s29, 2  ;;  %p8800_p0 = scmp.ne.s32.totalorder %s8789_s8, 0 }
  0x8c   : > { %p6704_p5 = scmp.lt.s32.totalorder %s7355_s28, 4  ;;  %s242_s25 = sand.u32 1, %s7335_s23  }
  0x8d   : > { %p7598_p3 = por %p8800_p0, %p52_p6  ;;  %s8836_s29 = smov (%p38_p10, %s8834_s29), 0 }
  0x8e   : > { %s5364_s30 = sshll.u32 %s242_s25, 7  ;;  %s40_s12 = ssub.s32 %s7351_s27, %s8836_s29 }
  0x8f   : > { %s8801_s6 = scalar_select %p7598_p3, 1, 0 }
  0x90   : > { %s42_s15 = sor.u32 %s41_s1, %s40_s12  ;;  %s5702_s17 = sshll.u32 %s7347_s26, 4 }
  0x91   : > { %p43_p7 = scmp.eq.s32.totalorder %s42_s15, 0  ;;  %s5367_s19 = sshll.u32 %s7351_s27, 5 }
  0x92   : > { %s253_s18 = sadd.s32 %s5702_s17, %s5367_s19  ;;  %s246_s13 = scalar_lea.vmem [#allocation8], %s5364_s30 }
  0x93   : > { %s256_s8 = sshll.u32 %s246_s13, 4  ;;  %s5368_s20 = sshll.u32 %s253_s18, 7  ;;  %s7613_s8 = int_to_ptr.vmem [resolvable:$true] %s256_s8 }
  0x94   : > { %s7611_s16 = scalar_select %p43_p7, %s7335_s23, %s45_s14  }
  0x95   : > { %s7618_s4 = scalar_lea.hbm %s8764_s0, %s5368_s20  ;;  %p7624_p9 = pnand %p6704_p5, %p7592_p8 }
  0x96   : > { %s7628_s14 = scalar_lea.sflag [#allocation9], %s242_s25  ;;  %s7158_s30 = scalar_lea.hbm %s7618_s4, 2048 }
  0x97   : > { %p7159_p11 = scmp.ne.s32.totalorder %s7618_s4, %s7158_s30  ;;  %p7160_p13 = pneg %p7624_p9 }
  0x98   : > { %s7163_s21 = scalar_lea.hbm %s8764_s0, 8192  ;;  %p7164_p12 = scmp.lt.u32.totalorder %s7618_s4, %s8764_s0 }
  0x99   : > { %p7161_p1 = pnand %p7160_p13, %p7159_p11  ;;  %p7165_p6 = scmp.lt.u32.totalorder %s7163_s21, %s7158_s30 }
  0x9a   : > { %p7167_p8 = scmp.lt.u32.totalorder %s7158_s30, %s7618_s4 }
  0x9b   : > { %p7162_p4 = pneg %p7161_p1  ;;  %p7166_p2 = por %p7165_p6, %p7164_p12 }
  0x9d   : > { %p7168_p10 = por %p7167_p8, %p7166_p2 }
  0x9f   : > { %p7169_p0 = pnand %p7168_p10, %p7162_p4 }
  0xa1   : > { %7172 = shalt.err (!%p7169_p0)
}
  0xa2   : > { %s7173_s25 = scalar_lea.vmem %s7613_s8, 2048  ;;  %s7363_s17 = smov [#allocation8]  }
  0xa3   : > { %p7174_p5 = scmp.ne.s32.totalorder %s7613_s8, %s7173_s25  ;;  %s7178_s19 = sshll.u32 %s7363_s17, 4  ;;  %s7179_s19 = int_to_ptr.vmem [resolvable:$false] %s7178_s19 }
  0xa4   : > { %s7180_s18 = scalar_lea.vmem %s7179_s19, 4096  ;;  %p7181_p1 = scmp.lt.s32.totalorder %s7613_s8, %s7179_s19 }
  0xa5   : > { %p7176_p7 = pnand %p7174_p5, %p7160_p13  ;;  %p7182_p12 = scmp.lt.s32.totalorder %s7180_s18, %s7173_s25 }
  0xa7   : > { %p7177_p11 = pneg %p7176_p7  ;;  %p7183_p6 = por %p7182_p12, %p7181_p1 }
  0xa9   : > { %p7184_p2 = pnand %p7183_p6, %p7177_p11 }
  0xab   : > { %7187 = shalt.err (!%p7184_p2)
}
  0xac   : > { %s7364_s13 = smov 128   ;;  %s7365_s20 = smov 8  }
  0xad   : > { %6695 = dma.hbm_to_vmem [thread:$0]  (!%p7624_p9), %s7618_s4, 2048, %s7613_s8, %s7628_s14, %s7364_s13, %s7364_s13, %s7365_s20  }
  0xae   : > { %p8803_p13 = scmp.ne.s32.totalorder %s8793_s11, 0 }
  0xaf   : > { %s7659_s30 = sand.u32 (!%p8803_p13), 1, %s7331_s22   ;;  %p8804_p4 = scmp.ne.s32.totalorder (!%p8803_p13), %s8790_s9, 0 }
  0xb0   : > { %268 = sbr.rel (%p8803_p13) target bundleno = 1259 (0x4eb), region = 40  ;;  %s5370_s2 = sshll.u32 (!%p8803_p13), %s7659_s30, 7 }
  0xb1   : > { %s271_s3 = scalar_lea.sflag (!%p8803_p13), [#allocation9], %s7659_s30  ;;  %s7665_s21 = scalar_lea.vmem (!%p8803_p13), [#allocation8], %s5370_s2 }
  0xb7   : > { %7306 = dma.done.wait (%p8804_p4), %s271_s3, 2048  }
  0xb8   : > { %7308 = vsyncadd (%p8804_p4), %s271_s3, 4294965248  ;;  %p8805_p9 = scmp.ne.s32.totalorder %s8788_s7, 0 }
  0xba   : > { %7310 = dma.done.wait (%p8805_p9), [#allocation12], 9232  }
  0xbb   : > { %7312 = vsyncadd (%p8805_p9), [#allocation12], 4294958064 }
  0xbc   : > { %7314 = dma.done.wait (%p8805_p9), [#allocation15], 9232  }
  0xbd   : > { %7316 = vsyncadd (%p8805_p9), [#allocation15], 4294958064  ;;  %s8806_s4 = sld [smem:[#allocation31_spill]]  ;;  %s5376_s11 = sshll.u32 %s7339_s24, 3  ;;  %vm365_vm0 = vcmask 1040384  }
  0xbe   : > { %vm366_vm1 = vsmask.f32 256  ;;  %s5378_s9 = sadd.s32 4294967294, %s5376_s11  ;;  %p6709_p10 = scmp.gt.s32.totalorder %s7339_s24, 0  ;;  %vm404_vm3 = vsmask.f32 7938 }
  0xbf   : > { %s5379_s8 = sshll.u32 %s5378_s9, 4  ;;  %vm7688_vm2 = vmand %vm365_vm0, %vm366_vm1  ;;  %s7366_s12 = smov [#allocation6]   ;;  %v374_v1 = vld [vmem:[#allocation2 + $0x18] sm:$0x1]  ;;  %v377_v2 = vld [vmem:[#allocation2 + $0x24] sm:$0x1] }
  0xc0   : > { %s7694_s15 = sshll.u32 %s7366_s12, 4  ;;  %v380_v3 = vld [vmem:[#allocation2 + $0x30] sm:$0x1]  ;;  %v375_v4 = vsel %vm7688_vm2, 0, %v374_v1  ;;  %v378_v5 = vsel %vm7688_vm2, 0, %v377_v2  ;;  %s5703_s25 = sshll.u32 %s7339_s24, 7  ;;  %vm7707_vm4 = vmand %vm365_vm0, %vm404_vm3  ;;  %s7732_s15 = int_to_ptr.vmem [resolvable:$true] %s7694_s15 }
  0xc1   : > { %v381_v6 = vsel %vm7688_vm2, 0, %v380_v3  ;;  %v383_v7 = vld [vmem:[#allocation2 + $0x3c] sm:$0x1]  ;;  %376 = vst [vmem:[#allocation2 + $0x18] sm:$0x1] %v375_v4  ;;  %s8811_s18 = sld [smem:[#allocation33_spill]] }
  0xc2   : > { %379 = vst [vmem:[#allocation2 + $0x24] sm:$0x1] %v378_v5  ;;  %382 = vst [vmem:[#allocation2 + $0x30] sm:$0x1] %v381_v6  ;;  %v384_v8 = vsel %vm7688_vm2, 0, %v383_v7 }
  0xc3   : > { %s5380_s1 = sshll.u32 %s8806_s4, 8  ;;  %v386_v9 = vld [vmem:[#allocation2 + $0x48] sm:$0x1]  ;;  %v389_v10 = vld [vmem:[#allocation2 + $0x54] sm:$0x1] }
  0xc4   : > { %s7684_s14 = sadd.s32 %s5380_s1, %s5379_s8  ;;  %385 = vst [vmem:[#allocation2 + $0x3c] sm:$0x1] %v384_v8  ;;  %v387_v12 = vsel %vm7688_vm2, 0, %v386_v9  ;;  %v390_v13 = vsel %vm7688_vm2, 0, %v389_v10  ;;  %v392_v14 = vld [vmem:[#allocation2 + $0x60] sm:$0x1]  ;;  %s7742_s20 = sadd.s32 %s5703_s25, %s5380_s1 }
  0xc5   : > { %s5381_s7 = sshll.u32 %s7684_s14, 4  ;;  %v395_v15 = vld [vmem:[#allocation2 + $0x6c] sm:$0x1]  ;;  %388 = vst [vmem:[#allocation2 + $0x48] sm:$0x1] %v387_v12  ;;  %v393_v16 = vsel %vm7688_vm2, 0, %v392_v14 }
  0xc6   : > { %391 = vst [vmem:[#allocation2 + $0x54] sm:$0x1] %v390_v13  ;;  %v396_v17 = vsel %vm7688_vm2, 0, %v395_v15  ;;  %v412_v18 = vld [vmem:[#allocation2 + $0x20] sm:$0x1] }
  0xc7   : > { %v415_v19 = vld [vmem:[#allocation2 + $0x2c] sm:$0x1]  ;;  %394 = vst [vmem:[#allocation2 + $0x60] sm:$0x1] %v393_v16  ;;  %397 = vst [vmem:[#allocation2 + $0x6c] sm:$0x1] %v396_v17  ;;  %s7729_s13 = scalar_lea.hbm %s8811_s18, %s5381_s7 }
  0xc8   : > { %v413_v20 = vsel %vm7707_vm4, 0, %v412_v18  ;;  %v416_v21 = vsel %vm7707_vm4, 0, %v415_v19  ;;  %v418_v22 = vld [vmem:[#allocation2 + $0x38] sm:$0x1]  ;;  %v421_v23 = vld [vmem:[#allocation2 + $0x44] sm:$0x1]  ;;  %p7193_p1 = scmp.lt.u32.totalorder %s7729_s13, %s8811_s18 }
  0xc9   : > { %414 = vst [vmem:[#allocation2 + $0x20] sm:$0x1] %v413_v20  ;;  %417 = vst [vmem:[#allocation2 + $0x2c] sm:$0x1] %v416_v21  ;;  %v419_v24 = vsel %vm7707_vm4, 0, %v418_v22  ;;  %v422_v25 = vsel %vm7707_vm4, 0, %v421_v23 }
  0xca   : > { %v424_v26 = vld [vmem:[#allocation2 + $0x50] sm:$0x1]  ;;  %v427_v27 = vld [vmem:[#allocation2 + $0x5c] sm:$0x1]  ;;  %420 = vst [vmem:[#allocation2 + $0x38] sm:$0x1] %v419_v24 }
  0xcb   : > { %423 = vst [vmem:[#allocation2 + $0x44] sm:$0x1] %v422_v25  ;;  %v425_v28 = vsel %vm7707_vm4, 0, %v424_v26  ;;  %v428_v29 = vsel %vm7707_vm4, 0, %v427_v27  ;;  %v430_v30 = vld [vmem:[#allocation2 + $0x68] sm:$0x1] }
  0xcc   : > { %v433_v31 = vld [vmem:[#allocation2 + $0x74] sm:$0x1]  ;;  %426 = vst [vmem:[#allocation2 + $0x50] sm:$0x1] %v425_v28  ;;  %429 = vst [vmem:[#allocation2 + $0x5c] sm:$0x1] %v428_v29 }
  0xcd   : > { %v431_v32 = vsel %vm7707_vm4, 0, %v430_v30  ;;  %v434_v33 = vsel %vm7707_vm4, 0, %v433_v31  ;;  %s7188_s3 = scalar_lea.hbm %s7729_s13, 512  ;;  %s7192_s9 = scalar_lea.hbm %s8811_s18, 8192 }
  0xce   : > { %p7189_p5 = scmp.ne.s32.totalorder %s7729_s13, %s7188_s3  ;;  %p7194_p12 = scmp.lt.u32.totalorder %s7192_s9, %s7188_s3 }
  0xcf   : > { %p7196_p2 = scmp.lt.u32.totalorder %s7188_s3, %s7729_s13 }
  0xd0   : > { %p7190_p7 = pnand %p7189_p5, %p6709_p10  ;;  %p7195_p6 = por %p7194_p12, %p7193_p1 }
  0xd2   : > { %p7191_p11 = pneg %p7190_p7  ;;  %p7197_p13 = por %p7196_p2, %p7195_p6 }
  0xd4   : > { %p7198_p4 = pnand %p7197_p13, %p7191_p11 }
  0xd6   : > { %7201 = shalt.err (!%p7198_p4)  }
  0xd7   : > { %s7202_s12 = scalar_lea.vmem %s7732_s15, 512  ;;  %s7208_s25 = scalar_lea.vmem %s7732_s15, 1024 }
  0xd8   : > { %p7203_p9 = scmp.ne.s32.totalorder %s7732_s15, %s7202_s12  ;;  %p7209_p0 = scmp.lt.s32.totalorder %s7732_s15, %s7732_s15 }
  0xd9   : > { %p7210_p1 = scmp.lt.s32.totalorder %s7208_s25, %s7202_s12 }
  0xda   : > { %p7204_p5 = pnand %p7203_p9, %p6709_p10 }
  0xdb   : > { %p7211_p12 = por %p7210_p1, %p7209_p0 }
  0xdc   : > { %p7205_p7 = pneg %p7204_p5 }
  0xde   : > { %p7212_p6 = pnand %p7211_p12, %p7205_p7 }
  0xe0   : > { %7215 = shalt.err (!%p7212_p6)  }
  0xe1   : > { %6674 = dma.hbm_to_vmem [thread:$0]  (%p6709_p10), %s7729_s13, 512, %s7732_s15, [#allocation7]  ;;  %v368_v34 = vld [vmem:[#allocation2] sm:$0x1]  ;;  %432 = vst [vmem:[#allocation2 + $0x68] sm:$0x1] %v431_v32 }
  0xe2   : > { %435 = vst [vmem:[#allocation2 + $0x74] sm:$0x1] %v434_v33  ;;  %p6710_p11 = scmp.lt.s32.totalorder %s7339_s24, 1  ;;  %s5386_s17 = sshll.u32 %s7742_s20, 4  ;;  %v369_v35 = vsel %vm7688_vm2, 0, %v368_v34  ;;  %v7786_v37 = vld [vmem:[%s7665_s21] sm:$0xff] }
  0xe3   : > { %v371_v36 = vld [vmem:[#allocation2 + $0xc] sm:$0x1]  ;;  %s5272_s4 = scalar_lea.hbm %s8811_s18, %s5386_s17  ;;  %370 = vst [vmem:[#allocation2] sm:$0x1] %v369_v35  ;;  %v398_v39 = vld [vmem:[#allocation2 + $0x78] sm:$0x1] }
  0xe4   : > { %v372_v38 = vsel %vm7688_vm2, 0, %v371_v36  ;;  %v401_v40 = vld [vmem:[#allocation2 + $0x84] sm:$0x1]  ;;  %s7793_s13 = scalar_lea.hbm %s5272_s4, 2048  ;;  %s7367_s20 = smov [#allocation6 + $0x20]   ;;  %v399_v41 = vsel %vm7688_vm2, 0, %v398_v39 }
  0xe5   : > { %s361_s11 = sshll.u32 %s7367_s20, 4  ;;  %373 = vst [vmem:[#allocation2 + $0xc] sm:$0x1] %v372_v38  ;;  %v402_v42 = vsel %vm7688_vm2, 0, %v401_v40  ;;  %v406_v43 = vld [vmem:[#allocation2 + $0x8] sm:$0x1]  ;;  %p7221_p13 = scmp.lt.u32.totalorder %s7793_s13, %s8811_s18  ;;  %s362_s11 = int_to_ptr.vmem [resolvable:$true] %s361_s11 }
  0xe6   : > { %400 = vst [vmem:[#allocation2 + $0x78] sm:$0x1] %v399_v41  ;;  %403 = vst [vmem:[#allocation2 + $0x84] sm:$0x1] %v402_v42  ;;  %v407_v44 = vsel %vm7707_vm4, 0, %v406_v43  ;;  %s7244_s8 = scalar_lea.hbm %s5272_s4, 2560 }
  0xe7   : > { %v409_v45 = vld [vmem:[#allocation2 + $0x14] sm:$0x1]  ;;  %v436_v46 = vld [vmem:[#allocation2 + $0x80] sm:$0x1]  ;;  %p7217_p10 = scmp.ne.s32.totalorder %s7793_s13, %s7244_s8  ;;  %p7222_p4 = scmp.lt.u32.totalorder %s7192_s9, %s7244_s8 }
  0xe8   : > { %p7224_p5 = scmp.lt.u32.totalorder %s7244_s8, %s7793_s13 }
  0xe9   : > { %p7218_p0 = pnand %p7217_p10, %p6710_p11  ;;  %p7223_p9 = por %p7222_p4, %p7221_p13 }
  0xeb   : > { %p7219_p2 = pneg %p7218_p0  ;;  %p7225_p7 = por %p7224_p5, %p7223_p9 }
  0xed   : > { %p7226_p1 = pnand %p7225_p7, %p7219_p2 }
  0xef   : > { %7229 = shalt.err (!%p7226_p1)  }
  0xf0   : > { %s7230_s17 = scalar_lea.vmem %s362_s11, 512  ;;  %p7237_p0 = scmp.lt.s32.totalorder %s362_s11, %s7732_s15 }
  0xf1   : > { %p7231_p12 = scmp.ne.s32.totalorder %s362_s11, %s7230_s17  ;;  %p7238_p8 = scmp.lt.s32.totalorder %s7208_s25, %s7230_s17 }
  0xf3   : > { %p7232_p6 = pnand %p7231_p12, %p6710_p11  ;;  %p7239_p3 = por %p7238_p8, %p7237_p0 }
  0xf5   : > { %p7233_p10 = pneg %p7232_p6 }
  0xf7   : > { %p7240_p4 = pnand %p7239_p3, %p7233_p10 }
  0xf9   : > { %7243 = shalt.err (!%p7240_p4)  }
  0xfa   : > { %6676 = dma.hbm_to_vmem [thread:$0]  (%p6710_p11), %s7793_s13, 512, %s362_s11, [#allocation7 + $0x1]  ;;  %408 = vst [vmem:[#allocation2 + $0x8] sm:$0x1] %v407_v44  ;;  %v410_v47 = vsel %vm7707_vm4, 0, %v409_v45  ;;  %v437_v48 = vsel %vm7707_vm4, 0, %v436_v46 }
  0xfb   : > { %v439_v49 = vld [vmem:[#allocation2 + $0x8c] sm:$0x1]  ;;  %411 = vst [vmem:[#allocation2 + $0x14] sm:$0x1] %v410_v47  ;;  %438 = vst [vmem:[#allocation2 + $0x80] sm:$0x1] %v437_v48 }
  0xfc   : > { %v440_v50 = vsel %vm7707_vm4, 0, %v439_v49  ;;  %v442_v51 = vld [vmem:[#allocation4] sm:$0x1]  ;;  %v445_v52 = vld [vmem:[#allocation4 + $0xc] sm:$0x1]  ;;  %v518_v53 = vmax.f32 %v7786_v37, 0.0 }
  0xfd   : > { %441 = vst [vmem:[#allocation2 + $0x8c] sm:$0x1] %v440_v50  ;;  %v443_v54 = vsel %vm7688_vm2, 0, %v442_v51  ;;  %v446_v55 = vsel %vm7688_vm2, 0, %v445_v52  ;;  %v448_v56 = vld [vmem:[#allocation4 + $0x18] sm:$0x1] }
  0xfe   : > { %v451_v57 = vld [vmem:[#allocation4 + $0x24] sm:$0x1]  ;;  %444 = vst [vmem:[#allocation4] sm:$0x1] %v443_v54  ;;  %447 = vst [vmem:[#allocation4 + $0xc] sm:$0x1] %v446_v55  ;;  %v5704_v16 = vpack.c.bf16 %v518_v53, %v518_v53 }
  0xff   : > { %v449_v58 = vsel %vm7688_vm2, 0, %v448_v56  ;;  %v452_v59 = vsel %vm7688_vm2, 0, %v451_v57  ;;  %v454_v60 = vld [vmem:[#allocation4 + $0x30] sm:$0x1]  ;;  %v457_v61 = vld [vmem:[#allocation4 + $0x3c] sm:$0x1] }
 0x100   : > { %vm745_vm5 = vcmask 1043456   ;;  %450 = vst [vmem:[#allocation4 + $0x18] sm:$0x1] %v449_v58  ;;  %453 = vst [vmem:[#allocation4 + $0x24] sm:$0x1] %v452_v59  ;;  %v455_v62 = vsel %vm7688_vm2, 0, %v454_v60 }
 0x101   : > { %v458_v63 = vsel %vm7688_vm2, 0, %v457_v61  ;;  %v460_v1 = vld [vmem:[#allocation4 + $0x48] sm:$0x1]  ;;  %v463_v2 = vld [vmem:[#allocation4 + $0x54] sm:$0x1]  ;;  %v503_v17 = vld [vmem:[%s7665_s21 + $0x8] sm:$0xff] }
 0x102   : > { %456 = vst [vmem:[#allocation4 + $0x30] sm:$0x1] %v455_v62  ;;  %459 = vst [vmem:[#allocation4 + $0x3c] sm:$0x1] %v458_v63  ;;  %v461_v3 = vsel %vm7688_vm2, 0, %v460_v1  ;;  %v464_v4 = vsel %vm7688_vm2, 0, %v463_v2 }
 0x103   : > { %v466_v5 = vld [vmem:[#allocation4 + $0x60] sm:$0x1]  ;;  %v469_v6 = vld [vmem:[#allocation4 + $0x6c] sm:$0x1]  ;;  %462 = vst [vmem:[#allocation4 + $0x48] sm:$0x1] %v461_v3  ;;  %vm7874_vm7 = vmand %vm745_vm5, %vm404_vm3 }
 0x104   : > { %465 = vst [vmem:[#allocation4 + $0x54] sm:$0x1] %v464_v4  ;;  %v467_v7 = vsel %vm7688_vm2, 0, %v466_v5  ;;  %v470_v8 = vsel %vm7688_vm2, 0, %v469_v6  ;;  %v472_v9 = vld [vmem:[#allocation4 + $0x8] sm:$0x1] }
 0x105   : > { %v475_v10 = vld [vmem:[#allocation4 + $0x14] sm:$0x1]  ;;  %468 = vst [vmem:[#allocation4 + $0x60] sm:$0x1] %v467_v7  ;;  %471 = vst [vmem:[#allocation4 + $0x6c] sm:$0x1] %v470_v8 }
 0x106   : > { %v473_v12 = vsel %vm7707_vm4, 0, %v472_v9  ;;  %v476_v13 = vsel %vm7707_vm4, 0, %v475_v10  ;;  %v478_v14 = vld [vmem:[#allocation4 + $0x20] sm:$0x1]  ;;  %v481_v15 = vld [vmem:[#allocation4 + $0x2c] sm:$0x1] }
 0x107   : > { %474 = vst [vmem:[#allocation4 + $0x8] sm:$0x1] %v473_v12  ;;  %477 = vst [vmem:[#allocation4 + $0x14] sm:$0x1] %v476_v13  ;;  %v479_v18 = vsel %vm7707_vm4, 0, %v478_v14  ;;  %v482_v19 = vsel %vm7707_vm4, 0, %v481_v15 }
 0x108   : > { %v484_v20 = vld [vmem:[#allocation4 + $0x38] sm:$0x1]  ;;  %v487_v21 = vld [vmem:[#allocation4 + $0x44] sm:$0x1]  ;;  %480 = vst [vmem:[#allocation4 + $0x20] sm:$0x1] %v479_v18 }
 0x109   : > { %483 = vst [vmem:[#allocation4 + $0x2c] sm:$0x1] %v482_v19  ;;  %v485_v22 = vsel %vm7707_vm4, 0, %v484_v20  ;;  %v488_v23 = vsel %vm7707_vm4, 0, %v487_v21  ;;  %v490_v24 = vld [vmem:[#allocation4 + $0x50] sm:$0x1] }
 0x10a   : > { %v493_v25 = vld [vmem:[#allocation4 + $0x5c] sm:$0x1]  ;;  %486 = vst [vmem:[#allocation4 + $0x38] sm:$0x1] %v485_v22  ;;  %489 = vst [vmem:[#allocation4 + $0x44] sm:$0x1] %v488_v23 }
 0x10b   : > { %v491_v26 = vsel %vm7707_vm4, 0, %v490_v24  ;;  %v494_v27 = vsel %vm7707_vm4, 0, %v493_v25  ;;  %v496_v28 = vld [vmem:[#allocation4 + $0x68] sm:$0x1]  ;;  %v499_v29 = vld [vmem:[#allocation4 + $0x74] sm:$0x1] }
 0x10c   : > { %492 = vst [vmem:[#allocation4 + $0x50] sm:$0x1] %v491_v26  ;;  %495 = vst [vmem:[#allocation4 + $0x5c] sm:$0x1] %v494_v27  ;;  %v497_v30 = vsel %vm7707_vm4, 0, %v496_v28  ;;  %v500_v31 = vsel %vm7707_vm4, 0, %v499_v29 }
 0x10d   : > { %v585_v32 = vshrl.u32 %v5704_v16, 16  ;;  %v588_v33 = vshll.u32 %v5704_v16, 16  ;;  %498 = vst [vmem:[#allocation4 + $0x68] sm:$0x1] %v497_v30  ;;  %501 = vst [vmem:[#allocation4 + $0x74] sm:$0x1] %v500_v31 }
 0x10e   : > { %v519_v34 = vmax.f32 %v503_v17, 0.0  ;;  %v504_v35 = vld [vmem:[%s7665_s21 + $0x10] sm:$0xff]  ;;  %vm582_vm6 = vsmask.f32 4368  ;;  %v505_v38 = vld [vmem:[%s7665_s21 + $0x18] sm:$0xff]  ;;  %v506_v39 = vld [vmem:[%s7665_s21 + $0x20] sm:$0xff] }
 0x10f   : > { %v587_v36 = vrot.slane %v585_v32, 7  ;;  %v520_v37 = vmax.f32 %v504_v35, 0.0  ;;  %v747_v11 = vld [vmem:[#allocation2 + $0x18] sm:$0xf]  ;;  %v521_v42 = vmax.f32 %v505_v38, 0.0  ;;  %v522_v43 = vmax.f32 %v506_v39, 0.0  ;;  %vm7884_vm8 = vmor %vm366_vm1, %vm582_vm6 }
 0x110   : > { %v5705_v41 = vpack.c.bf16 %v519_v34, %v519_v34  ;;  %v507_v44 = vld [vmem:[%s7665_s21 + $0x28] sm:$0xff]  ;;  %v508_v61 = vld [vmem:[%s7665_s21 + $0x30] sm:$0xff]  ;;  %v751_v63 = vld [vmem:[#allocation2 + $0x20] sm:$0x1]  ;;  %s7945_s15 = scalar_lea.vmem [#allocation17], %s5370_s2  ;;  %p8816_p3 = scmp.le.s32.totalorder %s7339_s24, 0 }
 0x111   : > { %v590_v45 = vor.u32 %v588_v33, %v587_v36  ;;  %v591_v46 = vrot.slane %v587_v36, 4  ;;  %v5706_v47 = vpack.c.bf16 %v520_v37, %v520_v37  ;;  %v523_v48 = vmax.f32 %v507_v44, 0.0  ;;  %v754_v7 = vld [vmem:[#allocation2 + $0x24] sm:$0xf]  ;;  %v758_v13 = vld [vmem:[#allocation2 + $0x2c] sm:$0x1] }
 0x112   : > { %v593_v49 = vshrl.u32 %v5705_v41, 16  ;;  %v596_v50 = vshll.u32 %v5705_v41, 16  ;;  %v5707_v51 = vpack.c.bf16 %v521_v42, %v521_v42  ;;  %v5708_v52 = vpack.c.bf16 %v522_v43, %v522_v43  ;;  %v761_v20 = vld [vmem:[#allocation2 + $0x30] sm:$0xf]  ;;  %v509_v21 = vld [vmem:[%s7665_s21 + $0x38] sm:$0xff]  ;;  %v510_v22 = vld [vmem:[%s7665_s21 + $0x40] sm:$0xff] }
 0x113   : > { %v748_v53 = vsel %vm7874_vm7, %v590_v45, %v747_v11  ;;  %v602_v54 = vshrl.u32 %v5706_v47, 16  ;;  %v605_v55 = vshll.u32 %v5706_v47, 16  ;;  %v5709_v56 = vpack.c.bf16 %v523_v48, %v523_v48  ;;  %v765_v27 = vld [vmem:[#allocation2 + $0x38] sm:$0x1]  ;;  %v511_v28 = vld [vmem:[%s7665_s21 + $0x48] sm:$0xff]  ;;  %v513_v34 = vld [vmem:[%s7665_s21 + $0x58] sm:$0xff] }
 0x114   : > { %749 = vst [vmem:[#allocation2 + $0x18] sm:$0xf] %v748_v53  ;;  %v595_v57 = vrot.slane %v593_v49, 7  ;;  %v610_v58 = vshrl.u32 %v5707_v51, 16  ;;  %v613_v59 = vshll.u32 %v5707_v51, 16  ;;  %v619_v60 = vshrl.u32 %v5708_v52, 16 }
 0x115   : > { %v604_v1 = vrot.slane %v602_v54, 7  ;;  %v622_v2 = vshll.u32 %v5708_v52, 16  ;;  %v627_v3 = vshrl.u32 %v5709_v56, 16  ;;  %v630_v4 = vshll.u32 %v5709_v56, 16  ;;  %v512_v33 = vld [vmem:[%s7665_s21 + $0x50] sm:$0xff]  ;;  %v514_v39 = vld [vmem:[%s7665_s21 + $0x60] sm:$0xff] }
 0x116   : > { %v598_v5 = vor.u32 %v596_v50, %v595_v57  ;;  %v600_v6 = vrot.slane %v595_v57, 4  ;;  %v612_v8 = vrot.slane %v610_v58, 7  ;;  %v621_v9 = vrot.slane %v619_v60, 7  ;;  %v515_v11 = vld [vmem:[%s7665_s21 + $0x68] sm:$0xff]  ;;  %v768_v53 = vld [vmem:[#allocation2 + $0x3c] sm:$0xf] }
 0x117   : > { %v607_v10 = vor.u32 %v605_v55, %v604_v1  ;;  %v608_v12 = vrot.slane %v604_v1, 4  ;;  %v629_v14 = vrot.slane %v627_v3, 7  ;;  %v524_v15 = vmax.f32 %v508_v61, 0.0 }
 0x118   : > { %v599_v16 = vsel %vm7884_vm8, %v591_v46, %v598_v5  ;;  %v752_v17 = vsel %vm7688_vm2, %v600_v6, %v751_v63  ;;  %v615_v18 = vor.u32 %v613_v59, %v612_v8  ;;  %v617_v19 = vrot.slane %v612_v8, 4  ;;  %v772_v5 = vld [vmem:[#allocation2 + $0x44] sm:$0x1]  ;;  %v775_v6 = vld [vmem:[#allocation2 + $0x48] sm:$0xf] }
 0x119   : > { %750 = vst [vmem:[#allocation2 + $0x1c] sm:$0xf] %v599_v16  ;;  %753 = vst [vmem:[#allocation2 + $0x20] sm:$0x1] %v752_v17  ;;  %v755_v23 = vsel %vm7874_vm7, %v607_v10, %v754_v7  ;;  %v624_v24 = vor.u32 %v622_v2, %v621_v9  ;;  %v625_v25 = vrot.slane %v621_v9, 4  ;;  %v632_v26 = vor.u32 %v630_v4, %v629_v14 }
 0x11a   : > { %756 = vst [vmem:[#allocation2 + $0x24] sm:$0xf] %v755_v23  ;;  %v616_v29 = vsel %vm7884_vm8, %v608_v12, %v615_v18  ;;  %v759_v30 = vsel %vm7688_vm2, %v617_v19, %v758_v13  ;;  %v634_v31 = vrot.slane %v629_v14, 4  ;;  %v5710_v32 = vpack.c.bf16 %v524_v15, %v524_v15  ;;  %v779_v15 = vld [vmem:[#allocation2 + $0x50] sm:$0x1] }
 0x11b   : > { %757 = vst [vmem:[#allocation2 + $0x28] sm:$0xf] %v616_v29  ;;  %760 = vst [vmem:[#allocation2 + $0x2c] sm:$0x1] %v759_v30  ;;  %v762_v35 = vsel %vm7874_vm7, %v624_v24, %v761_v20  ;;  %v633_v36 = vsel %vm7884_vm8, %v625_v25, %v632_v26  ;;  %v525_v37 = vmax.f32 %v509_v21, 0.0  ;;  %v526_v38 = vmax.f32 %v510_v22, 0.0 }
 0x11c   : > { %763 = vst [vmem:[#allocation2 + $0x30] sm:$0xf] %v762_v35  ;;  %764 = vst [vmem:[#allocation2 + $0x34] sm:$0xf] %v633_v36  ;;  %v766_v41 = vsel %vm7688_vm2, %v634_v31, %v765_v27  ;;  %v636_v42 = vshrl.u32 %v5710_v32, 16  ;;  %v639_v43 = vshll.u32 %v5710_v32, 16 }
 0x11d   : > { %v527_v44 = vmax.f32 %v511_v28, 0.0  ;;  %767 = vst [vmem:[#allocation2 + $0x38] sm:$0x1] %v766_v41  ;;  %v5711_v45 = vpack.c.bf16 %v525_v37, %v525_v37  ;;  %v5712_v46 = vpack.c.bf16 %v526_v38, %v526_v38  ;;  %v528_v47 = vmax.f32 %v512_v33, 0.0  ;;  %v516_v24 = vld [vmem:[%s7665_s21 + $0x70] sm:$0xff] }
 0x11e   : > { %v529_v48 = vmax.f32 %v513_v34, 0.0  ;;  %v638_v49 = vrot.slane %v636_v42, 7  ;;  %v530_v51 = vmax.f32 %v514_v39, 0.0  ;;  %v531_v52 = vmax.f32 %v515_v11, 0.0  ;;  %v782_v28 = vld [vmem:[#allocation2 + $0x54] sm:$0xf] }
 0x11f   : > { %v5713_v50 = vpack.c.bf16 %v527_v44, %v527_v44  ;;  %v644_v54 = vshrl.u32 %v5711_v45, 16  ;;  %v647_v55 = vshll.u32 %v5711_v45, 16  ;;  %v653_v56 = vshrl.u32 %v5712_v46, 16  ;;  %v517_v34 = vld [vmem:[%s7665_s21 + $0x78] sm:$0xff]  ;;  %v786_v37 = vld [vmem:[#allocation2 + $0x5c] sm:$0x1] }
 0x120   : > { %v656_v57 = vshll.u32 %v5712_v46, 16  ;;  %v641_v58 = vor.u32 %v639_v43, %v638_v49  ;;  %v642_v59 = vrot.slane %v638_v49, 4  ;;  %v5714_v2 = vpack.c.bf16 %v528_v47, %v528_v47  ;;  %v789_v45 = vld [vmem:[#allocation2 + $0x60] sm:$0xf] }
 0x121   : > { %v661_v60 = vshrl.u32 %v5713_v50, 16  ;;  %v664_v61 = vshll.u32 %v5713_v50, 16  ;;  %v646_v63 = vrot.slane %v644_v54, 7  ;;  %v655_v1 = vrot.slane %v653_v56, 7 }
 0x122   : > { %v5715_v3 = vpack.c.bf16 %v529_v48, %v529_v48  ;;  %v769_v4 = vsel %vm7874_vm7, %v641_v58, %v768_v53  ;;  %v5716_v8 = vpack.c.bf16 %v530_v51, %v530_v51  ;;  %v5717_v9 = vpack.c.bf16 %v531_v52, %v531_v52  ;;  %v793_v52 = vld [vmem:[#allocation2 + $0x68] sm:$0x1] }
 0x123   : > { %v663_v7 = vrot.slane %v661_v60, 7  ;;  %770 = vst [vmem:[#allocation2 + $0x3c] sm:$0xf] %v769_v4  ;;  %v649_v10 = vor.u32 %v647_v55, %v646_v63  ;;  %v651_v12 = vrot.slane %v646_v63, 4  ;;  %v658_v13 = vor.u32 %v656_v57, %v655_v1  ;;  %v796_v63 = vld [vmem:[#allocation2 + $0x6c] sm:$0xf] }
 0x124   : > { %v659_v14 = vrot.slane %v655_v1, 4  ;;  %v670_v18 = vshrl.u32 %v5714_v2, 16  ;;  %v673_v19 = vshll.u32 %v5714_v2, 16  ;;  %v678_v23 = vshrl.u32 %v5715_v3, 16 }
 0x125   : > { %v666_v16 = vor.u32 %v664_v61, %v663_v7  ;;  %v668_v17 = vrot.slane %v663_v7, 4  ;;  %v650_v20 = vsel %vm7884_vm8, %v642_v59, %v649_v10  ;;  %v773_v21 = vsel %vm7688_vm2, %v651_v12, %v772_v5  ;;  %v800_v7 = vld [vmem:[#allocation2 + $0x74] sm:$0x1] }
 0x126   : > { %v776_v22 = vsel %vm7874_vm7, %v658_v13, %v775_v6  ;;  %771 = vst [vmem:[#allocation2 + $0x40] sm:$0xf] %v650_v20  ;;  %774 = vst [vmem:[#allocation2 + $0x44] sm:$0x1] %v773_v21  ;;  %v672_v27 = vrot.slane %v670_v18, 7  ;;  %v681_v29 = vshll.u32 %v5715_v3, 16 }
 0x127   : > { %777 = vst [vmem:[#allocation2 + $0x48] sm:$0xf] %v776_v22  ;;  %v667_v25 = vsel %vm7884_vm8, %v659_v14, %v666_v16  ;;  %v780_v26 = vsel %vm7688_vm2, %v668_v17, %v779_v15  ;;  %v680_v30 = vrot.slane %v678_v23, 7  ;;  %v687_v31 = vshrl.u32 %v5716_v8, 16 }
 0x128   : > { %778 = vst [vmem:[#allocation2 + $0x4c] sm:$0xf] %v667_v25  ;;  %781 = vst [vmem:[#allocation2 + $0x50] sm:$0x1] %v780_v26  ;;  %v690_v32 = vshll.u32 %v5716_v8, 16  ;;  %v695_v33 = vshrl.u32 %v5717_v9, 16  ;;  %v675_v35 = vor.u32 %v673_v19, %v672_v27 }
 0x129   : > { %v676_v36 = vrot.slane %v672_v27, 4  ;;  %v698_v38 = vshll.u32 %v5717_v9, 16  ;;  %v532_v39 = vmax.f32 %v516_v24, 0.0  ;;  %v683_v11 = vor.u32 %v681_v29, %v680_v30 }
 0x12a   : > { %v685_v41 = vrot.slane %v680_v30, 4  ;;  %v689_v42 = vrot.slane %v687_v31, 7  ;;  %v697_v43 = vrot.slane %v695_v33, 7  ;;  %v783_v44 = vsel %vm7874_vm7, %v675_v35, %v782_v28 }
 0x12b   : > { %v5718_v46 = vpack.c.bf16 %v532_v39, %v532_v39  ;;  %v533_v47 = vmax.f32 %v517_v34, 0.0  ;;  %784 = vst [vmem:[#allocation2 + $0x54] sm:$0xf] %v783_v44  ;;  %v684_v48 = vsel %vm7884_vm8, %v676_v36, %v683_v11 }
 0x12c   : > { %v787_v49 = vsel %vm7688_vm2, %v685_v41, %v786_v37  ;;  %v692_v50 = vor.u32 %v690_v32, %v689_v42  ;;  %v693_v51 = vrot.slane %v689_v42, 4  ;;  %785 = vst [vmem:[#allocation2 + $0x58] sm:$0xf] %v684_v48  ;;  %v700_v53 = vor.u32 %v698_v38, %v697_v43 }
 0x12d   : > { %788 = vst [vmem:[#allocation2 + $0x5c] sm:$0x1] %v787_v49  ;;  %v702_v54 = vrot.slane %v697_v43, 4  ;;  %v704_v55 = vshrl.u32 %v5718_v46, 16  ;;  %v707_v56 = vshll.u32 %v5718_v46, 16  ;;  %v5719_v58 = vpack.c.bf16 %v533_v47, %v533_v47 }
 0x12e   : > { %v790_v57 = vsel %vm7874_vm7, %v692_v50, %v789_v45  ;;  %v701_v59 = vsel %vm7884_vm8, %v693_v51, %v700_v53 }
 0x12f   : > { %791 = vst [vmem:[#allocation2 + $0x60] sm:$0xf] %v790_v57  ;;  %v794_v60 = vsel %vm7688_vm2, %v702_v54, %v793_v52  ;;  %v706_v61 = vrot.slane %v704_v55, 7  ;;  %792 = vst [vmem:[#allocation2 + $0x64] sm:$0xf] %v701_v59  ;;  %v712_v1 = vshrl.u32 %v5719_v58, 16 }
 0x130   : > { %795 = vst [vmem:[#allocation2 + $0x68] sm:$0x1] %v794_v60  ;;  %v715_v2 = vshll.u32 %v5719_v58, 16  ;;  %805 = sbr.rel (%p8816_p3) target bundleno = 327 (0x147), region = 80 }
 0x131   : > { %v709_v3 = vor.u32 %v707_v56, %v706_v61  ;;  %v710_v4 = vrot.slane %v706_v61, 4  ;;  %v714_v5 = vrot.slane %v712_v1, 7 }
 0x133   : > { %v797_v6 = vsel %vm7874_vm7, %v709_v3, %v796_v63  ;;  %v717_v8 = vor.u32 %v715_v2, %v714_v5  ;;  %v719_v9 = vrot.slane %v714_v5, 4 }
 0x134   : > { %798 = vst [vmem:[#allocation2 + $0x6c] sm:$0xf] %v797_v6 }
 0x135   : > { %v718_v10 = vsel %vm7884_vm8, %v710_v4, %v717_v8  ;;  %v801_v12 = vsel %vm7688_vm2, %v719_v9, %v800_v7 }
 0x136   : > { %799 = vst [vmem:[#allocation2 + $0x70] sm:$0xf] %v718_v10  ;;  %802 = vst [vmem:[#allocation2 + $0x74] sm:$0x1] %v801_v12 }
 0x137   : > { %7317 = dma.done.wait [#allocation7], 512 }
 0x138   : > { %7318 = vsyncadd [#allocation7], 4294966784  ;;  %v810_v13 = vld [vmem:[#allocation6] sm:$0xff]  ;;  %v811_v14 = vld [vmem:[#allocation6 + $0x8] sm:$0xff] }
 0x139   : > { %v814_v15 = vmax.f32 %v810_v13, 0.0  ;;  %v815_v16 = vmax.f32 %v811_v14, 0.0  ;;  %v812_v17 = vld [vmem:[#allocation6 + $0x10] sm:$0xff]  ;;  %v813_v18 = vld [vmem:[#allocation6 + $0x18] sm:$0xff]  ;;  %v874_v36 = vld [vmem:[#allocation2 + $0x8] sm:$0x1] }
 0x13a   : > { %v816_v19 = vmax.f32 %v812_v17, 0.0  ;;  %v817_v20 = vmax.f32 %v813_v18, 0.0  ;;  %v870_v35 = vld [vmem:[#allocation2] sm:$0xf]  ;;  %v877_v43 = vld [vmem:[#allocation2 + $0xc] sm:$0xf] }
 0x13b   : > { %v5720_v21 = vpack.c.bf16 %v814_v15, %v814_v15  ;;  %v5721_v22 = vpack.c.bf16 %v815_v16, %v815_v16  ;;  %v881_v44 = vld [vmem:[#allocation2 + $0x14] sm:$0x1] }
 0x13c   : > { %v5722_v23 = vpack.c.bf16 %v816_v19, %v816_v19  ;;  %v5723_v24 = vpack.c.bf16 %v817_v20, %v817_v20 }
 0x13d   : > { %v831_v25 = vshrl.u32 %v5720_v21, 16  ;;  %v834_v26 = vshll.u32 %v5720_v21, 16  ;;  %v839_v27 = vshrl.u32 %v5721_v22, 16  ;;  %v842_v28 = vshll.u32 %v5721_v22, 16 }
 0x13e   : > { %v848_v29 = vshrl.u32 %v5722_v23, 16  ;;  %v851_v30 = vshll.u32 %v5722_v23, 16  ;;  %v856_v31 = vshrl.u32 %v5723_v24, 16  ;;  %v859_v32 = vshll.u32 %v5723_v24, 16 }
 0x13f   : > { %v833_v33 = vrot.slane %v831_v25, 7  ;;  %v841_v34 = vrot.slane %v839_v27, 7 }
 0x140   : > { %v850_v37 = vrot.slane %v848_v29, 7  ;;  %v858_v38 = vrot.slane %v856_v31, 7 }
 0x141   : > { %v836_v39 = vor.u32 %v834_v26, %v833_v33  ;;  %v837_v11 = vrot.slane %v833_v33, 4  ;;  %v844_v41 = vor.u32 %v842_v28, %v841_v34  ;;  %v846_v42 = vrot.slane %v841_v34, 4 }
 0x142   : > { %v853_v45 = vor.u32 %v851_v30, %v850_v37  ;;  %v854_v46 = vrot.slane %v850_v37, 4  ;;  %v861_v47 = vor.u32 %v859_v32, %v858_v38  ;;  %v863_v48 = vrot.slane %v858_v38, 4 }
 0x143   : > { %v871_v49 = vsel %vm7874_vm7, %v836_v39, %v870_v35  ;;  %v845_v50 = vsel %vm7884_vm8, %v837_v11, %v844_v41  ;;  %v875_v51 = vsel %vm7688_vm2, %v846_v42, %v874_v36 }
 0x144   : > { %872 = vst [vmem:[#allocation2] sm:$0xf] %v871_v49  ;;  %873 = vst [vmem:[#allocation2 + $0x4] sm:$0xf] %v845_v50  ;;  %v878_v52 = vsel %vm7874_vm7, %v853_v45, %v877_v43  ;;  %v862_v53 = vsel %vm7884_vm8, %v854_v46, %v861_v47  ;;  %v882_v54 = vsel %vm7688_vm2, %v863_v48, %v881_v44 }
 0x145   : > { %876 = vst [vmem:[#allocation2 + $0x8] sm:$0x1] %v875_v51  ;;  %879 = vst [vmem:[#allocation2 + $0xc] sm:$0xf] %v878_v52 }
 0x146   : > { %880 = vst [vmem:[#allocation2 + $0x10] sm:$0xf] %v862_v53  ;;  %883 = vst [vmem:[#allocation2 + $0x14] sm:$0x1] %v882_v54 }
 0x147 PF: > { %p5408_p8 = scmp.ne.s32.totalorder %s7339_s24, 0 }
 0x148   : > { %v7368_v58 = vmov (!%p5408_p8), 0  }
 0x149   : > { %887 = sbr.rel (%p5408_p8) target bundleno = 336 (0x150), region = 84  ;;  %891 = vst [vmem:[#allocation2 + $0x4] sm:$0xf] (!%p5408_p8), %v7368_v58  ;;  %898 = vst [vmem:[#allocation2 + $0x10] sm:$0xf] (!%p5408_p8), %v7368_v58 }
 0x14b   : > { %v888_v55 = vld [vmem:[#allocation2] sm:$0xf] (!%p5408_p8) }
 0x14c   : > { %v892_v56 = vld [vmem:[#allocation2 + $0x8] sm:$0x1] (!%p5408_p8)  ;;  %v889_v57 = vsel (!%p5408_p8), %vm7874_vm7, 0, %v888_v55  ;;  %v895_v60 = vld [vmem:[#allocation2 + $0xc] sm:$0xf] (!%p5408_p8) }
 0x14d   : > { %v893_v59 = vsel (!%p5408_p8), %vm7688_vm2, 0, %v892_v56  ;;  %v899_v61 = vld [vmem:[#allocation2 + $0x14] sm:$0x1] (!%p5408_p8)  ;;  %890 = vst [vmem:[#allocation2] sm:$0xf] (!%p5408_p8), %v889_v57  ;;  %v896_v63 = vsel (!%p5408_p8), %vm7874_vm7, 0, %v895_v60 }
 0x14e   : > { %894 = vst [vmem:[#allocation2 + $0x8] sm:$0x1] (!%p5408_p8), %v893_v59  ;;  %v900_v1 = vsel (!%p5408_p8), %vm7688_vm2, 0, %v899_v61  ;;  %897 = vst [vmem:[#allocation2 + $0xc] sm:$0xf] (!%p5408_p8), %v896_v63 }
 0x14f   : > { %901 = vst [vmem:[#allocation2 + $0x14] sm:$0x1] (!%p5408_p8), %v900_v1 }
 0x150 PF: > { %p8817_p11 = scmp.ge.s32.totalorder %s7339_s24, 1 }
 0x152   : > { %904 = sbr.rel (%p8817_p11) target bundleno = 361 (0x169), region = 88 }
 0x159   : > { %7319 = dma.done.wait [#allocation7 + $0x1], 512 }
 0x15a   : > { %7320 = vsyncadd [#allocation7 + $0x1], 4294966784  ;;  %v911_v2 = vld [vmem:[#allocation6 + $0x20] sm:$0xff]  ;;  %v912_v3 = vld [vmem:[#allocation6 + $0x28] sm:$0xff] }
 0x15b   : > { %v915_v4 = vmax.f32 %v911_v2, 0.0  ;;  %v916_v5 = vmax.f32 %v912_v3, 0.0  ;;  %v913_v6 = vld [vmem:[#allocation6 + $0x30] sm:$0xff]  ;;  %v914_v7 = vld [vmem:[#allocation6 + $0x38] sm:$0xff]  ;;  %v983_v34 = vld [vmem:[#allocation2 + $0x8c] sm:$0x1] }
 0x15c   : > { %v917_v8 = vmax.f32 %v913_v6, 0.0  ;;  %v918_v9 = vmax.f32 %v914_v7, 0.0  ;;  %v972_v25 = vld [vmem:[#allocation2 + $0x78] sm:$0xf]  ;;  %v976_v26 = vld [vmem:[#allocation2 + $0x80] sm:$0x1] }
 0x15d   : > { %v5724_v10 = vpack.c.bf16 %v915_v4, %v915_v4  ;;  %v5725_v12 = vpack.c.bf16 %v916_v5, %v916_v5  ;;  %v979_v33 = vld [vmem:[#allocation2 + $0x84] sm:$0xf] }
 0x15e   : > { %v5726_v13 = vpack.c.bf16 %v917_v8, %v917_v8  ;;  %v5727_v14 = vpack.c.bf16 %v918_v9, %v918_v9 }
 0x15f   : > { %v932_v15 = vshrl.u32 %v5724_v10, 16  ;;  %v935_v16 = vshll.u32 %v5724_v10, 16  ;;  %v940_v17 = vshrl.u32 %v5725_v12, 16  ;;  %v943_v18 = vshll.u32 %v5725_v12, 16 }
 0x160   : > { %v949_v19 = vshrl.u32 %v5726_v13, 16  ;;  %v952_v20 = vshll.u32 %v5726_v13, 16  ;;  %v957_v21 = vshrl.u32 %v5727_v14, 16  ;;  %v960_v22 = vshll.u32 %v5727_v14, 16 }
 0x161   : > { %v934_v23 = vrot.slane %v932_v15, 7  ;;  %v942_v24 = vrot.slane %v940_v17, 7 }
 0x162   : > { %v951_v27 = vrot.slane %v949_v19, 7  ;;  %v959_v28 = vrot.slane %v957_v21, 7 }
 0x163   : > { %v937_v29 = vor.u32 %v935_v16, %v934_v23  ;;  %v938_v30 = vrot.slane %v934_v23, 4  ;;  %v945_v31 = vor.u32 %v943_v18, %v942_v24  ;;  %v947_v32 = vrot.slane %v942_v24, 4 }
 0x164   : > { %v954_v35 = vor.u32 %v952_v20, %v951_v27  ;;  %v955_v36 = vrot.slane %v951_v27, 4  ;;  %v962_v37 = vor.u32 %v960_v22, %v959_v28  ;;  %v964_v38 = vrot.slane %v959_v28, 4 }
 0x165   : > { %v973_v39 = vsel %vm7874_vm7, %v937_v29, %v972_v25  ;;  %v946_v11 = vsel %vm7884_vm8, %v938_v30, %v945_v31  ;;  %v977_v41 = vsel %vm7688_vm2, %v947_v32, %v976_v26 }
 0x166   : > { %974 = vst [vmem:[#allocation2 + $0x78] sm:$0xf] %v973_v39  ;;  %975 = vst [vmem:[#allocation2 + $0x7c] sm:$0xf] %v946_v11  ;;  %v980_v42 = vsel %vm7874_vm7, %v954_v35, %v979_v33  ;;  %v963_v43 = vsel %vm7884_vm8, %v955_v36, %v962_v37  ;;  %v984_v44 = vsel %vm7688_vm2, %v964_v38, %v983_v34 }
 0x167   : > { %978 = vst [vmem:[#allocation2 + $0x80] sm:$0x1] %v977_v41  ;;  %981 = vst [vmem:[#allocation2 + $0x84] sm:$0xf] %v980_v42 }
 0x168   : > { %982 = vst [vmem:[#allocation2 + $0x88] sm:$0xf] %v963_v43  ;;  %985 = vst [vmem:[#allocation2 + $0x8c] sm:$0x1] %v984_v44 }
 0x169 PF: > { %p5414_p2 = scmp.ne.s32.totalorder %s7339_s24, 1 }
 0x16a   : > { %v7369_v48 = vmov (!%p5414_p2), 0  }
 0x16b   : > { %989 = sbr.rel (%p5414_p2) target bundleno = 370 (0x172), region = 92  ;;  %994 = vst [vmem:[#allocation2 + $0x7c] sm:$0xf] (!%p5414_p2), %v7369_v48  ;;  %1001 = vst [vmem:[#allocation2 + $0x88] sm:$0xf] (!%p5414_p2), %v7369_v48 }
 0x16d   : > { %v991_v45 = vld [vmem:[#allocation2 + $0x78] sm:$0xf] (!%p5414_p2) }
 0x16e   : > { %v995_v46 = vld [vmem:[#allocation2 + $0x80] sm:$0x1] (!%p5414_p2)  ;;  %v992_v47 = vsel (!%p5414_p2), %vm7874_vm7, 0, %v991_v45  ;;  %v998_v50 = vld [vmem:[#allocation2 + $0x84] sm:$0xf] (!%p5414_p2) }
 0x16f   : > { %v996_v49 = vsel (!%p5414_p2), %vm7688_vm2, 0, %v995_v46  ;;  %v1002_v51 = vld [vmem:[#allocation2 + $0x8c] sm:$0x1] (!%p5414_p2)  ;;  %993 = vst [vmem:[#allocation2 + $0x78] sm:$0xf] (!%p5414_p2), %v992_v47  ;;  %v999_v52 = vsel (!%p5414_p2), %vm7874_vm7, 0, %v998_v50 }
 0x170   : > { %997 = vst [vmem:[#allocation2 + $0x80] sm:$0x1] (!%p5414_p2), %v996_v49  ;;  %v1003_v53 = vsel (!%p5414_p2), %vm7688_vm2, 0, %v1002_v51  ;;  %1000 = vst [vmem:[#allocation2 + $0x84] sm:$0xf] (!%p5414_p2), %v999_v52 }
 0x171   : > { %1004 = vst [vmem:[#allocation2 + $0x8c] sm:$0x1] (!%p5414_p2), %v1003_v53 }
 0x172 PF: > { %v6792_v54 = vld [vmem:[#allocation11 + $0x100] sm:$0xff]   ;;  %v6796_v58 = vld [vmem:[#allocation11 + $0x108] sm:$0xff]   ;;  %v6800_v63 = vld [vmem:[#allocation11 + $0x110] sm:$0xff]   ;;  %vm1245_vm9 = vsmask.f32 7424  ;;  %vm1546_vm10 = vcmask 1046528  }
 0x173   : > { %v6793_v55 = vld [vmem:[#allocation11 + $0xc0] sm:$0xff]   ;;  %5749 = vmatprep.subr.bf16.mxu0 %v6792_v54  ;;  %v6797_v59 = vld [vmem:[#allocation11 + $0xc8] sm:$0xff]   ;;  %v6801_v1 = vld [vmem:[#allocation11 + $0xd0] sm:$0xff]  }
 0x174   : > { %v6794_v56 = vld [vmem:[#allocation11 + $0x40] sm:$0xff]   ;;  %5750 = vmatpush3.bf16.msra.mxu0 %v6793_v55  ;;  %v6798_v60 = vld [vmem:[#allocation11 + $0x48] sm:$0xff]   ;;  %v6802_v2 = vld [vmem:[#allocation11 + $0x50] sm:$0xff]  }
 0x175   : > { %v6795_v57 = vld [vmem:[#allocation11] sm:$0xff]   ;;  %5843 = vmatprep.subr.bf16.mxu1 %v6794_v56  ;;  %5751 = vmatprep.subr.bf16.mxu0 %v6796_v58  ;;  %v6799_v61 = vld [vmem:[#allocation11 + $0x8] sm:$0xff]   ;;  %v6803_v3 = vld [vmem:[#allocation11 + $0x10] sm:$0xff]  }
 0x176   : > { %5844 = vmatpush3.bf16.msra.mxu1 %v6795_v57  ;;  %v6804_v4 = vld [vmem:[#allocation11 + $0x118] sm:$0xff]   ;;  %v6808_v8 = vld [vmem:[#allocation11 + $0x120] sm:$0xff]   ;;  %v6812_v13 = vld [vmem:[#allocation11 + $0x128] sm:$0xff]  }
 0x177   : > { %5845 = vmatprep.subr.bf16.mxu1 %v6798_v60  ;;  %v6805_v5 = vld [vmem:[#allocation11 + $0xd8] sm:$0xff]   ;;  %v6809_v9 = vld [vmem:[#allocation11 + $0xe0] sm:$0xff]   ;;  %v6813_v14 = vld [vmem:[#allocation11 + $0xe8] sm:$0xff]  }
 0x178   : > { %5752 = vmatpush3.bf16.msra.mxu0 %v6797_v59  ;;  %v6806_v6 = vld [vmem:[#allocation11 + $0x58] sm:$0xff]   ;;  %v6810_v10 = vld [vmem:[#allocation11 + $0x60] sm:$0xff]   ;;  %v6814_v15 = vld [vmem:[#allocation11 + $0x68] sm:$0xff]  }
 0x179   : > { %5753 = vmatprep.subr.bf16.mxu0 %v6800_v63  ;;  %v6807_v7 = vld [vmem:[#allocation11 + $0x18] sm:$0xff]   ;;  %v6811_v12 = vld [vmem:[#allocation11 + $0x20] sm:$0xff]   ;;  %v6815_v16 = vld [vmem:[#allocation11 + $0x28] sm:$0xff]  }
 0x17a   : > { %5846 = vmatpush3.bf16.msra.mxu1 %v6799_v61  ;;  %v6816_v17 = vld [vmem:[#allocation11 + $0x130] sm:$0xff]   ;;  %v6820_v21 = vld [vmem:[#allocation11 + $0x138] sm:$0xff]   ;;  %v6823_v24 = vld [vmem:[#allocation2 + $0xc] sm:$0xff]  }
 0x17b   : > { %5847 = vmatprep.subr.bf16.mxu1 %v6802_v2  ;;  %v6817_v18 = vld [vmem:[#allocation11 + $0xf0] sm:$0xff]   ;;  %v6821_v22 = vld [vmem:[#allocation11 + $0xf8] sm:$0xff]   ;;  %v6824_v25 = vld [vmem:[#allocation2 + $0x14] ss:$0 sps:$4 sm:$0x11]   ;;  %v1259_v27 = vshrl.u32 %v6823_v24, 16 }
 0x17c   : > { %5754 = vmatpush3.bf16.msra.mxu0 %v6801_v1  ;;  %v6818_v19 = vld [vmem:[#allocation11 + $0x70] sm:$0xff]   ;;  %v6822_v23 = vld [vmem:[#allocation11 + $0x78] sm:$0xff]   ;;  %v1261_v28 = vshll.u32 %v6823_v24, 16  ;;  %v1266_v29 = vshll.u32 %v6824_v25, 16  ;;  %v6827_v32 = vld [vmem:[#allocation11 + $0x140] sm:$0xff]  }
 0x17d   : > { %5755 = vmatprep.subr.bf16.mxu0 %v6804_v4  ;;  %v6819_v20 = vld [vmem:[#allocation11 + $0x30] sm:$0xff]   ;;  %v6825_v26 = vld [vmem:[#allocation11 + $0x38] sm:$0xff]   ;;  %v6826_v35 = vld [vmem:[#allocation2 + $0xc] sm:$0xff]  }
 0x17e   : > { %5848 = vmatpush3.bf16.msra.mxu1 %v6803_v3  ;;  %v1263_v30 = vrot.slane %v1261_v28, 1  ;;  %v1268_v31 = vrot.slane %v1266_v29, 1  ;;  %v6828_v33 = vld [vmem:[#allocation2] sm:$0xff]   ;;  %v6829_v36 = vld [vmem:[#allocation2 + $0x8] ss:$0 sps:$4 sm:$0x11]  }
 0x17f   : > { %5849 = vmatprep.subr.bf16.mxu1 %v6806_v6  ;;  %v1247_v37 = vshrl.u32 %v6828_v33, 16  ;;  %v1249_v38 = vshll.u32 %v6828_v33, 16  ;;  %v1254_v41 = vshll.u32 %v6829_v36, 16  ;;  %v6830_v42 = vld [vmem:[#allocation2] sm:$0xff]   ;;  %v6831_v43 = vld [vmem:[#allocation2 + $0x18] sm:$0xff]   ;;  %v6834_v45 = vld [vmem:[#allocation11 + $0x148] sm:$0xff]  }
 0x180   : > { %5756 = vmatpush3.bf16.msra.mxu0 %v6805_v5  ;;  %v1264_v34 = vor.u32 %v1263_v30, %v1259_v27  ;;  %v6832_v44 = vld [vmem:[#allocation2 + $0x20] ss:$0 sps:$4 sm:$0x11]   ;;  %v1271_v48 = vshrl.u32 %v6831_v43, 16  ;;  %v1273_v49 = vshll.u32 %v6831_v43, 16  ;;  %v6835_v50 = vld [vmem:[#allocation2 + $0x24] sm:$0xff]  }
 0x181   : > { %5757 = vmatprep.subr.bf16.mxu0 %v6808_v8  ;;  %v1251_v11 = vrot.slane %v1249_v38, 1  ;;  %v1256_v47 = vrot.slane %v1254_v41, 1  ;;  %v1278_v51 = vshll.u32 %v6832_v44, 16  ;;  %v7999_v54 = vld [vmem:[#allocation2 + $0x18] sm:$0xff]   ;;  %v1283_v55 = vshrl.u32 %v6835_v50, 16  ;;  %v6839_v63 = vld [vmem:[#allocation2 + $0x30] sm:$0xff]  }
 0x182   : > { %5850 = vmatpush3.bf16.msra.mxu1 %v6807_v7  ;;  %v1269_v39 = vsel %vm1245_vm9, %v1264_v34, %v1268_v31  ;;  %v1275_v53 = vrot.slane %v1273_v49, 1  ;;  %v6836_v57 = vld [vmem:[#allocation2 + $0x2c] ss:$0 sps:$4 sm:$0x11]   ;;  %v1285_v59 = vshll.u32 %v6835_v50, 16  ;;  %v6838_v60 = vld [vmem:[#allocation11 + $0x150] sm:$0xff]  }
 0x183   : > { %5851 = vmatprep.subr.bf16.mxu1 %v6810_v10  ;;  %1941 = vmatprep.mubr.bf16.mxu0 %v1269_v39  ;;  %v1252_v46 = vor.u32 %v1251_v11, %v1247_v37  ;;  %v1280_v56 = vrot.slane %v1278_v51, 1  ;;  %v1290_v61 = vshll.u32 %v6836_v57, 16  ;;  %v6840_v4 = vld [vmem:[#allocation2 + $0x38] ss:$0 sps:$4 sm:$0x11]   ;;  %v1295_v6 = vshrl.u32 %v6839_v63, 16 }
 0x184   : > { %5758 = vmatpush3.bf16.msra.mxu0 %v6809_v9  ;;  %v1276_v58 = vor.u32 %v1275_v53, %v1271_v48  ;;  %v1287_v2 = vrot.slane %v1285_v59, 1  ;;  %v1297_v7 = vshll.u32 %v6839_v63, 16  ;;  %v1302_v8 = vshll.u32 %v6840_v4, 16  ;;  %v6842_v9 = vld [vmem:[#allocation11 + $0x158] sm:$0xff]   ;;  %v6849_v25 = vld [vmem:[#allocation11 + $0x160] sm:$0xff]   ;;  %v8019_v30 = vld [vmem:[#allocation2 + $0x30] sm:$0xff]  }
 0x185   : > { %5759 = vmatprep.subr.bf16.mxu0 %v6812_v13  ;;  %v1257_v52 = vsel %vm1245_vm9, %v1252_v46, %v1256_v47  ;;  %v1292_v3 = vrot.slane %v1290_v61, 1  ;;  %v6843_v13 = vld [vmem:[#allocation2 + $0x3c] sm:$0xff]   ;;  %v6847_v24 = vld [vmem:[#allocation2 + $0x50] ss:$0 sps:$4 sm:$0x11]   ;;  %v6851_v36 = vld [vmem:[#allocation2 + $0x54] sm:$0xff]  }
 0x186   : > { %5852 = vmatpush3.bf16.msra.mxu1 %v6811_v12  ;;  %2311 = vmatprep.mubr.bf16.mxu1 %v1257_v52  ;;  %v8002_v1 = vsel %vm1245_vm9, %v1276_v58, %v1280_v56  ;;  %v1288_v5 = vor.u32 %v1287_v2, %v1283_v55  ;;  %v1299_v12 = vrot.slane %v1297_v7, 1  ;;  %v6854_v33 = vld [vmem:[#allocation11 + $0x168] sm:$0xff]   ;;  %v6852_v38 = vld [vmem:[#allocation2 + $0x5c] ss:$0 sps:$4 sm:$0x11]   ;;  %v1331_v44 = vshrl.u32 %v6851_v36, 16 }
 0x187   : > { %5853 = vmatprep.subr.bf16.mxu1 %v6814_v15  ;;  %v6844_v15 = vld [vmem:[#allocation2 + $0x44] ss:$0 sps:$4 sm:$0x11]   ;;  %v6855_v37 = vld [vmem:[#allocation11 + $0x88] sm:$0xff]   ;;  %v6859_v43 = vld [vmem:[#allocation11 + $0x90] sm:$0xff]   ;;  %v1338_v46 = vshll.u32 %v6852_v38, 16 }
 0x188   : > { %5760 = vmatpush3.bf16.msra.mxu0 %v6813_v14  ;;  %v8007_v10 = vsel %vm1245_vm9, %v1288_v5, %v1292_v3  ;;  %v1304_v14 = vrot.slane %v1302_v8, 1  ;;  %v6861_v47 = vld [vmem:[#allocation11 + $0x98] sm:$0xff]   ;;  %v6857_v51 = vld [vmem:[#allocation2 + $0x68] ss:$0 sps:$4 sm:$0x11]   ;;  %v6867_v58 = vld [vmem:[#allocation11 + $0xa8] sm:$0xff]  }
 0x189   : > { %5761 = vmatprep.subr.bf16.mxu0 %v6816_v17  ;;  %v1300_v17 = vor.u32 %v1299_v12, %v1295_v6  ;;  %v6856_v50 = vld [vmem:[#allocation2 + $0x60] sm:$0xff]   ;;  %v1340_v52 = vrot.slane %v1338_v46, 1  ;;  %v6865_v53 = vld [vmem:[#allocation11 + $0xa0] sm:$0xff]   ;;  %v1350_v61 = vshll.u32 %v6857_v51, 16  ;;  %v6871_v5 = vld [vmem:[#allocation11 + $0xb0] sm:$0xff]  }
 0x18a   : > { %5854 = vmatpush3.bf16.msra.mxu1 %v6815_v16  ;;  %v8010_v16 = vld [vmem:[#allocation2 + $0x24] sm:$0xff]   ;;  %v1345_v56 = vshll.u32 %v6856_v50, 16  ;;  %v6862_v3 = vld [vmem:[#allocation2 + $0x6c] sm:$0xff]   ;;  %v6863_v4 = vld [vmem:[#allocation2 + $0x74] ss:$0 sps:$4 sm:$0x11]  }
 0x18b   : > { %5855 = vmatprep.subr.bf16.mxu1 %v6818_v19  ;;  %v1307_v19 = vshrl.u32 %v6843_v13, 16  ;;  %v6866_v57 = vld [vmem:[#allocation11 + $0x178] sm:$0xff]   ;;  %v8037_v59 = vld [vmem:[#allocation2 + $0x48] sm:$0xff]   ;;  %v1352_v8 = vrot.slane %v1350_v61, 1  ;;  %v8076_v46 = vld [vmem:[#allocation2 + $0x78] sm:$0xff]  }
 0x18c   : > { %5762 = vmatpush3.bf16.msra.mxu0 %v6817_v18  ;;  %v1309_v18 = vshll.u32 %v6843_v13, 16  ;;  %v1347_v2 = vrot.slane %v1345_v56, 1  ;;  %v6877_v6 = vld [vmem:[#allocation11 + $0x1c0] sm:$0xff]   ;;  %v6872_v12 = vld [vmem:[#allocation11 + $0xb8] sm:$0xff]   ;;  %v8046_v13 = vld [vmem:[#allocation2 + $0x54] sm:$0xff]  }
 0x18d   : > { %5763 = vmatprep.subr.bf16.mxu0 %v6820_v21  ;;  %v8014_v21 = vsel %vm1245_vm9, %v1300_v17, %v1304_v14  ;;  %v1355_v14 = vshrl.u32 %v6862_v3, 16  ;;  %v6886_v61 = vld [vmem:[#allocation2 + $0x38] ss:$0 sps:$4 sm:$0x11]  }
 0x18e   : > { %5856 = vmatpush3.bf16.msra.mxu1 %v6819_v20  ;;  %v1314_v20 = vshll.u32 %v6844_v15, 16  ;;  %v1362_v15 = vshll.u32 %v6863_v4, 16 }
 0x18f   : > { %5857 = vmatprep.subr.bf16.mxu1 %v6822_v23  ;;  %v6846_v23 = vld [vmem:[#allocation2 + $0x48] sm:$0xff]  }
 0x190   : > { %5764 = vmatpush3.bf16.msra.mxu0 %v6821_v22  ;;  %v1311_v22 = vrot.slane %v1309_v18, 1  ;;  %v1316_v28 = vrot.slane %v1314_v20, 1  ;;  %v1321_v29 = vshll.u32 %v6846_v23, 16  ;;  %v1319_v31 = vshrl.u32 %v6846_v23, 16 }
 0x191   : > { %6271 = vmatprep.subr.bf16.mxu0 %v6827_v32  ;;  %v6869_v20 = vld [vmem:[#allocation2 + $0x80] ss:$0 sps:$4 sm:$0x11]  }
 0x192   : > { %5858 = vmatpush3.bf16.msra.mxu1 %v6825_v26  ;;  %v6850_v26 = vld [vmem:[#allocation11 + $0x80] sm:$0xff]   ;;  %v1312_v27 = vor.u32 %v1311_v22, %v1307_v19  ;;  %v6868_v19 = vld [vmem:[#allocation2 + $0x78] sm:$0xff]  }
 0x193   : > { %1942 = vmatmul.mubr.bf16.vlgmr.msra.gmra.mrb[0].mxu0 %v6826_v35  ;;  %6307 = vmatprep.subr.bf16.mxu1 %v6850_v26  ;;  %v8053_v22 = vld [vmem:[#allocation11 + $0x200] sm:$0xff]  }
 0x194   : > { %6272 = vmatpush3.bf16.msra.mxu0 %v6827_v32  ;;  %1949 = vmatprep.mubr.bf16.mxu0 %v8002_v1  ;;  %v1326_v32 = vshll.u32 %v6847_v24, 16  ;;  %v8023_v34 = vsel %vm1245_vm9, %v1312_v27, %v1316_v28  ;;  %v1364_v24 = vrot.slane %v1362_v15, 1  ;;  %v1374_v27 = vshll.u32 %v6869_v20, 16  ;;  %v6890_v20 = vld [vmem:[#allocation11 + $0x208] sm:$0xff]  }
 0x195   : > { %6273 = vmatprep.subr.bf16.mxu0 %v6834_v45  ;;  %2312 = vmatmul.mubr.bf16.vlgmr.msra.gmra.mrb[0].mxu1 %v6830_v42  ;;  %v1333_v42 = vshll.u32 %v6851_v36, 16  ;;  %v6873_v36 = vld [vmem:[#allocation2 + $0xc] sm:$0xfe]  }
 0x196   : > { %2319 = vmatprep.mubr.bf16.mxu1 %v1269_v39  ;;  %6308 = vmatpush3.bf16.msra.mxu1 %v6850_v26  ;;  %v8027_v39 = vld [vmem:[#allocation2 + $0x3c] sm:$0xff]   ;;  %v1328_v41 = vrot.slane %v1326_v32, 1  ;;  %v1376_v32 = vrot.slane %v1374_v27, 1 }
 0x197   : > { %6309 = vmatprep.subr.bf16.mxu1 %v6855_v37  ;;  %v1335_v49 = vrot.slane %v1333_v42, 1  ;;  %v8058_v26 = vld [vmem:[#allocation2 + $0x60] sm:$0xff]   ;;  %v1550_v42 = vrot.slane %v6873_v36, 1 }
 0x198   : > { %6274 = vmatpush3.bf16.msra.mxu0 %v6834_v45  ;;  %v6860_v45 = vld [vmem:[#allocation11 + $0x170] sm:$0xff]  }
 0x199   : > { %6275 = vmatprep.subr.bf16.mxu0 %v6838_v60  ;;  %v1336_v55 = vor.u32 %v1335_v49, %v1331_v44  ;;  %v6875_v44 = vld [vmem:[#allocation2 + $0x18] sm:$0xfe]  }
 0x19a   : > { %6310 = vmatpush3.bf16.msra.mxu1 %v6855_v37  ;;  %v6874_v37 = vld [vmem:[#allocation2 + $0x14] ss:$0 sps:$4 sm:$0x11]  }
 0x19b   : > { %1950 = vmatmul.mubr.bf16.gmra.mrb[4].mxu0 %v7999_v54  ;;  %6311 = vmatprep.subr.bf16.mxu1 %v6859_v43  ;;  %v8041_v63 = vsel %vm1245_vm9, %v1336_v55, %v1340_v52  ;;  %v6883_v52 = vld [vmem:[#allocation2 + $0x24] sm:$0xfe]  }
 0x19c   : > { %6276 = vmatpush3.bf16.msra.mxu0 %v6838_v60  ;;  %1957 = vmatprep.mubr.bf16.mxu0 %v8007_v10  ;;  %v1343_v60 = vshrl.u32 %v6856_v50, 16  ;;  %v6884_v50 = vld [vmem:[#allocation2 + $0x2c] ss:$0 sps:$4 sm:$0x11]  }
 0x19d   : > { %6277 = vmatprep.subr.bf16.mxu0 %v6842_v9  ;;  %2320 = vmatmul.mubr.bf16.gmra.mrb[4].mxu1 %v6826_v35  ;;  %v1323_v35 = vrot.slane %v1321_v29, 1  ;;  %v1367_v29 = vshrl.u32 %v6868_v19, 16 }
 0x19e   : > { %2327 = vmatprep.mubr.bf16.mxu1 %v8002_v1  ;;  %6312 = vmatpush3.bf16.msra.mxu1 %v6859_v43  ;;  %v1348_v7 = vor.u32 %v1347_v2, %v1343_v60  ;;  %v1551_v43 = vrot.slane %v6874_v37, 1  ;;  %v6880_v60 = vld [vmem:[#allocation11 + $0x180] sm:$0xff]   ;;  %v6892_v2 = vld [vmem:[#allocation2 + $0x44] ss:$0 sps:$4 sm:$0x11]  }
 0x19f   : > { %v1324_v11 = vor.u32 %v1323_v35, %v1319_v31  ;;  %6313 = vmatprep.subr.bf16.mxu1 %v6861_v47  ;;  %v8067_v35 = vld [vmem:[#allocation2 + $0x6c] sm:$0xff]  }
 0x1a0   : > { %6278 = vmatpush3.bf16.msra.mxu0 %v6842_v9  ;;  %v1357_v9 = vshll.u32 %v6862_v3, 16  ;;  %v8050_v17 = vsel %vm1245_vm9, %v1348_v7, %v1352_v8  ;;  %v1552_v51 = vsel %vm1546_vm10, %v1550_v42, %v1551_v43  ;;  %v6885_v3 = vld [vmem:[#allocation2 + $0x30] sm:$0xfe]  }
 0x1a1   : > { %6279 = vmatprep.subr.bf16.mxu0 %v6849_v25  ;;  %v8032_v48 = vsel %vm1245_vm9, %v1324_v11, %v1328_v41  ;;  %v6878_v11 = vld [vmem:[#allocation2] sm:$0xfe]   ;;  %v6879_v41 = vld [vmem:[#allocation2 + $0x8] ss:$0 sps:$4 sm:$0x11]   ;;  %v6882_v8 = vld [vmem:[#allocation11 + $0x188] sm:$0xff]  }
 0x1a2   : > { %6314 = vmatpush3.bf16.msra.mxu1 %v6861_v47  ;;  %v1359_v18 = vrot.slane %v1357_v9, 1  ;;  %v1547_v47 = vrot.slane %v6878_v11, 1  ;;  %v1548_v49 = vrot.slane %v6879_v41, 1  ;;  %v1559_v9 = vrot.slane %v6885_v3, 1  ;;  %v6896_v11 = vld [vmem:[#allocation11 + $0x198] sm:$0xff]   ;;  %v6898_v41 = vld [vmem:[#allocation11 + $0x1e0] sm:$0xff]  }
 0x1a3   : > { %1958 = vmatmul.mubr.bf16.gmra.mrb[8].mxu0 %v8010_v16  ;;  %6315 = vmatprep.subr.bf16.mxu1 %v6865_v53  ;;  %v6909_v3 = vld [vmem:[#allocation11 + $0x228] sm:$0xff]  }
 0x1a4   : > { %1965 = vmatprep.mubr.bf16.mxu0 %v8014_v21  ;;  %6280 = vmatpush3.bf16.msra.mxu0 %v6849_v25  ;;  %v1360_v23 = vor.u32 %v1359_v18, %v1355_v14  ;;  %v1369_v25 = vshll.u32 %v6868_v19, 16  ;;  %v1549_v56 = vsel %vm1546_vm10, %v1547_v47, %v1548_v49  ;;  %v6887_v14 = vld [vmem:[#allocation11 + $0x1d0] sm:$0xff]   ;;  %v1563_v18 = vrot.slane %v6892_v2, 1  ;;  %v6903_v47 = vld [vmem:[#allocation2 + $0x60] sm:$0xfe]  }
 0x1a5   : > { %2328 = vmatmul.mubr.bf16.gmra.mrb[8].mxu1 %v7999_v54  ;;  %6281 = vmatprep.subr.bf16.mxu0 %v6854_v33  ;;  %v6889_v19 = vld [vmem:[#allocation11 + $0x190] sm:$0xff]   ;;  %v6904_v49 = vld [vmem:[#allocation2 + $0x68] ss:$0 sps:$4 sm:$0x11]  }
 0x1a6   : > { %2335 = vmatprep.mubr.bf16.mxu1 %v8007_v10  ;;  %6316 = vmatpush3.bf16.msra.mxu1 %v6865_v53  ;;  %v8062_v28 = vsel %vm1245_vm9, %v1360_v23, %v1364_v24  ;;  %v1371_v31 = vrot.slane %v1369_v25, 1  ;;  %v1553_v53 = vrot.slane %v6875_v44, 1  ;;  %v6895_v23 = vld [vmem:[#allocation2 + $0x50] ss:$0 sps:$4 sm:$0x11]   ;;  %v6893_v24 = vld [vmem:[#allocation11 + $0x1d8] sm:$0xff]  }
 0x1a7   : > { %6317 = vmatprep.subr.bf16.mxu1 %v6867_v58  ;;  %v6902_v25 = vld [vmem:[#allocation2 + $0x5c] ss:$0 sps:$4 sm:$0x11]   ;;  %v1566_v37 = vrot.slane %v6895_v23, 1  ;;  %v6918_v23 = vld [vmem:[#allocation11 + $0x238] sm:$0xff]  }
 0x1a8   : > { %6282 = vmatpush3.bf16.msra.mxu0 %v6854_v33  ;;  %v1372_v33 = vor.u32 %v1371_v31, %v1367_v29  ;;  %v6894_v29 = vld [vmem:[#allocation2 + $0x48] sm:$0xfe]   ;;  %v1569_v43 = vrot.slane %v6902_v25, 1 }
 0x1a9   : > { %6283 = vmatprep.subr.bf16.mxu0 %v6860_v45  ;;  %v1565_v36 = vrot.slane %v6894_v29, 1 }
 0x1aa   : > { %6318 = vmatpush3.bf16.msra.mxu1 %v6867_v58  ;;  %v8071_v38 = vsel %vm1245_vm9, %v1372_v33, %v1376_v32  ;;  %v1557_v58 = vrot.slane %v6884_v50, 1  ;;  %v6901_v32 = vld [vmem:[#allocation2 + $0x54] sm:$0xfe]  }
 0x1ab   : > { %1966 = vmatmul.mubr.bf16.gmra.mrb[12].mxu0 %v8019_v30  ;;  %6319 = vmatprep.subr.bf16.mxu1 %v6871_v5  ;;  %v6897_v33 = vld [vmem:[#allocation11 + $0x210] sm:$0xff]   ;;  %v1568_v42 = vrot.slane %v6901_v32, 1  ;;  %v8103_v44 = vsel %vm1546_vm10, %v1565_v36, %v1566_v37 }
 0x1ac   : > { %1973 = vmatprep.mubr.bf16.mxu0 %v8023_v34  ;;  %6284 = vmatpush3.bf16.msra.mxu0 %v6860_v45  ;;  %v6876_v45 = vld [vmem:[#allocation2 + $0x20] ss:$0 sps:$4 sm:$0x11]  }
 0x1ad   : > { %2336 = vmatmul.mubr.bf16.gmra.mrb[12].mxu1 %v8010_v16  ;;  %6285 = vmatprep.subr.bf16.mxu0 %v6866_v57  ;;  %v1554_v55 = vrot.slane %v6876_v45, 1  ;;  %v6899_v45 = vld [vmem:[#allocation11 + $0x1a0] sm:$0xff]   ;;  %v1570_v50 = vsel %vm1546_vm10, %v1568_v42, %v1569_v43 }
 0x1ae   : > { %2343 = vmatprep.mubr.bf16.mxu1 %v8014_v21  ;;  %6320 = vmatpush3.bf16.msra.mxu1 %v6871_v5  ;;  %v6891_v5 = vld [vmem:[#allocation2 + $0x3c] sm:$0xfe]  }
 0x1af   : > { %6321 = vmatprep.subr.bf16.mxu1 %v6872_v12  ;;  %v8084_v4 = vsel %vm1546_vm10, %v1553_v53, %v1554_v55  ;;  %v1562_v15 = vrot.slane %v6891_v5, 1  ;;  %v6911_v53 = vld [vmem:[#allocation2 + $0x74] ss:$0 sps:$4 sm:$0x11]   ;;  %v6907_v55 = vld [vmem:[#allocation11 + $0x220] sm:$0xff]  }
 0x1b0   : > { %6286 = vmatpush3.bf16.msra.mxu0 %v6866_v57  ;;  %v1556_v57 = vrot.slane %v6883_v52, 1  ;;  %v6910_v52 = vld [vmem:[#allocation2 + $0x6c] sm:$0xfe]   ;;  %v1575_v2 = vrot.slane %v6911_v53, 1 }
 0x1b1   : > { %5937 = vmatprep.subr.bf16.mxu0 %v6877_v6  ;;  %v6881_v6 = vld [vmem:[#allocation11 + $0x1c8] sm:$0xff]   ;;  %v8097_v31 = vsel %vm1546_vm10, %v1562_v15, %v1563_v18  ;;  %v6915_v15 = vld [vmem:[#allocation11 + $0x230] sm:$0xff]  }
 0x1b2   : > { %6322 = vmatpush3.bf16.msra.mxu1 %v6872_v12  ;;  %v8087_v7 = vsel %vm1546_vm10, %v1556_v57, %v1557_v58  ;;  %v1560_v12 = vrot.slane %v6886_v61, 1  ;;  %v1572_v57 = vrot.slane %v6904_v49, 1  ;;  %v6906_v58 = vld [vmem:[#allocation11 + $0x1a8] sm:$0xff]   ;;  %v1574_v61 = vrot.slane %v6910_v52, 1 }
 0x1b3   : > { %1974 = vmatmul.mubr.bf16.gmra.mrb[16].mxu0 %v8027_v39  ;;  %6343 = vmatprep.subr.bf16.mxu1 %v8053_v22 }
 0x1b4   : > { %1981 = vmatprep.mubr.bf16.mxu0 %v8032_v48  ;;  %v8092_v27 = vsel %vm1546_vm10, %v1559_v9, %v1560_v12  ;;  %v6914_v9 = vld [vmem:[#allocation2 + $0x80] ss:$0 sps:$4 sm:$0x11]   ;;  %v1576_v12 = vsel %vm1546_vm10, %v1574_v61, %v1575_v2 }
 0x1b5   : > { %2344 = vmatmul.mubr.bf16.gmra.mrb[16].mxu1 %v8019_v30 }
 0x1b6   : > { %2351 = vmatprep.mubr.bf16.mxu1 %v8023_v34 }
 0x1bb   : > { %1982 = vmatmul.mubr.bf16.gmra.mrb[20].mxu0 %v8037_v59 }
 0x1bc   : > { %1989 = vmatprep.mubr.bf16.mxu0 %v8041_v63 }
 0x1bd   : > { %2352 = vmatmul.mubr.bf16.gmra.mrb[20].mxu1 %v8027_v39 }
 0x1be   : > { %2359 = vmatprep.mubr.bf16.mxu1 %v8032_v48 }
 0x1c3   : > { %1990 = vmatmul.mubr.bf16.gmra.mrb[24].mxu0 %v8046_v13 }
 0x1c4   : > { %1997 = vmatprep.mubr.bf16.mxu0 %v8050_v17 }
 0x1c5   : > { %2360 = vmatmul.mubr.bf16.gmra.mrb[24].mxu1 %v8037_v59 }
 0x1c6   : > { %2367 = vmatprep.mubr.bf16.mxu1 %v8041_v63 }
 0x1cb   : > { %1998 = vmatmul.mubr.bf16.gmra.mrb[28].mxu0 %v8058_v26 }
 0x1cc   : > { %2005 = vmatprep.mubr.bf16.mxu0 %v8062_v28 }
 0x1cd   : > { %2368 = vmatmul.mubr.bf16.gmra.mrb[28].mxu1 %v8046_v13 }
 0x1ce   : > { %2375 = vmatprep.mubr.bf16.mxu1 %v8050_v17 }
 0x1d3   : > { %2006 = vmatmul.mubr.bf16.gmra.mrb[32].mxu0 %v8067_v35 }
 0x1d4   : > { %2013 = vmatprep.mubr.bf16.mxu0 %v8071_v38 }
 0x1d5   : > { %2376 = vmatmul.mubr.bf16.gmra.mrb[32].mxu1 %v8058_v26 }
 0x1d6   : > { %2383 = vmatprep.mubr.bf16.mxu1 %v8062_v28 }
 0x1db   : > { %2014 = vmatmul.mubr.bf16.gmra.mrb[36].mxu0 %v8076_v46 }
 0x1dc   : > { %6287 = vmatprep.mubr.bf16.mxu0 %v1552_v51 }
 0x1dd   : > { %2384 = vmatmul.mubr.bf16.gmra.mrb[36].mxu1 %v8067_v35 }
 0x1de   : > { %6323 = vmatprep.mubr.bf16.mxu1 %v1549_v56  ;;  %v1571_v56 = vrot.slane %v6903_v47, 1 }
 0x1e0   : > { %v1573_v5 = vsel %vm1546_vm10, %v1571_v56, %v1572_v57 }
 0x1e3   : > { %6288 = vmatmul.mubr.bf16.vlgmr.msra.gmra.mrb[40].mxu0 %v8084_v4 }
 0x1e4   : > { %5938 = vmatpush3.bf16.msra.mxu0 %v6880_v60  ;;  %6291 = vmatprep.mubr.bf16.mxu0 %v8087_v7  ;;  %v6908_v60 = vld [vmem:[#allocation11 + $0x1f0] sm:$0xff]  }
 0x1e5   : > { %5939 = vmatprep.subr.bf16.mxu0 %v6881_v6  ;;  %6324 = vmatmul.mubr.bf16.vlgmr.msra.gmra.mrb[40].mxu1 %v1552_v51  ;;  %v6905_v51 = vld [vmem:[#allocation11 + $0x1e8] sm:$0xff]   ;;  %v6912_v6 = vld [vmem:[#allocation11 + $0x1b0] sm:$0xff]  }
 0x1e6   : > { %6327 = vmatprep.mubr.bf16.mxu1 %v8084_v4  ;;  %6344 = vmatpush3.bf16.msra.mxu1 %v8053_v22  ;;  %v6900_v22 = vld [vmem:[#allocation11 + $0x218] sm:$0xff]  }
 0x1e7   : > { %6345 = vmatprep.subr.bf16.mxu1 %v6890_v20 }
 0x1e8   : > { %5940 = vmatpush3.bf16.msra.mxu0 %v6882_v8  ;;  %v6913_v8 = vld [vmem:[#allocation2 + $0x78] sm:$0xfe]  }
 0x1e9   : > { %5941 = vmatprep.subr.bf16.mxu0 %v6887_v14  ;;  %v6916_v14 = vld [vmem:[#allocation11 + $0x1f8] sm:$0xff]   ;;  %v1577_v18 = vrot.slane %v6913_v8, 1 }
 0x1ea   : > { %6346 = vmatpush3.bf16.msra.mxu1 %v6890_v20  ;;  %v6917_v20 = vld [vmem:[#allocation11 + $0x1b8] sm:$0xff]  }
 0x1eb   : > { %6292 = vmatmul.mubr.bf16.gmra.mrb[44].mxu0 %v8092_v27  ;;  %6347 = vmatprep.subr.bf16.mxu1 %v6897_v33 }
 0x1ec   : > { %5942 = vmatpush3.bf16.msra.mxu0 %v6889_v19  ;;  %6295 = vmatprep.mubr.bf16.mxu0 %v8097_v31  ;;  %v1578_v19 = vrot.slane %v6914_v9, 1 }
 0x1ed   : > { %5943 = vmatprep.subr.bf16.mxu0 %v6893_v24  ;;  %6328 = vmatmul.mubr.bf16.gmra.mrb[44].mxu1 %v8087_v7 }
 0x1ee   : > { %6331 = vmatprep.mubr.bf16.mxu1 %v8092_v27  ;;  %6348 = vmatpush3.bf16.msra.mxu1 %v6897_v33  ;;  %v1579_v24 = vsel %vm1546_vm10, %v1577_v18, %v1578_v19 }
 0x1ef   : > { %6349 = vmatprep.subr.bf16.mxu1 %v6900_v22 }
 0x1f0   : > { %5944 = vmatpush3.bf16.msra.mxu0 %v6896_v11 }
 0x1f1   : > { %5945 = vmatprep.subr.bf16.mxu0 %v6898_v41 }
 0x1f2   : > { %6350 = vmatpush3.bf16.msra.mxu1 %v6900_v22 }
 0x1f3   : > { %6296 = vmatmul.mubr.bf16.gmra.mrb[48].mxu0 %v8103_v44  ;;  %6351 = vmatprep.subr.bf16.mxu1 %v6907_v55 }
 0x1f4   : > { %5946 = vmatpush3.bf16.msra.mxu0 %v6899_v45  ;;  %6299 = vmatprep.mubr.bf16.mxu0 %v1570_v50 }
 0x1f5   : > { %5947 = vmatprep.subr.bf16.mxu0 %v6905_v51  ;;  %6332 = vmatmul.mubr.bf16.gmra.mrb[48].mxu1 %v8097_v31 }
 0x1f6   : > { %6335 = vmatprep.mubr.bf16.mxu1 %v8103_v44  ;;  %6352 = vmatpush3.bf16.msra.mxu1 %v6907_v55 }
 0x1f7   : > { %6353 = vmatprep.subr.bf16.mxu1 %v6909_v3 }
 0x1f8   : > { %5948 = vmatpush3.bf16.msra.mxu0 %v6906_v58 }
 0x1f9   : > { %5949 = vmatprep.subr.bf16.mxu0 %v6908_v60 }
 0x1fa   : > { %6354 = vmatpush3.bf16.msra.mxu1 %v6909_v3 }
 0x1fb   : > { %6300 = vmatmul.mubr.bf16.gmra.mrb[52].mxu0 %v1573_v5  ;;  %6355 = vmatprep.subr.bf16.mxu1 %v6915_v15 }
 0x1fc   : > { %6303 = vmatprep.mubr.bf16.mxu0 %v1576_v12  ;;  %5950 = vmatpush3.bf16.msra.mxu0 %v6912_v6 }
 0x1fd   : > { %5951 = vmatprep.subr.bf16.mxu0 %v6916_v14  ;;  %6336 = vmatmul.mubr.bf16.gmra.mrb[52].mxu1 %v1570_v50 }
 0x1fe   : > { %6339 = vmatprep.mubr.bf16.mxu1 %v1573_v5  ;;  %6356 = vmatpush3.bf16.msra.mxu1 %v6915_v15 }
 0x1ff   : > { %6357 = vmatprep.subr.bf16.mxu1 %v6918_v23 }
 0x200   : > { %5952 = vmatpush3.bf16.msra.mxu0 %v6917_v20 }
 0x202   : > { %6358 = vmatpush3.bf16.msra.mxu1 %v6918_v23 }
 0x203   : > { %6304 = vmatmul.mubr.bf16.gmra.mrb[56].mxu0 %v1579_v24 }
 0x204   : > { %2761 = vmatprep.mubr.bf16.mxu0 %v8002_v1  ;;  %v6920_v1 = vld [vmem:[#allocation2 + $0x8c] ss:$0 sps:$4 sm:$0x11]  }
 0x205   : > { %6340 = vmatmul.mubr.bf16.gmra.mrb[56].mxu1 %v1576_v12 }
 0x206   : > { %6359 = vmatprep.mubr.bf16.mxu1 %v8084_v4 }
 0x20b   : > { %2762 = vmatmul.mubr.bf16.vlgmr.msra.gmra.mrb[60].mxu0 %v7999_v54  ;;  %v6919_v54 = vld [vmem:[#allocation2 + $0x84] sm:$0xfe]  }
 0x20c   : > { %2769 = vmatprep.mubr.bf16.mxu0 %v8007_v10  ;;  %v1580_v10 = vrot.slane %v6919_v54, 1 }
 0x20d   : > { %6360 = vmatmul.mubr.bf16.vlgmr.msra.gmra.mrb[40].mxu1 %v8087_v7 }
 0x20e   : > { %6363 = vmatprep.mubr.bf16.mxu1 %v8092_v27 }
 0x213   : > { %2770 = vmatmul.mubr.bf16.gmra.mrb[64].mxu0 %v8010_v16  ;;  %v1581_v16 = vrot.slane %v6920_v1, 1 }
 0x214   : > { %2777 = vmatprep.mubr.bf16.mxu0 %v8014_v21 }
 0x215   : > { %6364 = vmatmul.mubr.bf16.gmra.mrb[44].mxu1 %v8097_v31  ;;  %v1582_v21 = vsel %vm1546_vm10, %v1580_v10, %v1581_v16 }
 0x216   : > { %6367 = vmatprep.mubr.bf16.mxu1 %v8103_v44 }
 0x21b   : > { %2778 = vmatmul.mubr.bf16.gmra.mrb[68].mxu0 %v8019_v30  ;;  %v6921_v30 = vld [vmem:[#allocation2 + $0x84] sm:$0xff]  }
 0x21c   : > { %2785 = vmatprep.mubr.bf16.mxu0 %v8023_v34  ;;  %v6922_v34 = vld [vmem:[#allocation2 + $0x8c] ss:$0 sps:$4 sm:$0x11]  }
 0x21d   : > { %6368 = vmatmul.mubr.bf16.gmra.mrb[48].mxu1 %v1570_v50  ;;  %v1386_v7 = vshll.u32 %v6922_v34, 16 }
 0x21e   : > { %6371 = vmatprep.mubr.bf16.mxu1 %v1573_v5 }
 0x223   : > { %2786 = vmatmul.mubr.bf16.gmra.mrb[72].mxu0 %v8027_v39  ;;  %v1381_v39 = vshll.u32 %v6921_v30, 16 }
 0x224   : > { %2793 = vmatprep.mubr.bf16.mxu0 %v8032_v48  ;;  %v1379_v48 = vshrl.u32 %v6921_v30, 16 }
 0x225   : > { %6372 = vmatmul.mubr.bf16.gmra.mrb[52].mxu1 %v1576_v12  ;;  %v1383_v4 = vrot.slane %v1381_v39, 1 }
 0x226   : > { %6375 = vmatprep.mubr.bf16.mxu1 %v1579_v24 }
 0x22b   : > { %2794 = vmatmul.mubr.bf16.gmra.mrb[76].mxu0 %v8037_v59  ;;  %v1384_v59 = vor.u32 %v1383_v4, %v1379_v48 }
 0x22c   : > { %2801 = vmatprep.mubr.bf16.mxu0 %v8041_v63  ;;  %v1388_v63 = vrot.slane %v1386_v7, 1 }
 0x22d   : > { %6376 = vmatmul.mubr.bf16.gmra.mrb[56].mxu1 %v1582_v21 }
 0x233   : > { %2802 = vmatmul.mubr.bf16.gmra.mrb[80].mxu0 %v8046_v13  ;;  %v1389_v13 = vsel %vm1245_vm9, %v1384_v59, %v1388_v63 }
 0x234   : > { %2809 = vmatprep.mubr.bf16.mxu0 %v8050_v17  ;;  %v6923_v17 = vld [vmem:[#allocation2 + $0x84] sm:$0xff]  }
 0x23b   : > { %2810 = vmatmul.mubr.bf16.gmra.mrb[84].mxu0 %v8058_v26 }
 0x23c   : > { %2817 = vmatprep.mubr.bf16.mxu0 %v8062_v28 }
 0x243   : > { %2818 = vmatmul.mubr.bf16.gmra.mrb[88].mxu0 %v8067_v35 }
 0x244   : > { %2825 = vmatprep.mubr.bf16.mxu0 %v8071_v38 }
 0x24b   : > { %2826 = vmatmul.mubr.bf16.gmra.mrb[92].mxu0 %v8076_v46 }
 0x24c   : > { %2833 = vmatprep.mubr.bf16.mxu0 %v1389_v13 }
 0x253   : > { %2834 = vmatmul.mubr.bf16.gmra.mrb[96].mxu0 %v6923_v17 }
 0x266   : > { %v5765_v26 = vpop.f32.mrb[0].mxu0 }
 0x267   : > { %v5766_v28 = vpop.f32.mrb[1].mxu0 }
 0x268   : > { %v8138_v25 = vadd.f32 %v5766_v28, %v5765_v26  ;;  %v5768_v27 = vpop.f32.mrb[2].mxu0  ;;  %v5859_v35 = vpop.f32.mrb[0].mxu1 }
 0x269   : > { %v5769_v29 = vpop.f32.mrb[3].mxu0  ;;  %v5860_v32 = vpop.f32.mrb[1].mxu1 }
 0x26a   : > { %v8140_v31 = vadd.f32 %v5769_v29, %v5768_v27  ;;  %v8142_v38 = vadd.f32 %v5860_v32, %v5859_v35  ;;  %v5862_v33 = vpop.f32.mrb[2].mxu1 }
 0x26b   : > { %v5863_v36 = vpop.f32.mrb[3].mxu1 }
 0x26c   : > { %v8144_v11 = vadd.f32 %v5863_v36, %v5862_v33 }
 0x26e   : > { %v5771_v37 = vpop.f32.mrb[4].mxu0 }
 0x26f   : > { %v5772_v46 = vpop.f32.mrb[5].mxu0 }
 0x270   : > { %v8146_v41 = vadd.f32 %v5772_v46, %v5771_v37  ;;  %v5774_v42 = vpop.f32.mrb[6].mxu0  ;;  %v5865_v44 = vpop.f32.mrb[4].mxu1 }
 0x271   : > { %v5775_v43 = vpop.f32.mrb[7].mxu0  ;;  %v5866_v45 = vpop.f32.mrb[5].mxu1 }
 0x272   : > { %v8148_v22 = vadd.f32 %v5775_v43, %v5774_v42  ;;  %v8150_v47 = vadd.f32 %v5866_v45, %v5865_v44  ;;  %v5868_v49 = vpop.f32.mrb[6].mxu1 }
 0x273   : > { %v5869_v50 = vpop.f32.mrb[7].mxu1 }
 0x274   : > { %v8152_v52 = vadd.f32 %v5869_v50, %v5868_v49 }
 0x276   : > { %v5777_v51 = vpop.f32.mrb[8].mxu0 }
 0x277   : > { %v5778_v53 = vpop.f32.mrb[9].mxu0 }
 0x278   : > { %v8154_v55 = vadd.f32 %v5778_v53, %v5777_v51  ;;  %v5780_v56 = vpop.f32.mrb[10].mxu0  ;;  %v5871_v60 = vpop.f32.mrb[8].mxu1 }
 0x279   : > { %v5781_v57 = vpop.f32.mrb[11].mxu0  ;;  %v5872_v61 = vpop.f32.mrb[9].mxu1 }
 0x27a   : > { %v8156_v58 = vadd.f32 %v5781_v57, %v5780_v56  ;;  %v8158_v2 = vadd.f32 %v5872_v61, %v5871_v60  ;;  %v5874_v3 = vpop.f32.mrb[10].mxu1 }
 0x27b   : > { %v5875_v5 = vpop.f32.mrb[11].mxu1 }
 0x27c   : > { %v8160_v8 = vadd.f32 %v5875_v5, %v5874_v3 }
 0x27e   : > { %v5783_v6 = vpop.f32.mrb[12].mxu0 }
 0x27f   : > { %v5784_v9 = vpop.f32.mrb[13].mxu0 }
 0x280   : > { %v8162_v12 = vadd.f32 %v5784_v9, %v5783_v6  ;;  %v5786_v14 = vpop.f32.mrb[14].mxu0  ;;  %v5877_v19 = vpop.f32.mrb[12].mxu1 }
 0x281   : > { %v5787_v15 = vpop.f32.mrb[15].mxu0  ;;  %v5878_v20 = vpop.f32.mrb[13].mxu1 }
 0x282   : > { %v8164_v18 = vadd.f32 %v5787_v15, %v5786_v14  ;;  %v8166_v23 = vadd.f32 %v5878_v20, %v5877_v19  ;;  %v5880_v24 = vpop.f32.mrb[14].mxu1 }
 0x283   : > { %v5881_v54 = vpop.f32.mrb[15].mxu1 }
 0x284   : > { %v8168_v10 = vadd.f32 %v5881_v54, %v5880_v24 }
 0x286   : > { %v5789_v1 = vpop.f32.mrb[16].mxu0 }
 0x287   : > { %v5790_v16 = vpop.f32.mrb[17].mxu0 }
 0x288   : > { %v8170_v21 = vadd.f32 %v5790_v16, %v5789_v1  ;;  %v5792_v30 = vpop.f32.mrb[18].mxu0  ;;  %v5883_v48 = vpop.f32.mrb[16].mxu1 }
 0x289   : > { %v5793_v34 = vpop.f32.mrb[19].mxu0  ;;  %v5884_v4 = vpop.f32.mrb[17].mxu1 }
 0x28a   : > { %v8172_v39 = vadd.f32 %v5793_v34, %v5792_v30  ;;  %v8174_v7 = vadd.f32 %v5884_v4, %v5883_v48  ;;  %v5886_v59 = vpop.f32.mrb[18].mxu1 }
 0x28b   : > { %v5887_v63 = vpop.f32.mrb[19].mxu1 }
 0x28c   : > { %v8176_v17 = vadd.f32 %v5887_v63, %v5886_v59 }
 0x28e   : > { %v5795_v13 = vpop.f32.mrb[20].mxu0 }
 0x28f   : > { %v5796_v26 = vpop.f32.mrb[21].mxu0 }
 0x290   : > { %v8178_v28 = vadd.f32 %v5796_v26, %v5795_v13  ;;  %v5798_v27 = vpop.f32.mrb[22].mxu0  ;;  %v5889_v32 = vpop.f32.mrb[20].mxu1 }
 0x291   : > { %v5799_v29 = vpop.f32.mrb[23].mxu0  ;;  %v5890_v33 = vpop.f32.mrb[21].mxu1 }
 0x292   : > { %v8180_v35 = vadd.f32 %v5799_v29, %v5798_v27  ;;  %v8182_v36 = vadd.f32 %v5890_v33, %v5889_v32  ;;  %v5892_v37 = vpop.f32.mrb[22].mxu1 }
 0x293   : > { %v5893_v46 = vpop.f32.mrb[23].mxu1 }
 0x294   : > { %v8184_v43 = vadd.f32 %v5893_v46, %v5892_v37 }
 0x296   : > { %v5801_v42 = vpop.f32.mrb[24].mxu0 }
 0x297   : > { %v5802_v44 = vpop.f32.mrb[25].mxu0 }
 0x298   : > { %v8186_v45 = vadd.f32 %v5802_v44, %v5801_v42  ;;  %v5804_v49 = vpop.f32.mrb[26].mxu0  ;;  %v5895_v53 = vpop.f32.mrb[24].mxu1 }
 0x299   : > { %v5805_v50 = vpop.f32.mrb[27].mxu0  ;;  %v5896_v56 = vpop.f32.mrb[25].mxu1 }
 0x29a   : > { %v8188_v51 = vadd.f32 %v5805_v50, %v5804_v49  ;;  %v8190_v57 = vadd.f32 %v5896_v56, %v5895_v53  ;;  %v5898_v60 = vpop.f32.mrb[26].mxu1 }
 0x29b   : > { %v5899_v61 = vpop.f32.mrb[27].mxu1 }
 0x29c   : > { %v8192_v5 = vadd.f32 %v5899_v61, %v5898_v60 }
 0x29e   : > { %v5807_v3 = vpop.f32.mrb[28].mxu0 }
 0x29f   : > { %v5808_v6 = vpop.f32.mrb[29].mxu0 }
 0x2a0   : > { %v8194_v9 = vadd.f32 %v5808_v6, %v5807_v3  ;;  %v5810_v14 = vpop.f32.mrb[30].mxu0  ;;  %v5901_v20 = vpop.f32.mrb[28].mxu1 }
 0x2a1   : > { %v5811_v15 = vpop.f32.mrb[31].mxu0  ;;  %v5902_v24 = vpop.f32.mrb[29].mxu1 }
 0x2a2   : > { %v8196_v19 = vadd.f32 %v5811_v15, %v5810_v14  ;;  %v8198_v54 = vadd.f32 %v5902_v24, %v5901_v20  ;;  %v5904_v1 = vpop.f32.mrb[30].mxu1 }
 0x2a3   : > { %v5905_v16 = vpop.f32.mrb[31].mxu1 }
 0x2a4   : > { %v8200_v34 = vadd.f32 %v5905_v16, %v5904_v1 }
 0x2a6   : > { %v5813_v30 = vpop.f32.mrb[32].mxu0 }
 0x2a7   : > { %v5814_v48 = vpop.f32.mrb[33].mxu0 }
 0x2a8   : > { %v8202_v4 = vadd.f32 %v5814_v48, %v5813_v30  ;;  %v5816_v59 = vpop.f32.mrb[34].mxu0  ;;  %v5907_v26 = vpop.f32.mrb[32].mxu1 }
 0x2a9   : > { %v5817_v63 = vpop.f32.mrb[35].mxu0  ;;  %v5908_v27 = vpop.f32.mrb[33].mxu1 }
 0x2aa   : > { %v8204_v13 = vadd.f32 %v5817_v63, %v5816_v59  ;;  %v8206_v29 = vadd.f32 %v5908_v27, %v5907_v26  ;;  %v5910_v32 = vpop.f32.mrb[34].mxu1 }
 0x2ab   : > { %v5911_v33 = vpop.f32.mrb[35].mxu1 }
 0x2ac   : > { %v8208_v46 = vadd.f32 %v5911_v33, %v5910_v32 }
 0x2ae   : > { %v5819_v37 = vpop.f32.mrb[36].mxu0 }
 0x2af   : > { %v5820_v42 = vpop.f32.mrb[37].mxu0 }
 0x2b0   : > { %v5821_v44 = vadd.f32 %v5820_v42, %v5819_v37  ;;  %v5822_v49 = vpop.f32.mrb[38].mxu0  ;;  %v5913_v56 = vpop.f32.mrb[36].mxu1 }
 0x2b1   : > { %v5823_v50 = vpop.f32.mrb[39].mxu0  ;;  %v5914_v60 = vpop.f32.mrb[37].mxu1 }
 0x2b2   : > { %v5824_v53 = vadd.f32 %v5823_v50, %v5822_v49  ;;  %v5915_v61 = vadd.f32 %v5914_v60, %v5913_v56  ;;  %v5916_v3 = vpop.f32.mrb[38].mxu1 }
 0x2b3   : > { %v5917_v6 = vpop.f32.mrb[39].mxu1 }
 0x2b4   : > { %v5918_v15 = vadd.f32 %v5917_v6, %v5916_v3 }
 0x2b6   : > { %v6289_v14 = vpop.f32.mrb[40].mxu0 }
 0x2b7   : > { %v2065_v20 = vadd.f32 %v6289_v14, %v8146_v41  ;;  %v2056_v24 = vpop.f32.mrb[41].mxu0 }
 0x2b8   : > { %v2057_v1 = vadd.f32 %v8138_v25, %v2056_v24  ;;  %v6290_v16 = vpop.f32.mrb[42].mxu0 }
 0x2b9   : > { %v8213_v30 = vadd.f32 %v8150_v47, %v2065_v20  ;;  %v2068_v48 = vadd.f32 %v6290_v16, %v8148_v22  ;;  %v2059_v59 = vpop.f32.mrb[43].mxu0 }
 0x2ba   : > { %v2314_v63 = vadd.f32 %v8142_v38, %v2057_v1  ;;  %v2060_v26 = vadd.f32 %v8140_v31, %v2059_v59 }
 0x2bb   : > { %v8219_v27 = vadd.f32 %v8152_v52, %v2068_v48 }
 0x2bc   : > { %v2317_v32 = vadd.f32 %v8144_v11, %v2060_v26 }
 0x2be   : > { %v6293_v41 = vpop.f32.mrb[44].mxu0 }
 0x2bf   : > { %v2081_v33 = vadd.f32 %v6293_v41, %v8162_v12  ;;  %v2072_v25 = vpop.f32.mrb[45].mxu0 }
 0x2c0   : > { %v2073_v37 = vadd.f32 %v8154_v55, %v2072_v25  ;;  %v6294_v47 = vpop.f32.mrb[46].mxu0 }
 0x2c1   : > { %v8225_v42 = vadd.f32 %v8166_v23, %v2081_v33  ;;  %v2084_v22 = vadd.f32 %v6294_v47, %v8164_v18  ;;  %v2075_v38 = vpop.f32.mrb[47].mxu0  ;;  %v8282_v47 = vld [vmem:[#allocation13] ss:$0 sm:$0xff] }
 0x2c2   : > { %v8229_v31 = vadd.f32 %v8158_v2, %v2073_v37  ;;  %v2076_v52 = vadd.f32 %v8156_v58, %v2075_v38 }
 0x2c3   : > { %v8233_v11 = vadd.f32 %v8168_v10, %v2084_v22 }
 0x2c4   : > { %v8236_v12 = vadd.f32 %v8160_v8, %v2076_v52 }
 0x2c6   : > { %v6297_v49 = vpop.f32.mrb[48].mxu0 }
 0x2c7   : > { %v2097_v55 = vadd.f32 %v6297_v49, %v8178_v28  ;;  %v2088_v50 = vpop.f32.mrb[49].mxu0 }
 0x2c8   : > { %v2089_v23 = vadd.f32 %v8170_v21, %v2088_v50  ;;  %v6298_v56 = vpop.f32.mrb[50].mxu0 }
 0x2c9   : > { %v8241_v18 = vadd.f32 %v8182_v36, %v2097_v55  ;;  %v2100_v2 = vadd.f32 %v6298_v56, %v8180_v35  ;;  %v2091_v60 = vpop.f32.mrb[51].mxu0 }
 0x2ca   : > { %v8245_v58 = vadd.f32 %v8174_v7, %v2089_v23  ;;  %v2092_v10 = vadd.f32 %v8172_v39, %v2091_v60 }
 0x2cb   : > { %v8249_v8 = vadd.f32 %v8184_v43, %v2100_v2 }
 0x2cc   : > { %v8252_v28 = vadd.f32 %v8176_v17, %v2092_v10 }
 0x2ce   : > { %v6301_v3 = vpop.f32.mrb[52].mxu0 }
 0x2cf   : > { %v2113_v21 = vadd.f32 %v6301_v3, %v8194_v9  ;;  %v2104_v6 = vpop.f32.mrb[53].mxu0 }
 0x2d0   : > { %v2105_v36 = vadd.f32 %v8186_v45, %v2104_v6  ;;  %v6302_v14 = vpop.f32.mrb[54].mxu0 }
 0x2d1   : > { %v8257_v35 = vadd.f32 %v8198_v54, %v2113_v21  ;;  %v2116_v7 = vadd.f32 %v6302_v14, %v8196_v19  ;;  %v2107_v20 = vpop.f32.mrb[55].mxu0 }
 0x2d2   : > { %v8261_v39 = vadd.f32 %v8190_v57, %v2105_v36  ;;  %v2108_v43 = vadd.f32 %v8188_v51, %v2107_v20 }
 0x2d3   : > { %v8265_v17 = vadd.f32 %v8200_v34, %v2116_v7 }
 0x2d4   : > { %v8268_v9 = vadd.f32 %v8192_v5, %v2108_v43 }
 0x2d6   : > { %v6305_v24 = vpop.f32.mrb[56].mxu0 }
 0x2d7   : > { %v2129_v45 = vadd.f32 %v6305_v24, %v5821_v44  ;;  %v2120_v1 = vpop.f32.mrb[57].mxu0 }
 0x2d8   : > { %v2121_v54 = vadd.f32 %v8202_v4, %v2120_v1  ;;  %v6306_v16 = vpop.f32.mrb[58].mxu0 }
 0x2d9   : > { %v8271_v48 = vadd.f32 %v5915_v61, %v2129_v45  ;;  %v2132_v19 = vadd.f32 %v6306_v16, %v5824_v53  ;;  %v2123_v59 = vpop.f32.mrb[59].mxu0 }
 0x2da   : > { %v8274_v57 = vadd.f32 %v8206_v29, %v2121_v54  ;;  %v2124_v51 = vadd.f32 %v8204_v13, %v2123_v59 }
 0x2db   : > { %v8277_v34 = vadd.f32 %v5918_v15, %v2132_v19  ;;  %v3282_v19 = vld [vmem:[#allocation4] sm:$0xf] }
 0x2dc   : > { %v8280_v5 = vadd.f32 %v8208_v46, %v2124_v51 }
 0x2de   : > { %v5953_v26 = vpop.f32.mrb[60].mxu0 }
 0x2df   : > { %v5954_v44 = vpop.f32.mrb[61].mxu0 }
 0x2e0   : > { %v5955_v41 = vadd.f32 %v5954_v44, %v5953_v26  ;;  %v5956_v33 = vpop.f32.mrb[62].mxu0  ;;  %v6361_v25 = vpop.f32.mrb[40].mxu1 }
 0x2e1   : > { %v5957_v4 = vpop.f32.mrb[63].mxu0  ;;  %v2876_v53 = vpop.f32.mrb[41].mxu1 }
 0x2e2   : > { %v5958_v61 = vadd.f32 %v5957_v4, %v5956_v33  ;;  %v6481_v37 = vadd.f32 %v5955_v41, %v2314_v63  ;;  %v6362_v22 = vpop.f32.mrb[42].mxu1 }
 0x2e3   : > { %v2879_v13 = vpop.f32.mrb[43].mxu1 }
 0x2e4   : > { %v6482_v29 = vadd.f32 %v6481_v37, %v2876_v53  ;;  %v6489_v38 = vadd.f32 %v5958_v61, %v2317_v32 }
 0x2e6   : > { %v2982_v15 = vadd.f32 %v6482_v29, %v8282_v47  ;;  %v6490_v52 = vadd.f32 %v6489_v38, %v2879_v13  ;;  %v5959_v46 = vpop.f32.mrb[64].mxu0 }
 0x2e7   : > { %v5960_v49 = vpop.f32.mrb[65].mxu0 }
 0x2e8   : > { %v3002_v55 = vmax.f32 %v2982_v15, 0.0  ;;  %v2983_v50 = vadd.f32 %v6490_v52, %v8282_v47  ;;  %v5961_v23 = vadd.f32 %v5960_v49, %v5959_v46  ;;  %v5962_v56 = vpop.f32.mrb[66].mxu0  ;;  %v8287_v3 = vpop.f32.mrb[44].mxu1 }
 0x2e9   : > { %v5963_v2 = vpop.f32.mrb[67].mxu0  ;;  %v2892_v32 = vpop.f32.mrb[45].mxu1 }
 0x2ea   : > { %v5728_v60 = vpack.c.bf16 %v3002_v55, %v3002_v55  ;;  %v3003_v63 = vmax.f32 %v2983_v50, 0.0  ;;  %v6477_v10 = vadd.f32 %v5961_v23, %v8213_v30  ;;  %v5964_v21 = vadd.f32 %v5963_v2, %v5962_v56  ;;  %v8289_v7 = vpop.f32.mrb[46].mxu1 }
 0x2eb   : > { %v2895_v43 = vpop.f32.mrb[47].mxu1 }
 0x2ec   : > { %v3083_v6 = vshrl.u32 %v5728_v60, 16  ;;  %v5729_v36 = vpack.c.bf16 %v3003_v63, %v3003_v63  ;;  %v6478_v14 = vadd.f32 %v6477_v10, %v6361_v25  ;;  %v6485_v20 = vadd.f32 %v5964_v21, %v8219_v27  ;;  %v3286_v25 = vld [vmem:[#allocation4 + $0x8] sm:$0x1] }
 0x2ed   : > { %v3086_v45 = vshll.u32 %v5728_v60, 16 }
 0x2ee   : > { %v3085_v24 = vrot.slane %v3083_v6, 7  ;;  %v3091_v1 = vshrl.u32 %v5729_v36, 16  ;;  %v2984_v54 = vadd.f32 %v6478_v14, %v8282_v47  ;;  %v5965_v16 = vpop.f32.mrb[68].mxu0  ;;  %v6486_v30 = vadd.f32 %v6485_v20, %v6362_v22 }
 0x2ef   : > { %v5966_v59 = vpop.f32.mrb[69].mxu0  ;;  %v3094_v44 = vshll.u32 %v5729_v36, 16  ;;  %v3289_v36 = vld [vmem:[#allocation4 + $0xc] sm:$0xf] }
 0x2f0   : > { %v3088_v51 = vor.u32 %v3086_v45, %v3085_v24  ;;  %v3093_v26 = vrot.slane %v3091_v1, 7  ;;  %v3004_v41 = vmax.f32 %v2984_v54, 0.0  ;;  %v5968_v33 = vpop.f32.mrb[70].mxu0  ;;  %v3089_v4 = vrot.slane %v3085_v24, 4  ;;  %v8296_v15 = vpop.f32.mrb[48].mxu1 }
 0x2f1   : > { %v2985_v61 = vadd.f32 %v6486_v30, %v8282_v47  ;;  %v5967_v27 = vadd.f32 %v5966_v59, %v5965_v16  ;;  %v5969_v37 = vpop.f32.mrb[71].mxu0  ;;  %v8299_v49 = vpop.f32.mrb[49].mxu1 }
 0x2f2   : > { %v3283_v53 = vsel %vm7874_vm7, %v3088_v51, %v3282_v19  ;;  %v3096_v29 = vor.u32 %v3094_v44, %v3093_v26  ;;  %v3098_v38 = vrot.slane %v3093_v26, 4  ;;  %v5730_v13 = vpack.c.bf16 %v3004_v41, %v3004_v41  ;;  %v8305_v56 = vpop.f32.mrb[50].mxu1  ;;  %v3293_v44 = vld [vmem:[#allocation4 + $0x14] sm:$0x1] }
 0x2f3   : > { %3284 = vst [vmem:[#allocation4] sm:$0xf] %v3283_v53  ;;  %v3005_v22 = vmax.f32 %v2985_v61, 0.0  ;;  %v6497_v52 = vadd.f32 %v5967_v27, %v8229_v31  ;;  %v5970_v46 = vadd.f32 %v5969_v37, %v5968_v33  ;;  %v8308_v10 = vpop.f32.mrb[51].mxu1 }
 0x2f4   : > { %v3097_v55 = vsel %vm7884_vm8, %v3089_v4, %v3096_v29  ;;  %v3287_v50 = vsel %vm7688_vm2, %v3098_v38, %v3286_v25  ;;  %v3100_v23 = vshrl.u32 %v5730_v13, 16  ;;  %v3103_v21 = vshll.u32 %v5730_v13, 16 }
 0x2f5   : > { %3285 = vst [vmem:[#allocation4 + $0x4] sm:$0xf] %v3097_v55  ;;  %3288 = vst [vmem:[#allocation4 + $0x8] sm:$0x1] %v3287_v50  ;;  %v5731_v2 = vpack.c.bf16 %v3005_v22, %v3005_v22  ;;  %v6498_v60 = vadd.f32 %v6497_v52, %v2892_v32  ;;  %v6505_v63 = vadd.f32 %v5970_v46, %v8236_v12 }
 0x2f6   : > { %v3102_v31 = vrot.slane %v3100_v23, 7  ;;  %v5971_v6 = vpop.f32.mrb[72].mxu0 }
 0x2f7   : > { %v3108_v14 = vshrl.u32 %v5731_v2, 16  ;;  %v2986_v20 = vadd.f32 %v6498_v60, %v8282_v47  ;;  %v6506_v24 = vadd.f32 %v6505_v63, %v2895_v43  ;;  %v5972_v45 = vpop.f32.mrb[73].mxu0  ;;  %v3111_v30 = vshll.u32 %v5731_v2, 16  ;;  %v3296_v60 = vld [vmem:[#allocation4 + $0x18] sm:$0xf] }
 0x2f8   : > { %v3105_v1 = vor.u32 %v3103_v21, %v3102_v31  ;;  %v5973_v54 = vadd.f32 %v5972_v45, %v5971_v6  ;;  %v5974_v16 = vpop.f32.mrb[74].mxu0  ;;  %v3106_v51 = vrot.slane %v3102_v31, 4  ;;  %v8315_v33 = vpop.f32.mrb[52].mxu1 }
 0x2f9   : > { %v3110_v19 = vrot.slane %v3108_v14, 7  ;;  %v3006_v59 = vmax.f32 %v2986_v20, 0.0  ;;  %v2987_v32 = vadd.f32 %v6506_v24, %v8282_v47  ;;  %v5975_v12 = vpop.f32.mrb[75].mxu0  ;;  %v8317_v37 = vpop.f32.mrb[53].mxu1 }
 0x2fa   : > { %v3290_v26 = vsel %vm7874_vm7, %v3105_v1, %v3289_v36  ;;  %v6493_v41 = vadd.f32 %v5973_v54, %v8225_v42  ;;  %v5976_v43 = vadd.f32 %v5975_v12, %v5974_v16  ;;  %v8321_v38 = vpop.f32.mrb[54].mxu1 }
 0x2fb   : > { %3291 = vst [vmem:[#allocation4 + $0xc] sm:$0xf] %v3290_v26  ;;  %v3113_v4 = vor.u32 %v3111_v30, %v3110_v19  ;;  %v3115_v25 = vrot.slane %v3110_v19, 4  ;;  %v5732_v61 = vpack.c.bf16 %v3006_v59, %v3006_v59  ;;  %v3007_v27 = vmax.f32 %v2987_v32, 0.0  ;;  %v8327_v52 = vpop.f32.mrb[55].mxu1 }
 0x2fc   : > { %v6494_v53 = vadd.f32 %v6493_v41, %v8287_v3  ;;  %v6501_v29 = vadd.f32 %v5976_v43, %v8233_v11  ;;  %v3300_v30 = vld [vmem:[#allocation4 + $0x20] sm:$0x1] }
 0x2fd   : > { %v3114_v13 = vsel %vm7884_vm8, %v3106_v51, %v3113_v4  ;;  %v3294_v42 = vsel %vm7688_vm2, %v3115_v25, %v3293_v44  ;;  %v3117_v22 = vshrl.u32 %v5732_v61, 16  ;;  %v5733_v46 = vpack.c.bf16 %v3007_v27, %v3007_v27 }
 0x2fe   : > { %3292 = vst [vmem:[#allocation4 + $0x10] sm:$0xf] %v3114_v13  ;;  %3295 = vst [vmem:[#allocation4 + $0x14] sm:$0x1] %v3294_v42  ;;  %v2988_v55 = vadd.f32 %v6494_v53, %v8282_v47  ;;  %v6502_v3 = vadd.f32 %v6501_v29, %v8289_v7  ;;  %v5977_v50 = vpop.f32.mrb[76].mxu0  ;;  %v3120_v23 = vshll.u32 %v5732_v61, 16 }
 0x2ff   : > { %v3119_v11 = vrot.slane %v3117_v22, 7  ;;  %v5978_v2 = vpop.f32.mrb[77].mxu0  ;;  %v3125_v63 = vshrl.u32 %v5733_v46, 16  ;;  %v3128_v14 = vshll.u32 %v5733_v46, 16  ;;  %v3303_v42 = vld [vmem:[#allocation4 + $0x24] sm:$0xf] }
 0x300   : > { %v3008_v31 = vmax.f32 %v2988_v55, 0.0  ;;  %v2989_v21 = vadd.f32 %v6502_v3, %v8282_v47  ;;  %v5980_v6 = vpop.f32.mrb[78].mxu0  ;;  %v5979_v20 = vadd.f32 %v5978_v2, %v5977_v50  ;;  %v8332_v16 = vpop.f32.mrb[56].mxu1 }
 0x301   : > { %v3122_v36 = vor.u32 %v3120_v23, %v3119_v11  ;;  %v5981_v24 = vpop.f32.mrb[79].mxu0  ;;  %v3127_v45 = vrot.slane %v3125_v63, 7  ;;  %v8337_v32 = vpop.f32.mrb[57].mxu1  ;;  %v3123_v12 = vrot.slane %v3119_v11, 4 }
 0x302   : > { %v5734_v1 = vpack.c.bf16 %v3008_v31, %v3008_v31  ;;  %v3009_v54 = vmax.f32 %v2989_v21, 0.0  ;;  %v5982_v7 = vadd.f32 %v5981_v24, %v5980_v6  ;;  %v6513_v59 = vadd.f32 %v5979_v20, %v8245_v58  ;;  %v8339_v41 = vpop.f32.mrb[58].mxu1  ;;  %v3307_v6 = vld [vmem:[#allocation4 + $0x2c] sm:$0x1] }
 0x303   : > { %v3297_v19 = vsel %vm7874_vm7, %v3122_v36, %v3296_v60  ;;  %v3130_v51 = vor.u32 %v3128_v14, %v3127_v45  ;;  %v3132_v26 = vrot.slane %v3127_v45, 4  ;;  %v8343_v61 = vpop.f32.mrb[59].mxu1 }
 0x304   : > { %3298 = vst [vmem:[#allocation4 + $0x18] sm:$0xf] %v3297_v19  ;;  %v3134_v44 = vshrl.u32 %v5734_v1, 16  ;;  %v5735_v43 = vpack.c.bf16 %v3009_v54, %v3009_v54  ;;  %v6514_v4 = vadd.f32 %v6513_v59, %v8299_v49  ;;  %v6521_v25 = vadd.f32 %v5982_v7, %v8252_v28 }
 0x305   : > { %v3131_v27 = vsel %vm7884_vm8, %v3123_v12, %v3130_v51  ;;  %v3301_v58 = vsel %vm7688_vm2, %v3132_v26, %v3300_v30  ;;  %v3137_v29 = vshll.u32 %v5734_v1, 16 }
 0x306   : > { %v3136_v53 = vrot.slane %v3134_v44, 7  ;;  %v5983_v13 = vpop.f32.mrb[80].mxu0  ;;  %3299 = vst [vmem:[#allocation4 + $0x1c] sm:$0xf] %v3131_v27  ;;  %3302 = vst [vmem:[#allocation4 + $0x20] sm:$0x1] %v3301_v58  ;;  %v2990_v46 = vadd.f32 %v6514_v4, %v8282_v47  ;;  %v6522_v49 = vadd.f32 %v6521_v25, %v8308_v10 }
 0x307   : > { %v3142_v22 = vshrl.u32 %v5735_v43, 16  ;;  %v5984_v28 = vpop.f32.mrb[81].mxu0  ;;  %v3145_v23 = vshll.u32 %v5735_v43, 16  ;;  %v3310_v43 = vld [vmem:[#allocation4 + $0x30] sm:$0xf] }
 0x308   : > { %v3139_v55 = vor.u32 %v3137_v29, %v3136_v53  ;;  %v5985_v3 = vadd.f32 %v5984_v28, %v5983_v13  ;;  %v5986_v50 = vpop.f32.mrb[82].mxu0  ;;  %v3010_v2 = vmax.f32 %v2990_v46, 0.0  ;;  %v2991_v60 = vadd.f32 %v6522_v49, %v8282_v47  ;;  %v3314_v28 = vld [vmem:[#allocation4 + $0x38] sm:$0x1] }
 0x309   : > { %v3144_v11 = vrot.slane %v3142_v22, 7  ;;  %v5987_v63 = vpop.f32.mrb[83].mxu0  ;;  %v3140_v31 = vrot.slane %v3136_v53, 4 }
 0x30a   : > { %v3304_v21 = vsel %vm7874_vm7, %v3139_v55, %v3303_v42  ;;  %v6509_v36 = vadd.f32 %v5985_v3, %v8241_v18  ;;  %v5988_v14 = vadd.f32 %v5987_v63, %v5986_v50  ;;  %v5736_v24 = vpack.c.bf16 %v3010_v2, %v3010_v2 }
 0x30b   : > { %3305 = vst [vmem:[#allocation4 + $0x24] sm:$0xf] %v3304_v21  ;;  %v3147_v10 = vor.u32 %v3145_v23, %v3144_v11  ;;  %v3149_v20 = vrot.slane %v3144_v11, 4  ;;  %v3011_v45 = vmax.f32 %v2991_v60, 0.0 }
 0x30c   : > { %v6510_v1 = vadd.f32 %v6509_v36, %v8296_v15  ;;  %v6517_v54 = vadd.f32 %v5988_v14, %v8249_v8  ;;  %v3151_v30 = vshrl.u32 %v5736_v24, 16  ;;  %v3154_v44 = vshll.u32 %v5736_v24, 16 }
 0x30d   : > { %v3148_v7 = vsel %vm7884_vm8, %v3140_v31, %v3147_v10  ;;  %v3308_v19 = vsel %vm7688_vm2, %v3149_v20, %v3307_v6  ;;  %v5737_v18 = vpack.c.bf16 %v3011_v45, %v3011_v45 }
 0x30e   : > { %3306 = vst [vmem:[#allocation4 + $0x28] sm:$0xf] %v3148_v7  ;;  %3309 = vst [vmem:[#allocation4 + $0x2c] sm:$0x1] %v3308_v19  ;;  %v2992_v59 = vadd.f32 %v6510_v1, %v8282_v47  ;;  %v6518_v12 = vadd.f32 %v6517_v54, %v8305_v56  ;;  %v5989_v51 = vpop.f32.mrb[84].mxu0  ;;  %v3153_v26 = vrot.slane %v3151_v30, 7 }
 0x30f   : > { %v5990_v15 = vpop.f32.mrb[85].mxu0  ;;  %v3159_v8 = vshrl.u32 %v5737_v18, 16  ;;  %v3162_v53 = vshll.u32 %v5737_v18, 16 }
 0x310   : > { %v3012_v4 = vmax.f32 %v2992_v59, 0.0  ;;  %v2993_v25 = vadd.f32 %v6518_v12, %v8282_v47  ;;  %v5992_v27 = vpop.f32.mrb[86].mxu0  ;;  %v3156_v58 = vor.u32 %v3154_v44, %v3153_v26  ;;  %v5991_v29 = vadd.f32 %v5990_v15, %v5989_v51  ;;  %v3321_v51 = vld [vmem:[#allocation4 + $0x44] sm:$0x1] }
 0x311   : > { %v5993_v13 = vpop.f32.mrb[87].mxu0  ;;  %v3161_v42 = vrot.slane %v3159_v8, 7  ;;  %v3157_v3 = vrot.slane %v3153_v26, 4 }
 0x312   : > { %v5738_v22 = vpack.c.bf16 %v3012_v4, %v3012_v4  ;;  %v3013_v46 = vmax.f32 %v2993_v25, 0.0  ;;  %v5994_v49 = vadd.f32 %v5993_v13, %v5992_v27  ;;  %v3311_v56 = vsel %vm7874_vm7, %v3156_v58, %v3310_v43 }
 0x313   : > { %v6529_v55 = vadd.f32 %v5991_v29, %v8261_v39  ;;  %3312 = vst [vmem:[#allocation4 + $0x30] sm:$0xf] %v3311_v56  ;;  %v3164_v50 = vor.u32 %v3162_v53, %v3161_v42  ;;  %v3166_v11 = vrot.slane %v3161_v42, 4  ;;  %v3317_v39 = vld [vmem:[#allocation4 + $0x3c] sm:$0xf] }
 0x314   : > { %v3168_v23 = vshrl.u32 %v5738_v22, 16  ;;  %v5739_v2 = vpack.c.bf16 %v3013_v46, %v3013_v46  ;;  %v6537_v63 = vadd.f32 %v5994_v49, %v8268_v9  ;;  %v3171_v36 = vshll.u32 %v5738_v22, 16  ;;  %v3324_v49 = vld [vmem:[#allocation4 + $0x48] sm:$0xf] }
 0x315   : > { %v6530_v60 = vadd.f32 %v6529_v55, %v8317_v37  ;;  %v3165_v31 = vsel %vm7884_vm8, %v3157_v3, %v3164_v50  ;;  %v3315_v21 = vsel %vm7688_vm2, %v3166_v11, %v3314_v28 }
 0x316   : > { %v3170_v6 = vrot.slane %v3168_v23, 7  ;;  %v5995_v14 = vpop.f32.mrb[88].mxu0  ;;  %3313 = vst [vmem:[#allocation4 + $0x34] sm:$0xf] %v3165_v31  ;;  %3316 = vst [vmem:[#allocation4 + $0x38] sm:$0x1] %v3315_v21  ;;  %v6538_v24 = vadd.f32 %v6537_v63, %v8327_v52 }
 0x317   : > { %v3176_v10 = vshrl.u32 %v5739_v2, 16  ;;  %v2994_v20 = vadd.f32 %v6530_v60, %v8282_v47  ;;  %v5996_v37 = vpop.f32.mrb[89].mxu0  ;;  %v3179_v7 = vshll.u32 %v5739_v2, 16  ;;  %v3328_v21 = vld [vmem:[#allocation4 + $0x50] sm:$0x1] }
 0x318   : > { %v3173_v45 = vor.u32 %v3171_v36, %v3170_v6  ;;  %v5997_v9 = vadd.f32 %v5996_v37, %v5995_v14  ;;  %v5998_v1 = vpop.f32.mrb[90].mxu0  ;;  %v2995_v30 = vadd.f32 %v6538_v24, %v8282_v47  ;;  %v3174_v59 = vrot.slane %v3170_v6, 4 }
 0x319   : > { %v3178_v54 = vrot.slane %v3176_v10, 7  ;;  %v3014_v19 = vmax.f32 %v2994_v20, 0.0  ;;  %v5999_v18 = vpop.f32.mrb[91].mxu0 }
 0x31a   : > { %v3318_v12 = vsel %vm7874_vm7, %v3173_v45, %v3317_v39  ;;  %v6525_v26 = vadd.f32 %v5997_v9, %v8257_v35  ;;  %v6000_v44 = vadd.f32 %v5999_v18, %v5998_v1  ;;  %v3015_v8 = vmax.f32 %v2995_v30, 0.0 }
 0x31b   : > { %3319 = vst [vmem:[#allocation4 + $0x3c] sm:$0xf] %v3318_v12  ;;  %v3181_v52 = vor.u32 %v3179_v7, %v3178_v54  ;;  %v3183_v15 = vrot.slane %v3178_v54, 4  ;;  %v5740_v43 = vpack.c.bf16 %v3014_v19, %v3014_v19 }
 0x31c   : > { %v6526_v4 = vadd.f32 %v6525_v26, %v8315_v33  ;;  %v6533_v25 = vadd.f32 %v6000_v44, %v8265_v17  ;;  %v5741_v35 = vpack.c.bf16 %v3015_v8, %v3015_v8 }
 0x31d   : > { %v3182_v27 = vsel %vm7884_vm8, %v3174_v59, %v3181_v52  ;;  %v3322_v58 = vsel %vm7688_vm2, %v3183_v15, %v3321_v51  ;;  %v3185_v53 = vshrl.u32 %v5740_v43, 16  ;;  %v3188_v46 = vshll.u32 %v5740_v43, 16 }
 0x31e   : > { %3320 = vst [vmem:[#allocation4 + $0x40] sm:$0xf] %v3182_v27  ;;  %3323 = vst [vmem:[#allocation4 + $0x44] sm:$0x1] %v3322_v58  ;;  %v2996_v29 = vadd.f32 %v6526_v4, %v8282_v47  ;;  %v6534_v13 = vadd.f32 %v6533_v25, %v8321_v38  ;;  %v6001_v42 = vpop.f32.mrb[92].mxu0  ;;  %v3193_v17 = vshrl.u32 %v5741_v35, 16 }
 0x31f   : > { %v3187_v22 = vrot.slane %v3185_v53, 7  ;;  %v6002_v33 = vpop.f32.mrb[93].mxu0  ;;  %v3196_v50 = vshll.u32 %v5741_v35, 16  ;;  %v3335_v4 = vld [vmem:[#allocation4 + $0x5c] sm:$0x1] }
 0x320   : > { %v3016_v56 = vmax.f32 %v2996_v29, 0.0  ;;  %v2997_v28 = vadd.f32 %v6534_v13, %v8282_v47  ;;  %v6004_v55 = vpop.f32.mrb[94].mxu0  ;;  %v6003_v11 = vadd.f32 %v6002_v33, %v6001_v42  ;;  %v3195_v2 = vrot.slane %v3193_v17, 7 }
 0x321   : > { %v3190_v3 = vor.u32 %v3188_v46, %v3187_v22  ;;  %v6005_v23 = vpop.f32.mrb[95].mxu0  ;;  %v3191_v36 = vrot.slane %v3187_v22, 4 }
 0x322   : > { %v5742_v60 = vpack.c.bf16 %v3016_v56, %v3016_v56  ;;  %v3017_v63 = vmax.f32 %v2997_v28, 0.0  ;;  %v6006_v31 = vadd.f32 %v6005_v23, %v6004_v55  ;;  %v6545_v6 = vadd.f32 %v6003_v11, %v8274_v57  ;;  %v3331_v57 = vld [vmem:[#allocation4 + $0x54] sm:$0xf]  ;;  %v3338_v28 = vld [vmem:[#allocation4 + $0x60] sm:$0xf] }
 0x323   : > { %v3325_v38 = vsel %vm7874_vm7, %v3190_v3, %v3324_v49  ;;  %v3198_v14 = vor.u32 %v3196_v50, %v3195_v2  ;;  %v3200_v39 = vrot.slane %v3195_v2, 4 }
 0x324   : > { %3326 = vst [vmem:[#allocation4 + $0x48] sm:$0xf] %v3325_v38  ;;  %v3202_v10 = vshrl.u32 %v5742_v60, 16  ;;  %v5743_v20 = vpack.c.bf16 %v3017_v63, %v3017_v63  ;;  %v6546_v24 = vadd.f32 %v6545_v6, %v8337_v32  ;;  %v6553_v37 = vadd.f32 %v6006_v31, %v8280_v5  ;;  %v3342_v63 = vld [vmem:[#allocation4 + $0x68] sm:$0x1] }
 0x325   : > { %v3199_v45 = vsel %vm7884_vm8, %v3191_v36, %v3198_v14  ;;  %v3329_v9 = vsel %vm7688_vm2, %v3200_v39, %v3328_v21  ;;  %v3205_v54 = vshll.u32 %v5742_v60, 16 }
 0x326   : > { %v3204_v1 = vrot.slane %v3202_v10, 7  ;;  %v6007_v7 = vpop.f32.mrb[96].mxu0  ;;  %3327 = vst [vmem:[#allocation4 + $0x4c] sm:$0xf] %v3199_v45  ;;  %3330 = vst [vmem:[#allocation4 + $0x50] sm:$0x1] %v3329_v9  ;;  %v2998_v30 = vadd.f32 %v6546_v24, %v8282_v47  ;;  %v6554_v18 = vadd.f32 %v6553_v37, %v8343_v61 }
 0x327   : > { %v3210_v19 = vshrl.u32 %v5743_v20, 16  ;;  %v6008_v32 = vpop.f32.mrb[97].mxu0  ;;  %v3213_v26 = vshll.u32 %v5743_v20, 16  ;;  %v3345_v10 = vld [vmem:[#allocation4 + $0x6c] sm:$0xf] }
 0x328   : > { %v3207_v59 = vor.u32 %v3205_v54, %v3204_v1  ;;  %v6009_v5 = vadd.f32 %v6008_v32, %v6007_v7  ;;  %v6010_v12 = vpop.f32.mrb[98].mxu0  ;;  %v3018_v44 = vmax.f32 %v2998_v30, 0.0  ;;  %v2999_v52 = vadd.f32 %v6554_v18, %v8282_v47 }
 0x329   : > { %v3212_v51 = vrot.slane %v3210_v19, 7  ;;  %v6011_v15 = vpop.f32.mrb[99].mxu0  ;;  %v3208_v43 = vrot.slane %v3204_v1, 4  ;;  %v3349_v1 = vld [vmem:[#allocation4 + $0x74] sm:$0x1]  ;;  %v7370_v18 = vmov (!%p5408_p8), 0  }
 0x32a   : > { %v3332_v8 = vsel %vm7874_vm7, %v3207_v59, %v3331_v57  ;;  %v6541_v25 = vadd.f32 %v6009_v5, %v8271_v48  ;;  %v6012_v27 = vadd.f32 %v6011_v15, %v6010_v12  ;;  %v5744_v53 = vpack.c.bf16 %v3018_v44, %v3018_v44  ;;  %3355 = vst [vmem:[#allocation4] sm:$0xf] (!%p5408_p8), %v7370_v18 }
 0x32b   : > { %3333 = vst [vmem:[#allocation4 + $0x54] sm:$0xf] %v3332_v8  ;;  %v3215_v61 = vor.u32 %v3213_v26, %v3212_v51  ;;  %v3217_v58 = vrot.slane %v3212_v51, 4  ;;  %v3019_v35 = vmax.f32 %v2999_v52, 0.0  ;;  %3356 = vst [vmem:[#allocation4 + $0x4] sm:$0xf] (!%p5408_p8), %v7370_v18 }
 0x32c   : > { %v6542_v29 = vadd.f32 %v6541_v25, %v8332_v16  ;;  %v6549_v13 = vadd.f32 %v6012_v27, %v8277_v34  ;;  %v3219_v46 = vshrl.u32 %v5744_v53, 16  ;;  %v3222_v56 = vshll.u32 %v5744_v53, 16  ;;  %3357 = vst [vmem:[#allocation4 + $0x8] sm:$0x1] (!%p5408_p8), %v7370_v18 }
 0x32d   : > { %v3216_v42 = vsel %vm7884_vm8, %v3208_v43, %v3215_v61  ;;  %v3336_v22 = vsel %vm7688_vm2, %v3217_v58, %v3335_v4  ;;  %v5745_v48 = vpack.c.bf16 %v3019_v35, %v3019_v35 }
 0x32e   : > { %3334 = vst [vmem:[#allocation4 + $0x58] sm:$0xf] %v3216_v42  ;;  %3337 = vst [vmem:[#allocation4 + $0x5c] sm:$0x1] %v3336_v22  ;;  %v3000_v33 = vadd.f32 %v6542_v29, %v8282_v47  ;;  %v6550_v49 = vadd.f32 %v6549_v13, %v8339_v41  ;;  %v3221_v17 = vrot.slane %v3219_v46, 7 }
 0x32f   : > { %v3227_v16 = vshrl.u32 %v5745_v48, 16  ;;  %v3230_v11 = vshll.u32 %v5745_v48, 16 }
 0x330   : > { %v3020_v55 = vmax.f32 %v3000_v33, 0.0  ;;  %v3001_v34 = vadd.f32 %v6550_v49, %v8282_v47  ;;  %v3224_v3 = vor.u32 %v3222_v56, %v3221_v17  ;;  %v3225_v31 = vrot.slane %v3221_v17, 4 }
 0x331   : > { %v3229_v50 = vrot.slane %v3227_v16, 7 }
 0x332   : > { %v5746_v23 = vpack.c.bf16 %v3020_v55, %v3020_v55  ;;  %v3021_v2 = vmax.f32 %v3001_v34, 0.0  ;;  %v3339_v60 = vsel %vm7874_vm7, %v3224_v3, %v3338_v28 }
 0x333   : > { %3340 = vst [vmem:[#allocation4 + $0x60] sm:$0xf] %v3339_v60  ;;  %v3232_v38 = vor.u32 %v3230_v11, %v3229_v50  ;;  %v3234_v41 = vrot.slane %v3229_v50, 4 }
 0x334   : > { %v3236_v21 = vshrl.u32 %v5746_v23, 16  ;;  %v5747_v6 = vpack.c.bf16 %v3021_v2, %v3021_v2  ;;  %v3239_v39 = vshll.u32 %v5746_v23, 16 }
 0x335   : > { %v3233_v36 = vsel %vm7884_vm8, %v3225_v31, %v3232_v38  ;;  %v3343_v47 = vsel %vm7688_vm2, %v3234_v41, %v3342_v63 }
 0x336   : > { %v3238_v14 = vrot.slane %v3236_v21, 7  ;;  %3341 = vst [vmem:[#allocation4 + $0x64] sm:$0xf] %v3233_v36  ;;  %3344 = vst [vmem:[#allocation4 + $0x68] sm:$0x1] %v3343_v47  ;;  %v3244_v20 = vshrl.u32 %v5747_v6, 16 }
 0x337   : > { %v3247_v45 = vshll.u32 %v5747_v6, 16  ;;  %3354 = sbr.rel (%p5408_p8) target bundleno = 830 (0x33e), region = 96 }
 0x338   : > { %v3241_v24 = vor.u32 %v3239_v39, %v3238_v14  ;;  %v3246_v37 = vrot.slane %v3244_v20, 7  ;;  %v3242_v54 = vrot.slane %v3238_v14, 4 }
 0x33a   : > { %v3346_v9 = vsel %vm7874_vm7, %v3241_v24, %v3345_v10  ;;  %v3249_v7 = vor.u32 %v3247_v45, %v3246_v37  ;;  %v3251_v57 = vrot.slane %v3246_v37, 4 }
 0x33b   : > { %3347 = vst [vmem:[#allocation4 + $0x6c] sm:$0xf] %v3346_v9 }
 0x33c   : > { %v3250_v19 = vsel %vm7884_vm8, %v3242_v54, %v3249_v7  ;;  %v3350_v30 = vsel %vm7688_vm2, %v3251_v57, %v3349_v1 }
 0x33d   : > { %3348 = vst [vmem:[#allocation4 + $0x70] sm:$0xf] %v3250_v19  ;;  %3351 = vst [vmem:[#allocation4 + $0x74] sm:$0x1] %v3350_v30 }
 0x33e PF: > { %3360 = sbr.rel (%p5414_p2) target bundleno = 837 (0x345), region = 100  ;;  %v7371_v40 = vmov (!%p5414_p2), 0  }
 0x33f   : > { %3362 = vst [vmem:[#allocation4 + $0x6c] sm:$0xf] (!%p5414_p2), %v7371_v40  ;;  %3363 = vst [vmem:[#allocation4 + $0x70] sm:$0xf] (!%p5414_p2), %v7371_v40 }
 0x340   : > { %3364 = vst [vmem:[#allocation4 + $0x74] sm:$0x1] (!%p5414_p2), %v7371_v40 }
 0x345 PF: > { %v6924_v0 = vld [vmem:[#allocation14 + $0x100] sm:$0xff]   ;;  %v6927_v59 = vld [vmem:[#allocation14 + $0x108] sm:$0xff]   ;;  %v6930_v51 = vld [vmem:[#allocation14 + $0x110] sm:$0xff]   ;;  %s8818_s2 = sld [smem:[#allocation31_spill]]  ;;  %s5748_s9 = sshll.u32 %s7339_s24, 4 }
 0x346   : > { %v6925_v62 = vld [vmem:[#allocation14 + $0x140] sm:$0xff]   ;;  %6031 = vmatprep.subr.bf16.mxu0 %v6924_v0  ;;  %v6928_v5 = vld [vmem:[#allocation14 + $0x148] sm:$0xff]   ;;  %v6931_v26 = vld [vmem:[#allocation14 + $0x150] sm:$0xff]   ;;  %s5203_s24 = sshll.u32 %s7945_s15, 4  ;;  %s8819_s20 = sld [smem:[#allocation37_spill]]  ;;  %s8702_s24 = int_to_ptr.vmem [resolvable:$true] %s5203_s24 }
 0x347   : > { %v6926_v32 = vld [vmem:[#allocation14 + $0xc0] sm:$0xff]   ;;  %6379 = vmatprep.subr.bf16.mxu1 %v6925_v62  ;;  %v6929_v12 = vld [vmem:[#allocation14 + $0xc8] sm:$0xff]   ;;  %v6932_v44 = vld [vmem:[#allocation14 + $0xd0] sm:$0xff]   ;;  %s7245_s8 = scalar_lea.vmem %s8702_s24, 2048  ;;  %p8820_p9 = scmp.ne.s32.totalorder %s8801_s6, 0 }
 0x348   : > { %6032 = vmatpush3.bf16.msra.mxu0 %v6926_v32  ;;  %6380 = vmatpush3.bf16.msra.mxu1 %v6925_v62  ;;  %v6933_v52 = vld [vmem:[#allocation14 + $0x118] sm:$0xff]   ;;  %v6936_v8 = vld [vmem:[#allocation14 + $0x120] sm:$0xff]   ;;  %v6939_v27 = vld [vmem:[#allocation14 + $0x128] sm:$0xff]   ;;  %p7246_p13 = scmp.ne.s32.totalorder %s8702_s24, %s7245_s8  ;;  %s7372_s1 = smov [#allocation17]  }
 0x349   : > { %6033 = vmatprep.subr.bf16.mxu0 %v6927_v59  ;;  %6381 = vmatprep.subr.bf16.mxu1 %v6928_v5  ;;  %v6934_v15 = vld [vmem:[#allocation14 + $0x158] sm:$0xff]   ;;  %v6937_v4 = vld [vmem:[#allocation14 + $0x160] sm:$0xff]   ;;  %v6940_v61 = vld [vmem:[#allocation14 + $0x168] sm:$0xff]   ;;  %s7249_s14 = sshll.u32 %s7372_s1, 4  ;;  %s7250_s14 = int_to_ptr.vmem [resolvable:$false] %s7249_s14 }
 0x34a   : > { %v6935_v43 = vld [vmem:[#allocation14 + $0xd8] sm:$0xff]   ;;  %v6938_v25 = vld [vmem:[#allocation14 + $0xe0] sm:$0xff]   ;;  %v6941_v58 = vld [vmem:[#allocation14 + $0xe8] sm:$0xff]   ;;  %p7247_p5 = pnand %p7246_p13, %p8820_p9  ;;  %s7251_s7 = scalar_lea.vmem %s7250_s14, 4096 }
 0x34b   : > { %v6942_v53 = vld [vmem:[#allocation14 + $0x130] sm:$0xff]   ;;  %v6945_v13 = vld [vmem:[#allocation14 + $0x138] sm:$0xff]   ;;  %v6955_v50 = vld [vmem:[#allocation14 + $0x80] sm:$0xff]   ;;  %s5696_s25 = sshll.u32 %s8818_s2, 5  ;;  %p7252_p1 = scmp.lt.s32.totalorder %s8702_s24, %s7250_s14 }
 0x34c   : > { %6034 = vmatpush3.bf16.msra.mxu0 %v6929_v12  ;;  %6382 = vmatpush3.bf16.msra.mxu1 %v6928_v5  ;;  %v6943_v35 = vld [vmem:[#allocation14 + $0x170] sm:$0xff]   ;;  %v6946_v42 = vld [vmem:[#allocation14 + $0x178] sm:$0xff]   ;;  %v6954_v63 = vld [vmem:[#allocation4 + $0x20] ss:$0 sps:$4 sm:$0x11]   ;;  %s5200_s19 = sadd.s32 %s5748_s9, %s5696_s25  ;;  %p7248_p7 = pneg %p7247_p5 }
 0x34d   : > { %6035 = vmatprep.subr.bf16.mxu0 %v6930_v51  ;;  %6383 = vmatprep.subr.bf16.mxu1 %v6931_v26  ;;  %v6944_v29 = vld [vmem:[#allocation14 + $0xf0] sm:$0xff]   ;;  %v6949_v46 = vld [vmem:[#allocation4 + $0x14] ss:$0 sps:$4 sm:$0x11]   ;;  %v6953_v11 = vld [vmem:[#allocation4 + $0x18] sm:$0xfe]   ;;  %p7253_p12 = scmp.lt.s32.totalorder %s7251_s7, %s7245_s8 }
 0x34e   : > { %v6948_v22 = vld [vmem:[#allocation4 + $0xc] sm:$0xff]   ;;  %v3585_v17 = vshll.u32 %v6949_v46, 16  ;;  %v6951_v56 = vld [vmem:[#allocation4 + $0x14] ss:$0 sps:$4 sm:$0x11]   ;;  %v3821_v31 = vrot.slane %v6953_v11, 1 }
 0x34f   : > { %v6950_v48 = vld [vmem:[#allocation4 + $0xc] sm:$0xfe]   ;;  %v3578_v33 = vshrl.u32 %v6948_v22, 16  ;;  %v3580_v49 = vshll.u32 %v6948_v22, 16  ;;  %v3819_v3 = vrot.slane %v6951_v56, 1  ;;  %v6957_v38 = vld [vmem:[#allocation4 + $0x18] sm:$0xff]   ;;  %p7254_p6 = por %p7253_p12, %p7252_p1 }
 0x350   : > { %6036 = vmatpush3.bf16.msra.mxu0 %v6932_v44  ;;  %6384 = vmatpush3.bf16.msra.mxu1 %v6931_v26  ;;  %v6947_v28 = vld [vmem:[#allocation14 + $0xf8] sm:$0xff]   ;;  %v3818_v16 = vrot.slane %v6950_v48, 1  ;;  %v3587_v34 = vrot.slane %v3585_v17, 1  ;;  %v3822_v21 = vrot.slane %v6954_v63, 1  ;;  %v6956_v6 = vld [vmem:[#allocation14 + $0x88] sm:$0xff]   ;;  %v3590_v36 = vshrl.u32 %v6957_v38, 16 }
 0x351   : > { %6037 = vmatprep.subr.bf16.mxu0 %v6933_v52  ;;  %6385 = vmatprep.subr.bf16.mxu1 %v6934_v15  ;;  %v3582_v55 = vrot.slane %v3580_v49, 1  ;;  %v8431_v60 = vld [vmem:[#allocation4 + $0xc] sm:$0xff]   ;;  %v3592_v47 = vshll.u32 %v6957_v38, 16  ;;  %v6958_v39 = vld [vmem:[#allocation4 + $0x20] ss:$0 sps:$4 sm:$0x11]   ;;  %p7255_p10 = pnand %p7254_p6, %p7248_p7 }
 0x352   : > { %v8429_v2 = vsel %vm1546_vm10, %v3818_v16, %v3819_v3  ;;  %v8440_v14 = vsel %vm1546_vm10, %v3821_v31, %v3822_v21  ;;  %v3597_v20 = vshll.u32 %v6958_v39, 16  ;;  %v6959_v24 = vld [vmem:[#allocation4 + $0x24] sm:$0xfe]   ;;  %v6960_v37 = vld [vmem:[#allocation4 + $0x2c] ss:$0 sps:$4 sm:$0x11]  }
 0x353   : > { %v3583_v23 = vor.u32 %v3582_v55, %v3578_v33  ;;  %6395 = vmatprep.mubr.bf16.mxu1 %v8429_v2  ;;  %v3594_v10 = vrot.slane %v3592_v47, 1  ;;  %v8443_v45 = vld [vmem:[#allocation4 + $0x18] sm:$0xff]   ;;  %v6964_v9 = vld [vmem:[#allocation14 + $0x90] sm:$0xff]   ;;  %v3824_v7 = vrot.slane %v6959_v24, 1  ;;  %v3825_v57 = vrot.slane %v6960_v37, 1  ;;  %s5697_s3 = sshll.u32 %s5200_s19, 7 }
 0x354   : > { %6038 = vmatpush3.bf16.msra.mxu0 %v6935_v43  ;;  %6386 = vmatpush3.bf16.msra.mxu1 %v6934_v15  ;;  %v3599_v54 = vrot.slane %v3597_v20, 1  ;;  %v6966_v19 = vld [vmem:[#allocation4 + $0x24] sm:$0xff]   ;;  %v6962_v30 = vld [vmem:[#allocation4 + $0x30] sm:$0xfe]   ;;  %v6968_v43 = vld [vmem:[#allocation4 + $0x3c] sm:$0xfe]   ;;  %s8708_s11 = scalar_lea.hbm %s8819_s20, %s5697_s3 }
 0x355   : > { %6039 = vmatprep.subr.bf16.mxu0 %v6936_v8  ;;  %6387 = vmatprep.subr.bf16.mxu1 %v6937_v4  ;;  %v8434_v41 = vsel %vm1245_vm9, %v3583_v23, %v3587_v34  ;;  %v3595_v1 = vor.u32 %v3594_v10, %v3590_v36  ;;  %v6965_v18 = vld [vmem:[#allocation14 + $0x98] sm:$0xff]   ;;  %v8449_v0 = vsel %vm1546_vm10, %v3824_v7, %v3825_v57  ;;  %v3602_v32 = vshrl.u32 %v6966_v19, 16  ;;  %v6967_v51 = vld [vmem:[#allocation4 + $0x2c] ss:$0 sps:$4 sm:$0x11]   ;;  %v6983_v34 = vld [vmem:[#allocation14 + $0x40] sm:$0xff]  }
 0x356   : > { %4187 = vmatprep.mubr.bf16.mxu0 %v8434_v41  ;;  %v6963_v62 = vld [vmem:[#allocation4 + $0x38] ss:$0 sps:$4 sm:$0x11]   ;;  %v3827_v59 = vrot.slane %v6962_v30, 1  ;;  %v3604_v5 = vshll.u32 %v6966_v19, 16  ;;  %v3609_v15 = vshll.u32 %v6967_v51, 16 }
 0x357   : > { %v8446_v40 = vsel %vm1245_vm9, %v3595_v1, %v3599_v54  ;;  %v3828_v12 = vrot.slane %v6963_v62, 1  ;;  %v6969_v8 = vld [vmem:[#allocation4 + $0x44] ss:$0 sps:$4 sm:$0x11]   ;;  %v6975_v46 = vld [vmem:[#allocation4 + $0x30] sm:$0xff]   ;;  %v6984_v21 = vld [vmem:[#allocation14] sm:$0xff]  }
 0x358   : > { %6040 = vmatpush3.bf16.msra.mxu0 %v6938_v25  ;;  %6388 = vmatpush3.bf16.msra.mxu1 %v6937_v4  ;;  %v3606_v26 = vrot.slane %v3604_v5, 1  ;;  %v8458_v4 = vld [vmem:[#allocation4 + $0x24] sm:$0xff]   ;;  %v3611_v25 = vrot.slane %v3609_v15, 1  ;;  %v6976_v33 = vld [vmem:[#allocation4 + $0x38] ss:$0 sps:$4 sm:$0x11]  }
 0x359   : > { %6041 = vmatprep.subr.bf16.mxu0 %v6939_v27  ;;  %6389 = vmatprep.subr.bf16.mxu1 %v6940_v61  ;;  %v8455_v44 = vsel %vm1546_vm10, %v3827_v59, %v3828_v12  ;;  %v3830_v27 = vrot.slane %v6968_v43, 1  ;;  %v3614_v49 = vshrl.u32 %v6975_v46, 16  ;;  %v3616_v56 = vshll.u32 %v6975_v46, 16  ;;  %v6977_v55 = vld [vmem:[#allocation4 + $0x54] sm:$0xfe]   ;;  %v8488_v5 = vld [vmem:[#allocation4 + $0x3c] sm:$0xff]  }
 0x35a   : > { %v3607_v52 = vor.u32 %v3606_v26, %v3602_v32  ;;  %v3621_v16 = vshll.u32 %v6976_v33, 16  ;;  %v8473_v11 = vld [vmem:[#allocation4 + $0x30] sm:$0xff]   ;;  %v3836_v63 = vrot.slane %v6977_v55, 1  ;;  %v6981_v36 = vld [vmem:[#allocation4 + $0x68] ss:$0 sps:$4 sm:$0x11]  }
 0x35b   : > { %v3618_v3 = vrot.slane %v3616_v56, 1  ;;  %v6985_v47 = vld [vmem:[#allocation14 + $0xb8] sm:$0xff]   ;;  %v3840_v24 = vrot.slane %v6981_v36, 1  ;;  %v6987_v1 = vld [vmem:[#allocation4 + $0x44] ss:$0 sps:$4 sm:$0x11]  }
 0x35c   : > { %6042 = vmatpush3.bf16.msra.mxu0 %v6941_v58  ;;  %6390 = vmatpush3.bf16.msra.mxu1 %v6940_v61  ;;  %v3831_v61 = vrot.slane %v6969_v8, 1  ;;  %v6973_v58 = vld [vmem:[#allocation14 + $0xa0] sm:$0xff]   ;;  %v3623_v23 = vrot.slane %v3621_v16, 1  ;;  %v3633_v19 = vshll.u32 %v6987_v1, 16  ;;  %v6993_v15 = vld [vmem:[#allocation14 + $0x48] sm:$0xff]   ;;  %v7001_v33 = vld [vmem:[#allocation14 + $0x1d0] sm:$0xff]  }
 0x35d   : > { %6043 = vmatprep.subr.bf16.mxu0 %v6942_v53  ;;  %6391 = vmatprep.subr.bf16.mxu1 %v6943_v35  ;;  %v6971_v53 = vld [vmem:[#allocation4 + $0x48] sm:$0xfe]   ;;  %v3619_v31 = vor.u32 %v3618_v3, %v3614_v49  ;;  %v6988_v54 = vld [vmem:[#allocation4] sm:$0xfe]   ;;  %v7004_v16 = vld [vmem:[#allocation14 + $0x58] sm:$0xff]  }
 0x35e   : > { %v3833_v22 = vrot.slane %v6971_v53, 1  ;;  %v6989_v30 = vld [vmem:[#allocation4 + $0x8] ss:$0 sps:$4 sm:$0x11]   ;;  %v3635_v32 = vrot.slane %v3633_v19, 1  ;;  %v6991_v12 = vld [vmem:[#allocation14 + $0x1c0] sm:$0xff]  }
 0x35f   : > { %v8476_v39 = vsel %vm1245_vm9, %v3619_v31, %v3623_v23  ;;  %v3816_v59 = vrot.slane %v6989_v30, 1  ;;  %v6994_v8 = vld [vmem:[#allocation14 + $0x8] sm:$0xff]   ;;  %v7002_v49 = vld [vmem:[#allocation14 + $0x10] sm:$0xff]   ;;  %v7006_v3 = vld [vmem:[#allocation14 + $0x18] sm:$0xff]  }
 0x360   : > { %6044 = vmatpush3.bf16.msra.mxu0 %v6944_v29  ;;  %6392 = vmatpush3.bf16.msra.mxu1 %v6943_v35  ;;  %v8461_v35 = vsel %vm1245_vm9, %v3607_v52, %v3611_v25  ;;  %v8464_v29 = vsel %vm1546_vm10, %v3830_v27, %v3831_v61  ;;  %v6992_v52 = vld [vmem:[#allocation14 + $0x180] sm:$0xff]   ;;  %v6995_v25 = vld [vmem:[#allocation14 + $0x1c8] sm:$0xff]  }
 0x361   : > { %6045 = vmatprep.subr.bf16.mxu0 %v6945_v13  ;;  %6393 = vmatprep.subr.bf16.mxu1 %v6946_v42  ;;  %v6972_v13 = vld [vmem:[#allocation4 + $0x50] ss:$0 sps:$4 sm:$0x11]   ;;  %v6996_v27 = vld [vmem:[#allocation14 + $0x188] sm:$0xff]   ;;  %v7008_v23 = vld [vmem:[#allocation4 + $0x54] sm:$0xff]  }
 0x362   : > { %v3834_v48 = vrot.slane %v6972_v13, 1  ;;  %v6997_v61 = vld [vmem:[#allocation4 + $0x48] sm:$0xff]   ;;  %v3650_v31 = vshrl.u32 %v7008_v23, 16 }
 0x363   : > { %v3638_v53 = vshrl.u32 %v6997_v61, 16  ;;  %v3640_v13 = vshll.u32 %v6997_v61, 16  ;;  %v7016_v19 = vld [vmem:[#allocation14 + $0x1e8] sm:$0xff]  }
 0x364   : > { %6046 = vmatpush3.bf16.msra.mxu0 %v6947_v28  ;;  %6394 = vmatpush3.bf16.msra.mxu1 %v6946_v42  ;;  %v6974_v42 = vld [vmem:[#allocation14 + $0xa8] sm:$0xff]   ;;  %v8470_v17 = vsel %vm1546_vm10, %v3833_v22, %v3834_v48  ;;  %v6982_v28 = vld [vmem:[#allocation14 + $0xb0] sm:$0xff]  }
 0x365   : > { %6411 = vmatprep.subr.bf16.mxu1 %v6955_v50  ;;  %6111 = vmatprep.subr.bf16.mxu0 %v6983_v34  ;;  %v3642_v22 = vrot.slane %v3640_v13, 1  ;;  %v8498_v48 = vld [vmem:[#allocation4 + $0x48] sm:$0xff]   ;;  %v7005_v34 = vld [vmem:[#allocation14 + $0x1d8] sm:$0xff]  }
 0x366   : > { %v7017_v30 = vld [vmem:[#allocation14 + $0x28] sm:$0xff]  }
 0x367   : > { %4188 = vmatmul.mubr.bf16.vlgmr.msra.gmra.mrb[100].mxu0 %v8431_v60  ;;  %6396 = vmatmul.mubr.bf16.vlgmr.msra.gmra.mrb[60].mxu1 %v8440_v14  ;;  %v3643_v56 = vor.u32 %v3642_v22, %v3638_v53  ;;  %v7026_v53 = vld [vmem:[#allocation14 + $0x78] sm:$0xff]  }
 0x368   : > { %6412 = vmatpush3.bf16.msra.mxu1 %v6955_v50  ;;  %4195 = vmatprep.mubr.bf16.mxu0 %v8446_v40  ;;  %v6978_v50 = vld [vmem:[#allocation4 + $0x5c] ss:$0 sps:$4 sm:$0x11]   ;;  %v7029_v22 = vld [vmem:[#allocation14 + $0x1b8] sm:$0xff]  }
 0x369   : > { %6413 = vmatprep.subr.bf16.mxu1 %v6956_v6  ;;  %6399 = vmatprep.mubr.bf16.mxu1 %v8449_v0  ;;  %v3837_v38 = vrot.slane %v6978_v50, 1  ;;  %v7007_v50 = vld [vmem:[#allocation14 + $0x198] sm:$0xff]  }
 0x36a   : > { %6112 = vmatpush3.bf16.msra.mxu0 %v6984_v21 }
 0x36b   : > { %v8479_v10 = vsel %vm1546_vm10, %v3836_v63, %v3837_v38  ;;  %6113 = vmatprep.subr.bf16.mxu0 %v6993_v15  ;;  %v7009_v63 = vld [vmem:[#allocation4 + $0x5c] ss:$0 sps:$4 sm:$0x11]   ;;  %v3652_v38 = vshll.u32 %v7008_v23, 16  ;;  %v7034_v23 = vld [vmem:[#allocation14 + $0x208] sm:$0xff]  }
 0x36c   : > { %6414 = vmatpush3.bf16.msra.mxu1 %v6956_v6  ;;  %v6980_v6 = vld [vmem:[#allocation4 + $0x60] sm:$0xfe]   ;;  %v3657_v21 = vshll.u32 %v7009_v63, 16 }
 0x36d   : > { %6415 = vmatprep.subr.bf16.mxu1 %v6964_v9  ;;  %v3839_v20 = vrot.slane %v6980_v6, 1  ;;  %v7011_v6 = vld [vmem:[#allocation14 + $0x60] sm:$0xff]   ;;  %v3654_v36 = vrot.slane %v3652_v38, 1 }
 0x36e   : > { %6114 = vmatpush3.bf16.msra.mxu0 %v6994_v8  ;;  %v8518_v8 = vld [vmem:[#allocation4 + $0x60] sm:$0xff]  }
 0x36f   : > { %4196 = vmatmul.mubr.bf16.gmra.mrb[104].mxu0 %v8443_v45  ;;  %6400 = vmatmul.mubr.bf16.gmra.mrb[64].mxu1 %v8455_v44  ;;  %v8485_v37 = vsel %vm1546_vm10, %v3839_v20, %v3840_v24  ;;  %v8509_v20 = vld [vmem:[#allocation4 + $0x54] sm:$0xff]   ;;  %v3655_v1 = vor.u32 %v3654_v36, %v3650_v31  ;;  %v7035_v31 = vld [vmem:[#allocation14 + $0x210] sm:$0xff]   ;;  %v7038_v36 = vld [vmem:[#allocation14 + $0x228] sm:$0xff]  }
 0x370   : > { %6416 = vmatpush3.bf16.msra.mxu1 %v6964_v9  ;;  %4203 = vmatprep.mubr.bf16.mxu0 %v8461_v35  ;;  %v6986_v9 = vld [vmem:[#allocation4 + $0x3c] sm:$0xff]  }
 0x371   : > { %6417 = vmatprep.subr.bf16.mxu1 %v6965_v18  ;;  %6403 = vmatprep.mubr.bf16.mxu1 %v8464_v29  ;;  %v3626_v7 = vshrl.u32 %v6986_v9, 16  ;;  %v3628_v57 = vshll.u32 %v6986_v9, 16  ;;  %v7012_v24 = vld [vmem:[#allocation14 + $0x1e0] sm:$0xff]  }
 0x372   : > { %v7013_v9 = vld [vmem:[#allocation14 + $0x20] sm:$0xff]  }
 0x373   : > { %v3630_v62 = vrot.slane %v3628_v57, 1 }
 0x374   : > { %6418 = vmatpush3.bf16.msra.mxu1 %v6965_v18  ;;  %v3815_v18 = vrot.slane %v6988_v54, 1  ;;  %v7014_v54 = vld [vmem:[#allocation14 + $0x1a0] sm:$0xff]  }
 0x375   : > { %6419 = vmatprep.subr.bf16.mxu1 %v6973_v58  ;;  %v3631_v51 = vor.u32 %v3630_v62, %v3626_v7  ;;  %v7015_v7 = vld [vmem:[#allocation14 + $0x68] sm:$0xff]  }
 0x376   : > { %v3817_v26 = vsel %vm1546_vm10, %v3815_v18, %v3816_v59  ;;  %v7018_v18 = vld [vmem:[#allocation14 + $0x1a8] sm:$0xff]  }
 0x377   : > { %4204 = vmatmul.mubr.bf16.gmra.mrb[108].mxu0 %v8458_v4  ;;  %6404 = vmatmul.mubr.bf16.gmra.mrb[68].mxu1 %v8470_v17  ;;  %v8492_v43 = vsel %vm1245_vm9, %v3631_v51, %v3635_v32  ;;  %v7019_v62 = vld [vmem:[#allocation4 + $0x60] sm:$0xff]   ;;  %v7020_v32 = vld [vmem:[#allocation4 + $0x68] ss:$0 sps:$4 sm:$0x11]  }
 0x378   : > { %6420 = vmatpush3.bf16.msra.mxu1 %v6973_v58  ;;  %4211 = vmatprep.mubr.bf16.mxu0 %v8476_v39  ;;  %v6998_v58 = vld [vmem:[#allocation4 + $0x50] ss:$0 sps:$4 sm:$0x11]   ;;  %v3662_v59 = vshrl.u32 %v7019_v62, 16  ;;  %v3669_v51 = vshll.u32 %v7020_v32, 16 }
 0x379   : > { %6421 = vmatprep.subr.bf16.mxu1 %v6974_v42  ;;  %6407 = vmatprep.mubr.bf16.mxu1 %v8479_v10 }
 0x37a   : > { %v3671_v15 = vrot.slane %v3669_v51, 1 }
 0x37c   : > { %6422 = vmatpush3.bf16.msra.mxu1 %v6974_v42  ;;  %v3645_v42 = vshll.u32 %v6998_v58, 16  ;;  %v7025_v58 = vld [vmem:[#allocation14 + $0x1b0] sm:$0xff]  }
 0x37d   : > { %6423 = vmatprep.subr.bf16.mxu1 %v6982_v28 }
 0x37e   : > { %v3647_v46 = vrot.slane %v3645_v42, 1  ;;  %v7027_v42 = vld [vmem:[#allocation14 + $0x1f8] sm:$0xff]  }
 0x37f   : > { %4212 = vmatmul.mubr.bf16.gmra.mrb[112].mxu0 %v8473_v11  ;;  %6408 = vmatmul.mubr.bf16.gmra.mrb[72].mxu1 %v8485_v37 }
 0x380   : > { %6424 = vmatpush3.bf16.msra.mxu1 %v6982_v28  ;;  %6427 = vmatprep.mubr.bf16.mxu1 %v3817_v26  ;;  %v7003_v28 = vld [vmem:[#allocation14 + $0x190] sm:$0xff]   ;;  %v8503_v55 = vsel %vm1245_vm9, %v3643_v56, %v3647_v46  ;;  %v7030_v46 = vld [vmem:[#allocation4] sm:$0xff]  }
 0x381   : > { %6425 = vmatprep.subr.bf16.mxu1 %v6985_v47  ;;  %4219 = vmatprep.mubr.bf16.mxu0 %v8492_v43  ;;  %v7022_v26 = vld [vmem:[#allocation14 + $0x70] sm:$0xff]   ;;  %v3568_v56 = vshll.u32 %v7030_v46, 16 }
 0x384   : > { %6426 = vmatpush3.bf16.msra.mxu1 %v6985_v47  ;;  %v3659_v47 = vrot.slane %v3657_v21, 1  ;;  %v7036_v21 = vld [vmem:[#allocation14 + $0x218] sm:$0xff]  }
 0x385   : > { %6191 = vmatprep.subr.bf16.mxu1 %v6991_v12  ;;  %v3664_v12 = vshll.u32 %v7019_v62, 16 }
 0x386   : > { %v8512_v57 = vsel %vm1245_vm9, %v3655_v1, %v3659_v47  ;;  %v7043_v47 = vld [vmem:[#allocation14 + $0x238] sm:$0xff]  }
 0x387   : > { %6428 = vmatmul.mubr.bf16.vlgmr.msra.gmra.mrb[60].mxu1 %v8429_v2  ;;  %4220 = vmatmul.mubr.bf16.gmra.mrb[116].mxu0 %v8488_v5  ;;  %v7000_v2 = vld [vmem:[#allocation14 + $0x50] sm:$0xff]  }
 0x388   : > { %6192 = vmatpush3.bf16.msra.mxu1 %v6992_v52  ;;  %6431 = vmatprep.mubr.bf16.mxu1 %v8440_v14  ;;  %v3666_v52 = vrot.slane %v3664_v12, 1 }
 0x389   : > { %6193 = vmatprep.subr.bf16.mxu1 %v6995_v25  ;;  %6115 = vmatprep.subr.bf16.mxu0 %v7000_v2  ;;  %v7023_v25 = vld [vmem:[#allocation14 + $0x1f0] sm:$0xff]   ;;  %v7028_v2 = vld [vmem:[#allocation14 + $0x38] sm:$0xff]  }
 0x38a   : > { %6116 = vmatpush3.bf16.msra.mxu0 %v7002_v49  ;;  %4227 = vmatprep.mubr.bf16.mxu0 %v8503_v55  ;;  %v3667_v61 = vor.u32 %v3666_v52, %v3662_v59  ;;  %v3566_v49 = vshrl.u32 %v7030_v46, 16 }
 0x38b   : > { %6117 = vmatprep.subr.bf16.mxu0 %v7004_v16  ;;  %v7033_v16 = vld [vmem:[#allocation14 + $0x200] sm:$0xff]  }
 0x38c   : > { %6194 = vmatpush3.bf16.msra.mxu1 %v6996_v27  ;;  %v7024_v27 = vld [vmem:[#allocation14 + $0x30] sm:$0xff]   ;;  %v8521_v13 = vsel %vm1245_vm9, %v3667_v61, %v3671_v15 }
 0x38d   : > { %6195 = vmatprep.subr.bf16.mxu1 %v7001_v33  ;;  %v7031_v33 = vld [vmem:[#allocation4 + $0x8] ss:$0 sps:$4 sm:$0x11]  }
 0x38e   : > { %6118 = vmatpush3.bf16.msra.mxu0 %v7006_v3 }
 0x38f   : > { %6432 = vmatmul.mubr.bf16.gmra.mrb[64].mxu1 %v8449_v0  ;;  %4228 = vmatmul.mubr.bf16.gmra.mrb[120].mxu0 %v8498_v48 }
 0x390   : > { %6435 = vmatprep.mubr.bf16.mxu1 %v8455_v44  ;;  %6196 = vmatpush3.bf16.msra.mxu1 %v7003_v28  ;;  %v3573_v28 = vshll.u32 %v7031_v33, 16 }
 0x391   : > { %6197 = vmatprep.subr.bf16.mxu1 %v7005_v34  ;;  %6119 = vmatprep.subr.bf16.mxu0 %v7011_v6  ;;  %v3570_v34 = vrot.slane %v3568_v56, 1  ;;  %v7037_v6 = vld [vmem:[#allocation14 + $0x220] sm:$0xff]  }
 0x392   : > { %6120 = vmatpush3.bf16.msra.mxu0 %v7013_v9  ;;  %4235 = vmatprep.mubr.bf16.mxu0 %v8512_v57  ;;  %v3575_v3 = vrot.slane %v3573_v28, 1 }
 0x393   : > { %6121 = vmatprep.subr.bf16.mxu0 %v7015_v7  ;;  %v3571_v63 = vor.u32 %v3570_v34, %v3566_v49 }
 0x394   : > { %6198 = vmatpush3.bf16.msra.mxu1 %v7007_v50  ;;  %v7032_v50 = vld [vmem:[#allocation4] sm:$0xff]  }
 0x395   : > { %6199 = vmatprep.subr.bf16.mxu1 %v7012_v24  ;;  %v3576_v38 = vsel %vm1245_vm9, %v3571_v63, %v3575_v3 }
 0x396   : > { %6122 = vmatpush3.bf16.msra.mxu0 %v7017_v30 }
 0x397   : > { %6436 = vmatmul.mubr.bf16.gmra.mrb[68].mxu1 %v8464_v29  ;;  %4236 = vmatmul.mubr.bf16.gmra.mrb[124].mxu0 %v8509_v20 }
 0x398   : > { %6439 = vmatprep.mubr.bf16.mxu1 %v8470_v17  ;;  %6200 = vmatpush3.bf16.msra.mxu1 %v7014_v54 }
 0x399   : > { %6201 = vmatprep.subr.bf16.mxu1 %v7016_v19  ;;  %6123 = vmatprep.subr.bf16.mxu0 %v7022_v26 }
 0x39a   : > { %6124 = vmatpush3.bf16.msra.mxu0 %v7024_v27  ;;  %4243 = vmatprep.mubr.bf16.mxu0 %v8521_v13 }
 0x39b   : > { %6125 = vmatprep.subr.bf16.mxu0 %v7026_v53 }
 0x39c   : > { %6202 = vmatpush3.bf16.msra.mxu1 %v7018_v18 }
 0x39d   : > { %6203 = vmatprep.subr.bf16.mxu1 %v7023_v25 }
 0x39e   : > { %6126 = vmatpush3.bf16.msra.mxu0 %v7028_v2 }
 0x39f   : > { %6440 = vmatmul.mubr.bf16.gmra.mrb[72].mxu1 %v8479_v10  ;;  %4244 = vmatmul.mubr.bf16.gmra.mrb[128].mxu0 %v8518_v8 }
 0x3a0   : > { %4937 = vmatprep.mubr.bf16.mxu1 %v8446_v40  ;;  %6204 = vmatpush3.bf16.msra.mxu1 %v7025_v58 }
 0x3a1   : > { %6205 = vmatprep.subr.bf16.mxu1 %v7027_v42  ;;  %4525 = vmatprep.mubr.bf16.mxu0 %v3576_v38 }
 0x3a4   : > { %6206 = vmatpush3.bf16.msra.mxu1 %v7029_v22 }
 0x3a5   : > { %6443 = vmatprep.subr.bf16.mxu1 %v7033_v16 }
 0x3a7   : > { %4938 = vmatmul.mubr.bf16.vlgmr.msra.gmra.mrb[76].mxu1 %v8443_v45  ;;  %4526 = vmatmul.mubr.bf16.vlgmr.msra.gmra.mrb[132].mxu0 %v7032_v50 }
 0x3a8   : > { %6444 = vmatpush3.bf16.msra.mxu1 %v7033_v16  ;;  %4945 = vmatprep.mubr.bf16.mxu1 %v8461_v35 }
 0x3a9   : > { %6445 = vmatprep.subr.bf16.mxu1 %v7034_v23  ;;  %4533 = vmatprep.mubr.bf16.mxu0 %v8434_v41  ;;  %v7039_v41 = vld [vmem:[#allocation14 + $0x230] sm:$0xff]  }
 0x3ac   : > { %6446 = vmatpush3.bf16.msra.mxu1 %v7034_v23 }
 0x3ad   : > { %6447 = vmatprep.subr.bf16.mxu1 %v7035_v31 }
 0x3af   : > { %4946 = vmatmul.mubr.bf16.gmra.mrb[80].mxu1 %v8458_v4  ;;  %4534 = vmatmul.mubr.bf16.gmra.mrb[136].mxu0 %v8431_v60  ;;  %v7040_v60 = vld [vmem:[#allocation4 + $0x6c] sm:$0xff]  }
 0x3b0   : > { %4953 = vmatprep.mubr.bf16.mxu1 %v8476_v39  ;;  %6448 = vmatpush3.bf16.msra.mxu1 %v7035_v31 }
 0x3b1   : > { %6449 = vmatprep.subr.bf16.mxu1 %v7036_v21  ;;  %4541 = vmatprep.mubr.bf16.mxu0 %v8446_v40  ;;  %v3676_v40 = vshll.u32 %v7040_v60, 16 }
 0x3b3   : > { %v3678_v24 = vrot.slane %v3676_v40, 1 }
 0x3b4   : > { %6450 = vmatpush3.bf16.msra.mxu1 %v7036_v21 }
 0x3b5   : > { %6451 = vmatprep.subr.bf16.mxu1 %v7037_v6 }
 0x3b7   : > { %4954 = vmatmul.mubr.bf16.gmra.mrb[84].mxu1 %v8473_v11  ;;  %4542 = vmatmul.mubr.bf16.gmra.mrb[140].mxu0 %v8443_v45  ;;  %v7041_v45 = vld [vmem:[#allocation4 + $0x74] ss:$0 sps:$4 sm:$0x11]  }
 0x3b8   : > { %4961 = vmatprep.mubr.bf16.mxu1 %v8492_v43  ;;  %6452 = vmatpush3.bf16.msra.mxu1 %v7037_v6  ;;  %v3681_v9 = vshll.u32 %v7041_v45, 16 }
 0x3b9   : > { %6453 = vmatprep.subr.bf16.mxu1 %v7038_v36  ;;  %4549 = vmatprep.mubr.bf16.mxu0 %v8461_v35  ;;  %v3674_v35 = vshrl.u32 %v7040_v60, 16 }
 0x3ba   : > { %v3683_v1 = vrot.slane %v3681_v9, 1 }
 0x3bc   : > { %6454 = vmatpush3.bf16.msra.mxu1 %v7038_v36 }
 0x3bd   : > { %6455 = vmatprep.subr.bf16.mxu1 %v7039_v41 }
 0x3bf   : > { %4962 = vmatmul.mubr.bf16.gmra.mrb[88].mxu1 %v8488_v5  ;;  %4550 = vmatmul.mubr.bf16.gmra.mrb[144].mxu0 %v8458_v4  ;;  %v3679_v4 = vor.u32 %v3678_v24, %v3674_v35 }
 0x3c0   : > { %4969 = vmatprep.mubr.bf16.mxu1 %v8503_v55  ;;  %6456 = vmatpush3.bf16.msra.mxu1 %v7039_v41 }
 0x3c1   : > { %6457 = vmatprep.subr.bf16.mxu1 %v7043_v47  ;;  %4557 = vmatprep.mubr.bf16.mxu0 %v8476_v39  ;;  %v3684_v39 = vsel %vm1245_vm9, %v3679_v4, %v3683_v1 }
 0x3c4   : > { %6458 = vmatpush3.bf16.msra.mxu1 %v7043_v47 }
 0x3c7   : > { %4970 = vmatmul.mubr.bf16.gmra.mrb[92].mxu1 %v8498_v48  ;;  %4558 = vmatmul.mubr.bf16.gmra.mrb[148].mxu0 %v8473_v11  ;;  %v7042_v11 = vld [vmem:[#allocation4 + $0x6c] sm:$0xff]  }
 0x3c8   : > { %4977 = vmatprep.mubr.bf16.mxu1 %v8512_v57  ;;  %4565 = vmatprep.mubr.bf16.mxu0 %v8492_v43  ;;  %v7045_v43 = vld [vmem:[#allocation4 + $0x74] ss:$0 sps:$4 sm:$0x11]  }
 0x3cf   : > { %4978 = vmatmul.mubr.bf16.gmra.mrb[96].mxu1 %v8509_v20  ;;  %4566 = vmatmul.mubr.bf16.gmra.mrb[152].mxu0 %v8488_v5  ;;  %v7044_v5 = vld [vmem:[#allocation4 + $0x6c] sm:$0xfe]  }
 0x3d0   : > { %4985 = vmatprep.mubr.bf16.mxu1 %v8521_v13  ;;  %4573 = vmatprep.mubr.bf16.mxu0 %v8503_v55  ;;  %v3843_v55 = vrot.slane %v7045_v43, 1 }
 0x3d7   : > { %4986 = vmatmul.mubr.bf16.gmra.mrb[100].mxu1 %v8518_v8  ;;  %4574 = vmatmul.mubr.bf16.gmra.mrb[156].mxu0 %v8498_v48  ;;  %v3842_v48 = vrot.slane %v7044_v5, 1 }
 0x3d8   : > { %4993 = vmatprep.mubr.bf16.mxu1 %v3684_v39  ;;  %4581 = vmatprep.mubr.bf16.mxu0 %v8512_v57 }
 0x3df   : > { %4994 = vmatmul.mubr.bf16.gmra.mrb[104].mxu1 %v7042_v11  ;;  %4582 = vmatmul.mubr.bf16.gmra.mrb[160].mxu0 %v8509_v20 }
 0x3e0   : > { %6459 = vmatprep.mubr.bf16.mxu1 %v8440_v14  ;;  %v3844_v14 = vsel %vm1546_vm10, %v3842_v48, %v3843_v55 }
 0x3e7   : > { %6460 = vmatmul.mubr.bf16.vlgmr.msra.gmra.mrb[60].mxu1 %v8449_v0 }
 0x3e8   : > { %6463 = vmatprep.mubr.bf16.mxu1 %v8455_v44 }
 0x3ef   : > { %6464 = vmatmul.mubr.bf16.gmra.mrb[64].mxu1 %v8464_v29 }
 0x3f0   : > { %6467 = vmatprep.mubr.bf16.mxu1 %v8470_v17 }
 0x3f7   : > { %6468 = vmatmul.mubr.bf16.gmra.mrb[68].mxu1 %v8479_v10 }
 0x3f8   : > { %6471 = vmatprep.mubr.bf16.mxu1 %v8485_v37 }
 0x3ff   : > { %6472 = vmatmul.mubr.bf16.gmra.mrb[72].mxu1 %v3844_v14 }
 0x43a   : > { %v6047_v20 = vpop.f32.mrb[100].mxu0 }
 0x43b   : > { %v6048_v54 = vpop.f32.mrb[101].mxu0 }
 0x43c   : > { %v6049_v0 = vadd.f32 %v6048_v54, %v6047_v20  ;;  %v6050_v7 = vpop.f32.mrb[102].mxu0 }
 0x43d   : > { %v6051_v44 = vpop.f32.mrb[103].mxu0 }
 0x43e   : > { %v6052_v57 = vadd.f32 %v6051_v44, %v6050_v7 }
 0x442   : > { %v6053_v29 = vpop.f32.mrb[104].mxu0 }
 0x443   : > { %v6054_v19 = vpop.f32.mrb[105].mxu0 }
 0x444   : > { %v8562_v17 = vadd.f32 %v6054_v19, %v6053_v29  ;;  %v6056_v30 = vpop.f32.mrb[106].mxu0 }
 0x445   : > { %v6057_v18 = vpop.f32.mrb[107].mxu0 }
 0x446   : > { %v8564_v10 = vadd.f32 %v6057_v18, %v6056_v30 }
 0x44a   : > { %v6059_v37 = vpop.f32.mrb[108].mxu0 }
 0x44b   : > { %v6060_v62 = vpop.f32.mrb[109].mxu0 }
 0x44c   : > { %v8566_v32 = vadd.f32 %v6060_v62, %v6059_v37  ;;  %v6062_v59 = vpop.f32.mrb[110].mxu0 }
 0x44d   : > { %v6063_v12 = vpop.f32.mrb[111].mxu0 }
 0x44e   : > { %v8568_v51 = vadd.f32 %v6063_v12, %v6062_v59 }
 0x452   : > { %v6065_v26 = vpop.f32.mrb[112].mxu0 }
 0x453   : > { %v6066_v52 = vpop.f32.mrb[113].mxu0 }
 0x454   : > { %v8570_v15 = vadd.f32 %v6066_v52, %v6065_v26  ;;  %v6068_v8 = vpop.f32.mrb[114].mxu0 }
 0x455   : > { %v6069_v25 = vpop.f32.mrb[115].mxu0 }
 0x456   : > { %v8572_v27 = vadd.f32 %v6069_v25, %v6068_v8 }
 0x45a   : > { %v6071_v61 = vpop.f32.mrb[116].mxu0 }
 0x45b   : > { %v6072_v58 = vpop.f32.mrb[117].mxu0 }
 0x45c   : > { %v8574_v53 = vadd.f32 %v6072_v58, %v6071_v61  ;;  %v6074_v13 = vpop.f32.mrb[118].mxu0 }
 0x45d   : > { %v6075_v42 = vpop.f32.mrb[119].mxu0 }
 0x45e   : > { %v8576_v2 = vadd.f32 %v6075_v42, %v6074_v13 }
 0x462   : > { %v6077_v22 = vpop.f32.mrb[120].mxu0 }
 0x463   : > { %v6078_v46 = vpop.f32.mrb[121].mxu0 }
 0x464   : > { %v8578_v33 = vadd.f32 %v6078_v46, %v6077_v22  ;;  %v6080_v49 = vpop.f32.mrb[122].mxu0 }
 0x465   : > { %v6081_v56 = vpop.f32.mrb[123].mxu0 }
 0x466   : > { %v8580_v28 = vadd.f32 %v6081_v56, %v6080_v49 }
 0x46a   : > { %v6083_v16 = vpop.f32.mrb[124].mxu0 }
 0x46b   : > { %v6084_v34 = vpop.f32.mrb[125].mxu0 }
 0x46c   : > { %v8582_v3 = vadd.f32 %v6084_v34, %v6083_v16  ;;  %v6086_v50 = vpop.f32.mrb[126].mxu0 }
 0x46d   : > { %v6087_v23 = vpop.f32.mrb[127].mxu0 }
 0x46e   : > { %v8584_v63 = vadd.f32 %v6087_v23, %v6086_v50 }
 0x472   : > { %v6089_v31 = vpop.f32.mrb[128].mxu0 }
 0x473   : > { %v6090_v38 = vpop.f32.mrb[129].mxu0 }
 0x474   : > { %v8586_v21 = vadd.f32 %v6090_v38, %v6089_v31  ;;  %v6092_v6 = vpop.f32.mrb[130].mxu0 }
 0x475   : > { %v6093_v36 = vpop.f32.mrb[131].mxu0 }
 0x476   : > { %v8588_v41 = vadd.f32 %v6093_v36, %v6092_v6 }
 0x47a   : > { %v6207_v47 = vpop.f32.mrb[76].mxu1  ;;  %v6127_v9 = vpop.f32.mrb[132].mxu0 }
 0x47b   : > { %v6208_v60 = vpop.f32.mrb[77].mxu1  ;;  %v6128_v4 = vpop.f32.mrb[133].mxu0 }
 0x47c   : > { %v6209_v45 = vadd.f32 %v6208_v60, %v6207_v47  ;;  %v6210_v40 = vpop.f32.mrb[78].mxu1  ;;  %v6129_v1 = vadd.f32 %v6128_v4, %v6127_v9  ;;  %v6130_v39 = vpop.f32.mrb[134].mxu0 }
 0x47d   : > { %v6211_v35 = vpop.f32.mrb[79].mxu1  ;;  %v6131_v5 = vpop.f32.mrb[135].mxu0 }
 0x47e   : > { %v6212_v24 = vadd.f32 %v6211_v35, %v6210_v40  ;;  %v6558_v48 = vadd.f32 %v6129_v1, %v6049_v0  ;;  %v6132_v55 = vadd.f32 %v6131_v5, %v6130_v39 }
 0x480   : > { %v6564_v7 = vadd.f32 %v6132_v55, %v6052_v57  ;;  %v8590_v29 = vadd.f32 %v6558_v48, %v6209_v45 }
 0x482   : > { %v6213_v11 = vpop.f32.mrb[80].mxu1  ;;  %v6133_v19 = vpop.f32.mrb[136].mxu0  ;;  %v8592_v30 = vadd.f32 %v6564_v7, %v6212_v24 }
 0x483   : > { %v6214_v43 = vpop.f32.mrb[81].mxu1  ;;  %v6134_v18 = vpop.f32.mrb[137].mxu0 }
 0x484   : > { %v6215_v14 = vadd.f32 %v6214_v43, %v6213_v11  ;;  %v6216_v20 = vpop.f32.mrb[82].mxu1  ;;  %v6135_v37 = vadd.f32 %v6134_v18, %v6133_v19  ;;  %v6136_v62 = vpop.f32.mrb[138].mxu0 }
 0x485   : > { %v6217_v54 = vpop.f32.mrb[83].mxu1  ;;  %v6137_v12 = vpop.f32.mrb[139].mxu0 }
 0x486   : > { %v6218_v44 = vadd.f32 %v6217_v54, %v6216_v20  ;;  %v6555_v52 = vadd.f32 %v6135_v37, %v8562_v17  ;;  %v6138_v0 = vadd.f32 %v6137_v12, %v6136_v62 }
 0x488   : > { %v6561_v57 = vadd.f32 %v6138_v0, %v8564_v10  ;;  %v8596_v13 = vadd.f32 %v6555_v52, %v6215_v14 }
 0x48a   : > { %v6219_v59 = vpop.f32.mrb[84].mxu1  ;;  %v6139_v42 = vpop.f32.mrb[140].mxu0  ;;  %v8598_v22 = vadd.f32 %v6561_v57, %v6218_v44 }
 0x48b   : > { %v6220_v26 = vpop.f32.mrb[85].mxu1  ;;  %v6140_v46 = vpop.f32.mrb[141].mxu0 }
 0x48c   : > { %v6221_v8 = vadd.f32 %v6220_v26, %v6219_v59  ;;  %v6222_v25 = vpop.f32.mrb[86].mxu1  ;;  %v6141_v49 = vadd.f32 %v6140_v46, %v6139_v42  ;;  %v6142_v56 = vpop.f32.mrb[142].mxu0 }
 0x48d   : > { %v6223_v61 = vpop.f32.mrb[87].mxu1  ;;  %v6143_v34 = vpop.f32.mrb[143].mxu0 }
 0x48e   : > { %v6224_v58 = vadd.f32 %v6223_v61, %v6222_v25  ;;  %v6570_v17 = vadd.f32 %v6141_v49, %v8566_v32  ;;  %v6144_v23 = vadd.f32 %v6143_v34, %v6142_v56 }
 0x490   : > { %v6576_v10 = vadd.f32 %v6144_v23, %v8568_v51  ;;  %v8602_v47 = vadd.f32 %v6570_v17, %v6221_v8 }
 0x492   : > { %v6225_v16 = vpop.f32.mrb[88].mxu1  ;;  %v6145_v60 = vpop.f32.mrb[144].mxu0  ;;  %v8604_v45 = vadd.f32 %v6576_v10, %v6224_v58 }
 0x493   : > { %v6226_v50 = vpop.f32.mrb[89].mxu1  ;;  %v6146_v40 = vpop.f32.mrb[145].mxu0 }
 0x494   : > { %v6227_v31 = vadd.f32 %v6226_v50, %v6225_v16  ;;  %v6228_v38 = vpop.f32.mrb[90].mxu1  ;;  %v6147_v35 = vadd.f32 %v6146_v40, %v6145_v60  ;;  %v6148_v24 = vpop.f32.mrb[146].mxu0 }
 0x495   : > { %v6229_v6 = vpop.f32.mrb[91].mxu1  ;;  %v6149_v4 = vpop.f32.mrb[147].mxu0 }
 0x496   : > { %v6230_v36 = vadd.f32 %v6229_v6, %v6228_v38  ;;  %v6567_v32 = vadd.f32 %v6147_v35, %v8570_v15  ;;  %v6150_v39 = vadd.f32 %v6149_v4, %v6148_v24 }
 0x498   : > { %v6573_v51 = vadd.f32 %v6150_v39, %v8572_v27  ;;  %v8608_v55 = vadd.f32 %v6567_v32, %v6227_v31 }
 0x49a   : > { %v6231_v9 = vpop.f32.mrb[92].mxu1  ;;  %v6151_v14 = vpop.f32.mrb[148].mxu0  ;;  %v8610_v20 = vadd.f32 %v6573_v51, %v6230_v36 }
 0x49b   : > { %v6232_v1 = vpop.f32.mrb[93].mxu1  ;;  %v6152_v54 = vpop.f32.mrb[149].mxu0 }
 0x49c   : > { %v6233_v11 = vadd.f32 %v6232_v1, %v6231_v9  ;;  %v6234_v5 = vpop.f32.mrb[94].mxu1  ;;  %v6153_v7 = vadd.f32 %v6152_v54, %v6151_v14  ;;  %v6154_v44 = vpop.f32.mrb[150].mxu0 }
 0x49d   : > { %v6235_v43 = vpop.f32.mrb[95].mxu1  ;;  %v6155_v18 = vpop.f32.mrb[151].mxu0 }
 0x49e   : > { %v6236_v48 = vadd.f32 %v6235_v43, %v6234_v5  ;;  %v6582_v15 = vadd.f32 %v6153_v7, %v8574_v53  ;;  %v6156_v62 = vadd.f32 %v6155_v18, %v6154_v44  ;;  %v5140_v18 = vld [vmem:[%s7665_s21 + $0x10] sm:$0xff] }
 0x4a0   : > { %v6588_v27 = vadd.f32 %v6156_v62, %v8576_v2  ;;  %v8614_v0 = vadd.f32 %v6582_v15, %v6233_v11 }
 0x4a2   : > { %v6237_v19 = vpop.f32.mrb[96].mxu1  ;;  %v6157_v8 = vpop.f32.mrb[152].mxu0  ;;  %v8616_v25 = vadd.f32 %v6588_v27, %v6236_v48 }
 0x4a3   : > { %v6238_v37 = vpop.f32.mrb[97].mxu1  ;;  %v6158_v61 = vpop.f32.mrb[153].mxu0 }
 0x4a4   : > { %v6239_v59 = vadd.f32 %v6238_v37, %v6237_v19  ;;  %v6240_v12 = vpop.f32.mrb[98].mxu1  ;;  %v6159_v57 = vadd.f32 %v6158_v61, %v6157_v8  ;;  %v6160_v58 = vpop.f32.mrb[154].mxu0 }
 0x4a5   : > { %v6241_v26 = vpop.f32.mrb[99].mxu1  ;;  %v6161_v46 = vpop.f32.mrb[155].mxu0 }
 0x4a6   : > { %v6242_v52 = vadd.f32 %v6241_v26, %v6240_v12  ;;  %v6579_v53 = vadd.f32 %v6159_v57, %v8578_v33  ;;  %v6162_v56 = vadd.f32 %v6161_v46, %v6160_v58  ;;  %v5139_v57 = vld [vmem:[%s7665_s21 + $0x8] sm:$0xff] }
 0x4a8   : > { %v6585_v2 = vadd.f32 %v6162_v56, %v8580_v28  ;;  %v8620_v23 = vadd.f32 %v6579_v53, %v6239_v59  ;;  %v5138_v59 = vld [vmem:[%s7665_s21] sm:$0xff]  ;;  %v5144_v56 = vld [vmem:[%s7665_s21 + $0x30] sm:$0xff] }
 0x4aa   : > { %v6243_v42 = vpop.f32.mrb[100].mxu1  ;;  %v6163_v31 = vpop.f32.mrb[156].mxu0  ;;  %v8622_v38 = vadd.f32 %v6585_v2, %v6242_v52  ;;  %v5142_v2 = vld [vmem:[%s7665_s21 + $0x20] sm:$0xff] }
 0x4ab   : > { %v6244_v49 = vpop.f32.mrb[101].mxu1  ;;  %v6164_v6 = vpop.f32.mrb[157].mxu0 }
 0x4ac   : > { %v6245_v16 = vadd.f32 %v6244_v49, %v6243_v42  ;;  %v6246_v34 = vpop.f32.mrb[102].mxu1  ;;  %v6165_v10 = vadd.f32 %v6164_v6, %v6163_v31  ;;  %v6166_v36 = vpop.f32.mrb[158].mxu0 }
 0x4ad   : > { %v6247_v50 = vpop.f32.mrb[103].mxu1  ;;  %v6167_v40 = vpop.f32.mrb[159].mxu0 }
 0x4ae   : > { %v6248_v17 = vadd.f32 %v6247_v50, %v6246_v34  ;;  %v6594_v33 = vadd.f32 %v6165_v10, %v8582_v3  ;;  %v6168_v24 = vadd.f32 %v6167_v40, %v6166_v36  ;;  %v8630_v3 = vld [vmem:[#allocation16] ss:$0 sm:$0xff]  ;;  %v5145_v10 = vld [vmem:[%s7665_s21 + $0x38] sm:$0xff] }
 0x4b0   : > { %v6600_v28 = vadd.f32 %v6168_v24, %v8584_v63  ;;  %v8626_v39 = vadd.f32 %v6594_v33, %v6245_v16 }
 0x4b2   : > { %v6249_v60 = vpop.f32.mrb[104].mxu1  ;;  %v6169_v11 = vpop.f32.mrb[160].mxu0  ;;  %v8628_v5 = vadd.f32 %v6600_v28, %v6248_v17 }
 0x4b3   : > { %v6250_v35 = vpop.f32.mrb[105].mxu1  ;;  %v6170_v43 = vpop.f32.mrb[161].mxu0 }
 0x4b4   : > { %v6251_v9 = vadd.f32 %v6250_v35, %v6249_v60  ;;  %v6252_v4 = vpop.f32.mrb[106].mxu1  ;;  %v6171_v51 = vadd.f32 %v6170_v43, %v6169_v11  ;;  %v6172_v48 = vpop.f32.mrb[162].mxu0  ;;  %v5146_v11 = vld [vmem:[%s7665_s21 + $0x40] sm:$0xff] }
 0x4b5   : > { %v6253_v1 = vpop.f32.mrb[107].mxu1  ;;  %v6173_v54 = vpop.f32.mrb[163].mxu0 }
 0x4b6   : > { %v6254_v32 = vadd.f32 %v6253_v1, %v6252_v4  ;;  %v6591_v63 = vadd.f32 %v6171_v51, %v8586_v21  ;;  %v6174_v19 = vadd.f32 %v6173_v54, %v6172_v48  ;;  %v5141_v21 = vld [vmem:[%s7665_s21 + $0x18] sm:$0xff] }
 0x4b8   : > { %v6597_v27 = vadd.f32 %v6174_v19, %v8588_v41  ;;  %v8643_v8 = vadd.f32 %v6591_v63, %v6251_v9 }
 0x4ba   : > { %v6461_v14 = vpop.f32.mrb[60].mxu1  ;;  %v8648_v42 = vadd.f32 %v6597_v27, %v6254_v32 }
 0x4bb   : > { %v6557_v7 = vadd.f32 %v8596_v13, %v6461_v14  ;;  %v5036_v44 = vpop.f32.mrb[61].mxu1 }
 0x4bc   : > { %v6560_v37 = vadd.f32 %v8590_v29, %v5036_v44  ;;  %v6462_v15 = vpop.f32.mrb[62].mxu1 }
 0x4bd   : > { %v5124_v62 = vadd.f32 %v6557_v7, %v8630_v3  ;;  %v6563_v12 = vadd.f32 %v8598_v22, %v6462_v15  ;;  %v5039_v26 = vpop.f32.mrb[63].mxu1  ;;  %v5147_v7 = vld [vmem:[%s7665_s21 + $0x48] sm:$0xff]  ;;  %v5152_v15 = vld [vmem:[%s7665_s21 + $0x70] sm:$0xff] }
 0x4be   : > { %v5122_v13 = vadd.f32 %v6560_v37, %v8630_v3  ;;  %v6566_v52 = vadd.f32 %v8592_v30, %v5039_v26  ;;  %v5150_v26 = vld [vmem:[%s7665_s21 + $0x60] sm:$0xff] }
 0x4bf   : > { %v5156_v29 = vadd.f32 %v5140_v18, %v5124_v62  ;;  %v5125_v61 = vadd.f32 %v6563_v12, %v8630_v3 }
 0x4c0   : > { %v5154_v58 = vadd.f32 %v5138_v59, %v5122_v13  ;;  %v5123_v22 = vadd.f32 %v6566_v52, %v8630_v3  ;;  %v5153_v52 = vld [vmem:[%s7665_s21 + $0x78] sm:$0xff] }
 0x4c1   : > { %5172 = vst [vmem:[%s7945_s15 + $0x10] sm:$0xff] %v5156_v29  ;;  %v5157_v41 = vadd.f32 %v5141_v21, %v5125_v61  ;;  %v5151_v61 = vld [vmem:[%s7665_s21 + $0x68] sm:$0xff] }
 0x4c2   : > { %5170 = vst [vmem:[%s7945_s15] sm:$0xff] %v5154_v58  ;;  %v5155_v46 = vadd.f32 %v5139_v57, %v5123_v22  ;;  %v6465_v30 = vpop.f32.mrb[64].mxu1 }
 0x4c3   : > { %5173 = vst [vmem:[%s7945_s15 + $0x18] sm:$0xff] %v5157_v41  ;;  %v6569_v49 = vadd.f32 %v8608_v55, %v6465_v30  ;;  %v5052_v53 = vpop.f32.mrb[65].mxu1 }
 0x4c4   : > { %5171 = vst [vmem:[%s7945_s15 + $0x8] sm:$0xff] %v5155_v46  ;;  %v6572_v16 = vadd.f32 %v8602_v47, %v5052_v53  ;;  %v6466_v34 = vpop.f32.mrb[66].mxu1  ;;  %v5143_v47 = vld [vmem:[%s7665_s21 + $0x28] sm:$0xff] }
 0x4c5   : > { %v5128_v50 = vadd.f32 %v6569_v49, %v8630_v3  ;;  %v6575_v17 = vadd.f32 %v8610_v20, %v6466_v34  ;;  %v5055_v31 = vpop.f32.mrb[67].mxu1 }
 0x4c6   : > { %v5126_v6 = vadd.f32 %v6572_v16, %v8630_v3  ;;  %v6578_v55 = vadd.f32 %v8604_v45, %v5055_v31  ;;  %v5148_v45 = vld [vmem:[%s7665_s21 + $0x50] sm:$0xff] }
 0x4c7   : > { %v5160_v36 = vadd.f32 %v5144_v56, %v5128_v50  ;;  %v5129_v60 = vadd.f32 %v6575_v17, %v8630_v3 }
 0x4c8   : > { %v5158_v40 = vadd.f32 %v5142_v2, %v5126_v6  ;;  %v5127_v35 = vadd.f32 %v6578_v55, %v8630_v3 }
 0x4c9   : > { %5176 = vst [vmem:[%s7945_s15 + $0x30] sm:$0xff] %v5160_v36  ;;  %v5161_v33 = vadd.f32 %v5145_v10, %v5129_v60 }
 0x4ca   : > { %5174 = vst [vmem:[%s7945_s15 + $0x20] sm:$0xff] %v5158_v40  ;;  %v5159_v20 = vadd.f32 %v5143_v47, %v5127_v35  ;;  %v6469_v24 = vpop.f32.mrb[68].mxu1 }
 0x4cb   : > { %5177 = vst [vmem:[%s7945_s15 + $0x38] sm:$0xff] %v5161_v33  ;;  %v6581_v9 = vadd.f32 %v8620_v23, %v6469_v24  ;;  %v5068_v4 = vpop.f32.mrb[69].mxu1  ;;  %v5149_v23 = vld [vmem:[%s7665_s21 + $0x58] sm:$0xff]  ;;  %s5187_s21 = scalar_lea.sflag [#allocation10], %s7659_s30 }
 0x4cc   : > { %5175 = vst [vmem:[%s7945_s15 + $0x28] sm:$0xff] %v5159_v20  ;;  %v6584_v1 = vadd.f32 %v8614_v0, %v5068_v4  ;;  %v6470_v28 = vpop.f32.mrb[70].mxu1 }
 0x4cd   : > { %v5132_v32 = vadd.f32 %v6581_v9, %v8630_v3  ;;  %v6587_v43 = vadd.f32 %v8622_v38, %v6470_v28  ;;  %v5071_v51 = vpop.f32.mrb[71].mxu1 }
 0x4ce   : > { %v5130_v48 = vadd.f32 %v6584_v1, %v8630_v3  ;;  %v6590_v14 = vadd.f32 %v8616_v25, %v5071_v51 }
 0x4cf   : > { %v5164_v54 = vadd.f32 %v5148_v45, %v5132_v32  ;;  %v5133_v0 = vadd.f32 %v6587_v43, %v8630_v3 }
 0x4d0   : > { %v5162_v44 = vadd.f32 %v5146_v11, %v5130_v48  ;;  %v5131_v63 = vadd.f32 %v6590_v14, %v8630_v3 }
 0x4d1   : > { %5180 = vst [vmem:[%s7945_s15 + $0x50] sm:$0xff] %v5164_v54  ;;  %v5165_v19 = vadd.f32 %v5149_v23, %v5133_v0 }
 0x4d2   : > { %5178 = vst [vmem:[%s7945_s15 + $0x40] sm:$0xff] %v5162_v44  ;;  %v5163_v38 = vadd.f32 %v5147_v7, %v5131_v63  ;;  %v6473_v18 = vpop.f32.mrb[72].mxu1 }
 0x4d3   : > { %5181 = vst [vmem:[%s7945_s15 + $0x58] sm:$0xff] %v5165_v19  ;;  %v6593_v25 = vadd.f32 %v8643_v8, %v6473_v18  ;;  %v5084_v37 = vpop.f32.mrb[73].mxu1 }
 0x4d4   : > { %5179 = vst [vmem:[%s7945_s15 + $0x48] sm:$0xff] %v5163_v38  ;;  %v6596_v62 = vadd.f32 %v8626_v39, %v5084_v37  ;;  %v6474_v59 = vpop.f32.mrb[74].mxu1 }
 0x4d5   : > { %v5136_v12 = vadd.f32 %v6593_v25, %v8630_v3  ;;  %v6599_v27 = vadd.f32 %v8648_v42, %v6474_v59  ;;  %v5087_v13 = vpop.f32.mrb[75].mxu1 }
 0x4d6   : > { %v5134_v21 = vadd.f32 %v6596_v62, %v8630_v3  ;;  %v6602_v8 = vadd.f32 %v8628_v5, %v5087_v13 }
 0x4d7   : > { %v5168_v39 = vadd.f32 %v5152_v15, %v5136_v12  ;;  %v5137_v29 = vadd.f32 %v6599_v27, %v8630_v3 }
 0x4d8   : > { %v5166_v57 = vadd.f32 %v5150_v26, %v5134_v21  ;;  %v5135_v58 = vadd.f32 %v6602_v8, %v8630_v3 }
 0x4d9   : > { %5184 = vst [vmem:[%s7945_s15 + $0x70] sm:$0xff] %v5168_v39  ;;  %v5169_v22 = vadd.f32 %v5153_v52, %v5137_v29 }
 0x4da   : > { %5182 = vst [vmem:[%s7945_s15 + $0x60] sm:$0xff] %v5166_v57  ;;  %v5167_v5 = vadd.f32 %v5151_v61, %v5135_v58 }
 0x4db   : > { %5185 = vst [vmem:[%s7945_s15 + $0x78] sm:$0xff] %v5169_v22 }
 0x4dc   : > { %5183 = vst [vmem:[%s7945_s15 + $0x68] sm:$0xff] %v5167_v5 }
 0x4dd   : > { %7258 = shalt.err (!%p7255_p10)
}
 0x4de   : > { %s7259_s12 = scalar_lea.hbm %s8708_s11, 2048  ;;  %s7263_s2 = scalar_lea.hbm %s8819_s20, 8192 }
 0x4df   : > { %p7260_p0 = scmp.ne.s32.totalorder %s8708_s11, %s7259_s12  ;;  %p7264_p8 = scmp.lt.u32.totalorder %s8708_s11, %s8819_s20 }
 0x4e0   : > { %p7265_p11 = scmp.lt.u32.totalorder %s7263_s2, %s7259_s12  ;;  %p7267_p13 = scmp.lt.u32.totalorder %s7259_s12, %s8708_s11 }
 0x4e1   : > { %p7261_p4 = pnand %p7260_p0, %p8820_p9 }
 0x4e2   : > { %p7266_p2 = por %p7265_p11, %p7264_p8 }
 0x4e3   : > { %p7262_p3 = pneg %p7261_p4 }
 0x4e4   : > { %p7268_p5 = por %p7267_p13, %p7266_p2 }
 0x4e6   : > { %p7269_p7 = pnand %p7268_p5, %p7262_p3 }
 0x4e8   : > { %7272 = shalt.err (!%p7269_p7)
}
 0x4e9   : > { %s7373_s19 = smov 128   ;;  %s7374_s3 = smov 8  }
 0x4ea   : > { %6677 = dma.vmem_to_hbm [thread:$0]  (%p8820_p9), %s8702_s24, 2048, %s8708_s11, %s5187_s21, %s7373_s19, %s7373_s19, %s7374_s3  }
 0x4eb PF: > { %s8821_s4 = sld [smem:[#allocation30_spill]]  ;;  %s8822_s13 = sld [smem:[#allocation32_spill]] }
 0x4ec   : > { %p6711_p1 = scmp.ge.s32.totalorder %s7355_s28, 2 }
 0x4f1   : > { %s5218_s8 = sand.u32 1, %s8821_s4   ;;  %p8823_p12 = scmp.ne.s32.totalorder %s8822_s13, 0 }
 0x4f2   : > { %s5219_s1 = scalar_lea.sflag [#allocation10], %s5218_s8 }
 0x4f3   : > { %p6697_p6 = pnand %p6711_p1, %p8823_p12 }
 0x4f5   : > { %7322 = dma.done.wait (!%p6697_p6), %s5219_s1, 2048  }
 0x4f6   : > { %7324 = vsyncadd (!%p6697_p6), %s5219_s1, 4294965248  ;;  %s24_s28 = sadd.s32 1, %s7355_s28   ;;  %s8824_s21 = smov %s7331_s22 }
 0x4f7   : > { %p21_p10 = scmp.ge.s32.totalorder %s24_s28, 6   ;;  %s8825_s22 = smov %s7335_s23 }
 0x4f8   : > { %s8826_s23 = smov %s7611_s16  ;;  %s8827_s24 = smov %s7347_s26 }
 0x4f9   : > { %s8828_s25 = smov %s7351_s27  ;;  %s8829_s26 = smov %s8832_s10 }
 0x4fa   : > { %s8830_s27 = smov %s8836_s29  ;;  %23 = sbr.rel (!%p21_p10) target bundleno = 15 (0xf), region = 160 }
 0x501   :  { %5224 = vsyncpa [#allocation9], 1 }
 0x502   :  { %5226 = vsyncpa [#allocation9 + $0x1], 1 }
 0x503   :  { %5227 = vsyncpa [#allocation12], 1 }
 0x504   :  { %5228 = vsyncpa [#allocation15], 1 }
 0x505   :  { %5229 = vsyncpa [#allocation10], 1 }
 0x506   :  { %5231 = vsyncpa [#allocation10 + $0x1], 1 }
 0x507   :  { %5232 = vsyncmov [#allocation7] }
 0x50a   :  { %s5233_s6 = vpop.sfrf %5232 }
 0x50b   :  { %p5700_p9 = scmp.ne.s32.totalorder %s5233_s6, 0 }
 0x50d   :  { %5237 = shalt.err (%p5700_p9)  }
 0x50e   :  { %5239 = vsyncmov [#allocation7 + $0x1] }
 0x511   :  { %s5240_s16 = vpop.sfrf %5239 }
 0x512   :  { %p5701_p0 = scmp.ne.s32.totalorder %s5240_s16, 0 }
 0x514   :  { %5244 = shalt.err (%p5701_p0)  }

</bundles_post_ra>
